<compile_context>
chip_gen: v7x
topology: tpu7x:2x2x1
jax: 0.10.0
libtpu: 0.0.40
codegen_flags: <defaults>
</compile_context>

<pallas_src>
import functools

import jax
import jax.numpy as jnp
from jax import lax
from jax.experimental import pallas as pl
from jax.experimental.pallas import tpu as pltpu

EPS = 1e-5   # nn.BatchNorm2d default eps
LANE = 128


def _round_up(x, m):
    return (x + m - 1) // m * m


def _conv_accumulate(x_ref, w_ref, acc_ref, *, H, W, Cin, kH, kW):
    """Fused-im2col conv: accumulate kH*kW shifted matmuls into fp32 scratch.

    x_ref : (1, H+kH-1, W+kW-1, Cin)  bf16  (zero-padded image)
    w_ref : (kH*kW, Cin, Coutp)       bf16
    acc_ref: (H*W, Coutp)             f32 VMEM scratch
    """
    for kh in range(kH):
        for kw in range(kW):
            win = x_ref[0, pl.ds(kh, H), pl.ds(kw, W), :]          # (H, W, Cin)
            win2d = win.reshape(H * W, Cin)                         # lane-dense
            part = jnp.dot(win2d, w_ref[kh * kW + kw],
                           preferred_element_type=jnp.float32)
            if kh == 0 and kw == 0:
                acc_ref[...] = part          # first tap initializes (no memset)
            else:
                acc_ref[...] += part


def _stats_kernel(x_ref, w_ref, stat_ref, acc_ref, *, H, W, Cin, kH, kW):
    """Pass 1: per-image per-channel sum and sum-of-squares of conv output."""
    _conv_accumulate(x_ref, w_ref, acc_ref, H=H, W=W, Cin=Cin, kH=kH, kW=kW)
    conv = acc_ref[...]                                             # f32
    s = jnp.sum(conv, axis=0, keepdims=True)                        # (1, Coutp)
    ss = jnp.sum(conv * conv, axis=0, keepdims=True)                # (1, Coutp)
    stat_ref[0] = jnp.concatenate([s, ss], axis=0)                  # (2, Coutp)


def _apply_kernel(x_ref, w_ref, scale_ref, shift_ref, out_ref, acc_ref,
                  *, H, W, Cin, kH, kW):
    """Pass 2: recompute conv, apply precomputed BN scale/shift + ReLU."""
    _conv_accumulate(x_ref, w_ref, acc_ref, H=H, W=W, Cin=Cin, kH=kH, kW=kW)
    y = acc_ref[...] * scale_ref[...] + shift_ref[...]              # single FMA
    out_ref[0] = jnp.maximum(y, 0.0).astype(out_ref.dtype)


def conv_block_forward(x_nchw, weight, bias, gamma, beta):
    """Fused Conv2d(3x3, stride=1, pad=1) + BatchNorm2d(train) + ReLU.

    x_nchw : (N, Cin, H, W) float32
    weight : (Cout, Cin, kH, kW) float32 (PyTorch layout)
    bias   : (Cout,) float32   (cancels under train-mode BN; not used in kernel)
    gamma  : (Cout,) float32
    beta   : (Cout,) float32
    returns: (N, Cout, H, W) float32
    """
    N, Cin, H, W = x_nchw.shape
    Cout, _, kH, kW = weight.shape
    pad = (kH - 1) // 2
    assert kH == kW and pad * 2 + 1 == kH, "only odd 'same' kernels supported"

    Cinp = _round_up(Cin, LANE)     # lane-align the contraction dim
    Coutp = _round_up(Cout, LANE)   # lane-dense output (unmasked stores)
    Hp, Wp = H + 2 * pad, W + 2 * pad
    M = N * H * W

    # --- glue: NCHW -> zero-padded NHWC, channel-padded, bf16 MXU operands ---
    x_nhwc = jnp.transpose(x_nchw, (0, 2, 3, 1))                     # (N,H,W,Cin)
    x_pad = jnp.pad(x_nhwc, ((0, 0), (pad, pad), (pad, pad), (0, Cinp - Cin)))
    x_pad = x_pad.astype(jnp.bfloat16)                               # (N,Hp,Wp,Cinp)

    # (Cout, Cin, kH, kW) -> (kH*kW, Cinp, Coutp), zero-padded.
    w_taps = jnp.transpose(weight, (2, 3, 1, 0)).reshape(kH * kW, Cin, Cout)
    w_taps = jnp.pad(w_taps, ((0, 0), (0, Cinp - Cin), (0, Coutp - Cout)))
    w_taps = w_taps.astype(jnp.bfloat16)

    # Conv bias cancels exactly in train-mode BN: (conv+b) - mean(conv+b) ==
    # conv - mean(conv).  Drop it from both passes.
    del bias

    cparams = pltpu.CompilerParams(
        dimension_semantics=("parallel",),
        vmem_limit_bytes=32 * 1024 * 1024,
    )

    x_spec = pl.BlockSpec((1, Hp, Wp, Cinp), lambda n: (n, 0, 0, 0))
    w_spec = pl.BlockSpec((kH * kW, Cinp, Coutp), lambda n: (0, 0, 0))
    acc_scratch = pltpu.VMEM((H * W, Coutp), jnp.float32)

    # --- pass 1: per-image partial BN statistics -----------------------------
    stats_fn = functools.partial(_stats_kernel, H=H, W=W, Cin=Cinp, kH=kH, kW=kW)
    partials = pl.pallas_call(
        stats_fn,
        out_shape=jax.ShapeDtypeStruct((N, 2, Coutp), jnp.float32),
        grid_spec=pltpu.PrefetchScalarGridSpec(
            num_scalar_prefetch=0,
            grid=(N,),
            in_specs=[x_spec, w_spec],
            out_specs=pl.BlockSpec((1, 2, Coutp), lambda n: (n, 0, 0)),
            scratch_shapes=[acc_scratch]),
        compiler_params=cparams,
    )(x_pad, w_taps)

    # --- glue: fold global stats into per-channel scale/shift (tiny, fp32) ---
    sums = jnp.sum(partials[:, 0, :], axis=0)                        # (Coutp,)
    sumsq = jnp.sum(partials[:, 1, :], axis=0)
    mean = sums / M
    var = jnp.maximum(sumsq / M - mean * mean, 0.0)                  # biased var
    inv_std = lax.rsqrt(var + EPS)
    gamma_p = jnp.pad(gamma.astype(jnp.float32), (0, Coutp - Cout))
    beta_p = jnp.pad(beta.astype(jnp.float32), (0, Coutp - Cout))
    scale = (gamma_p * inv_std).reshape(1, Coutp)
    shift = (beta_p - mean * gamma_p * inv_std).reshape(1, Coutp)

    # --- pass 2: conv (recomputed, cheaper than spilling it) + BN + ReLU -----
    apply_fn = functools.partial(_apply_kernel, H=H, W=W, Cin=Cinp, kH=kH, kW=kW)
    out_flat = pl.pallas_call(
        apply_fn,
        out_shape=jax.ShapeDtypeStruct((N, H * W, Coutp), jnp.float32),
        grid_spec=pltpu.PrefetchScalarGridSpec(
            num_scalar_prefetch=0,
            grid=(N,),
            in_specs=[x_spec, w_spec,
                      pl.BlockSpec((1, Coutp), lambda n: (0, 0)),
                      pl.BlockSpec((1, Coutp), lambda n: (0, 0))],
            out_specs=pl.BlockSpec((1, H * W, Coutp), lambda n: (n, 0, 0)),
            scratch_shapes=[acc_scratch]),
        compiler_params=cparams,
    )(x_pad, w_taps, scale, shift)

    # --- glue: drop channel padding, back to NCHW -----------------------------
    out = out_flat[:, :, :Cout].reshape(N, H, W, Cout)
    return jnp.transpose(out, (0, 3, 1, 2))


def reference_forward(x_nchw, weight, bias, gamma, beta):
    """Pure-JAX fp32 reference (conv -> train-mode BN -> ReLU)."""
    conv = lax.conv_general_dilated(
        x_nchw, weight, window_strides=(1, 1), padding=((1, 1), (1, 1)),
        dimension_numbers=("NCHW", "OIHW", "NCHW"))
    conv = conv + bias.reshape(1, -1, 1, 1)
    mean = jnp.mean(conv, axis=(0, 2, 3), keepdims=True)
    var = jnp.mean((conv - mean) ** 2, axis=(0, 2, 3), keepdims=True)
    y = gamma.reshape(1, -1, 1, 1) * (conv - mean) / jnp.sqrt(var + EPS) \
        + beta.reshape(1, -1, 1, 1)
    return jnp.maximum(y, 0.0)


if __name__ == "__main__":
    # ConvBlock(in_f=4, out_f=8, kernel_size=3, padding=1)
    N, Cin, H, W = 2, 4, 16, 16
    Cout, kH, kW = 8, 3, 3

    key = jax.random.PRNGKey(0)
    k_x, k_w, k_b = jax.random.split(key, 3)

    x = jax.random.normal(k_x, (N, Cin, H, W), dtype=jnp.float32)
    weight = 0.1 * jax.random.normal(k_w, (Cout, Cin, kH, kW), dtype=jnp.float32)
    bias = 0.1 * jax.random.normal(k_b, (Cout,), dtype=jnp.float32)
    gamma = jnp.ones((Cout,), dtype=jnp.float32)    # BatchNorm2d default weight
    beta = jnp.zeros((Cout,), dtype=jnp.float32)    # BatchNorm2d default bias

    out = conv_block_forward(x, weight, bias, gamma, beta)
    out = jax.block_until_ready(out)

    ref = reference_forward(x, weight, bias, gamma, beta)
    assert out.shape == (N, Cout, H, W)
    # bf16 MXU operands (fp32 accumulation) -> relaxed tolerance vs fp32 ref.
    assert jnp.allclose(out, ref, atol=5e-2, rtol=5e-2), (
        "mismatch vs reference; max abs diff = "
        f"{float(jnp.max(jnp.abs(out - ref)))}")

    print("KERNEL_OK")
</pallas_src>

<mosaic_0001>
module attributes {stable_mosaic.version = 11 : i64} {
  func.func @_stats_kernel(%arg0: i32, %arg1: memref<1x18x18x128xbf16, #tpu.memory_space<vmem>>, %arg2: memref<9x128x128xbf16, #tpu.memory_space<vmem>>, %arg3: memref<1x2x128xf32, #tpu.memory_space<vmem>>, %arg4: memref<256x128xf32, #tpu.memory_space<vmem>>) attributes {dimension_semantics = [#tpu.dimension_semantics<parallel>], iteration_bounds = array<i64: 2>, scalar_prefetch = 0 : i64, scratch_operands = 1 : i64, tpu.core_type = #tpu.core_type<tc>, window_params = [{transform_indices = @transform_0, window_bounds = array<i64: 1, 18, 18, 128>}, {pipeline_mode = #tpu.pipeline_mode<synchronous>, transform_indices = @transform_1, window_bounds = array<i64: 9, 128, 128>}, {transform_indices = @transform_2, window_bounds = array<i64: 1, 2, 128>}]} {
    %c0 = arith.constant 0 : index
    %c0_0 = arith.constant 0 : index
    %c0_1 = arith.constant 0 : index
    %c0_2 = arith.constant 0 : index
    %0 = vector.load %arg1[%c0, %c0_0, %c0_1, %c0_2] : memref<1x18x18x128xbf16, #tpu.memory_space<vmem>>, vector<1x16x16x128xbf16>
    %1 = vector.shape_cast %0 : vector<1x16x16x128xbf16> to vector<16x16x128xbf16>
    %2 = vector.shape_cast %1 : vector<16x16x128xbf16> to vector<256x128xbf16>
    %c0_3 = arith.constant 0 : index
    %c0_4 = arith.constant 0 : index
    %c0_5 = arith.constant 0 : index
    %3 = vector.load %arg2[%c0_3, %c0_4, %c0_5] : memref<9x128x128xbf16, #tpu.memory_space<vmem>>, vector<1x128x128xbf16>
    %4 = vector.shape_cast %3 : vector<1x128x128xbf16> to vector<128x128xbf16>
    %cst = arith.constant dense<0.000000e+00> : vector<256x128xf32>
    %5 = tpu.matmul %2, %4, %cst {dimension_numbers = #tpu.dot_dimension_numbers<[1], [0], [0], [1], [0, 0, 1, 1], [], []>} : vector<256x128xbf16>, vector<128x128xbf16>, vector<256x128xf32> -> vector<256x128xf32>
    %c0_6 = arith.constant 0 : index
    %c0_7 = arith.constant 0 : index
    %6 = vector.load %arg4[%c0_6, %c0_7] : memref<256x128xf32, #tpu.memory_space<vmem>>, vector<256x128xf32>
    tpu.vector_store %arg4[%c0_6, %c0_7], %5 {strides = array<i32>} : memref<256x128xf32, #tpu.memory_space<vmem>>, vector<256x128xf32>,
    %c0_8 = arith.constant 0 : index
    %c0_9 = arith.constant 0 : index
    %c1 = arith.constant 1 : index
    %c0_10 = arith.constant 0 : index
    %7 = vector.load %arg1[%c0_8, %c0_9, %c1, %c0_10] : memref<1x18x18x128xbf16, #tpu.memory_space<vmem>>, vector<1x16x16x128xbf16>
    %8 = vector.shape_cast %7 : vector<1x16x16x128xbf16> to vector<16x16x128xbf16>
    %9 = vector.shape_cast %8 : vector<16x16x128xbf16> to vector<256x128xbf16>
    %c1_11 = arith.constant 1 : index
    %c0_12 = arith.constant 0 : index
    %c0_13 = arith.constant 0 : index
    %10 = vector.load %arg2[%c1_11, %c0_12, %c0_13] : memref<9x128x128xbf16, #tpu.memory_space<vmem>>, vector<1x128x128xbf16>
    %11 = vector.shape_cast %10 : vector<1x128x128xbf16> to vector<128x128xbf16>
    %cst_14 = arith.constant dense<0.000000e+00> : vector<256x128xf32>
    %12 = tpu.matmul %9, %11, %cst_14 {dimension_numbers = #tpu.dot_dimension_numbers<[1], [0], [0], [1], [0, 0, 1, 1], [], []>} : vector<256x128xbf16>, vector<128x128xbf16>, vector<256x128xf32> -> vector<256x128xf32>
    %c0_15 = arith.constant 0 : index
    %c0_16 = arith.constant 0 : index
    %13 = vector.load %arg4[%c0_15, %c0_16] : memref<256x128xf32, #tpu.memory_space<vmem>>, vector<256x128xf32>
    %14 = arith.addf %13, %12 : vector<256x128xf32>
    %c0_17 = arith.constant 0 : index
    %c0_18 = arith.constant 0 : index
    %15 = vector.load %arg4[%c0_17, %c0_18] : memref<256x128xf32, #tpu.memory_space<vmem>>, vector<256x128xf32>
    tpu.vector_store %arg4[%c0_17, %c0_18], %14 {strides = array<i32>} : memref<256x128xf32, #tpu.memory_space<vmem>>, vector<256x128xf32>,
    %c0_19 = arith.constant 0 : index
    %c0_20 = arith.constant 0 : index
    %c2 = arith.constant 2 : index
    %c0_21 = arith.constant 0 : index
    %16 = vector.load %arg1[%c0_19, %c0_20, %c2, %c0_21] : memref<1x18x18x128xbf16, #tpu.memory_space<vmem>>, vector<1x16x16x128xbf16>
    %17 = vector.shape_cast %16 : vector<1x16x16x128xbf16> to vector<16x16x128xbf16>
    %18 = vector.shape_cast %17 : vector<16x16x128xbf16> to vector<256x128xbf16>
    %c2_22 = arith.constant 2 : index
    %c0_23 = arith.constant 0 : index
    %c0_24 = arith.constant 0 : index
    %19 = vector.load %arg2[%c2_22, %c0_23, %c0_24] : memref<9x128x128xbf16, #tpu.memory_space<vmem>>, vector<1x128x128xbf16>
    %20 = vector.shape_cast %19 : vector<1x128x128xbf16> to vector<128x128xbf16>
    %cst_25 = arith.constant dense<0.000000e+00> : vector<256x128xf32>
    %21 = tpu.matmul %18, %20, %cst_25 {dimension_numbers = #tpu.dot_dimension_numbers<[1], [0], [0], [1], [0, 0, 1, 1], [], []>} : vector<256x128xbf16>, vector<128x128xbf16>, vector<256x128xf32> -> vector<256x128xf32>
    %c0_26 = arith.constant 0 : index
    %c0_27 = arith.constant 0 : index
    %22 = vector.load %arg4[%c0_26, %c0_27] : memref<256x128xf32, #tpu.memory_space<vmem>>, vector<256x128xf32>
    %23 = arith.addf %22, %21 : vector<256x128xf32>
    %c0_28 = arith.constant 0 : index
    %c0_29 = arith.constant 0 : index
    %24 = vector.load %arg4[%c0_28, %c0_29] : memref<256x128xf32, #tpu.memory_space<vmem>>, vector<256x128xf32>
    tpu.vector_store %arg4[%c0_28, %c0_29], %23 {strides = array<i32>} : memref<256x128xf32, #tpu.memory_space<vmem>>, vector<256x128xf32>,
    %c0_30 = arith.constant 0 : index
    %c1_31 = arith.constant 1 : index
    %c0_32 = arith.constant 0 : index
    %c0_33 = arith.constant 0 : index
    %25 = vector.load %arg1[%c0_30, %c1_31, %c0_32, %c0_33] : memref<1x18x18x128xbf16, #tpu.memory_space<vmem>>, vector<1x16x16x128xbf16>
    %26 = vector.shape_cast %25 : vector<1x16x16x128xbf16> to vector<16x16x128xbf16>
    %27 = vector.shape_cast %26 : vector<16x16x128xbf16> to vector<256x128xbf16>
    %c3 = arith.constant 3 : index
    %c0_34 = arith.constant 0 : index
    %c0_35 = arith.constant 0 : index
    %28 = vector.load %arg2[%c3, %c0_34, %c0_35] : memref<9x128x128xbf16, #tpu.memory_space<vmem>>, vector<1x128x128xbf16>
    %29 = vector.shape_cast %28 : vector<1x128x128xbf16> to vector<128x128xbf16>
    %cst_36 = arith.constant dense<0.000000e+00> : vector<256x128xf32>
    %30 = tpu.matmul %27, %29, %cst_36 {dimension_numbers = #tpu.dot_dimension_numbers<[1], [0], [0], [1], [0, 0, 1, 1], [], []>} : vector<256x128xbf16>, vector<128x128xbf16>, vector<256x128xf32> -> vector<256x128xf32>
    %c0_37 = arith.constant 0 : index
    %c0_38 = arith.constant 0 : index
    %31 = vector.load %arg4[%c0_37, %c0_38] : memref<256x128xf32, #tpu.memory_space<vmem>>, vector<256x128xf32>
    %32 = arith.addf %31, %30 : vector<256x128xf32>
    %c0_39 = arith.constant 0 : index
    %c0_40 = arith.constant 0 : index
    %33 = vector.load %arg4[%c0_39, %c0_40] : memref<256x128xf32, #tpu.memory_space<vmem>>, vector<256x128xf32>
    tpu.vector_store %arg4[%c0_39, %c0_40], %32 {strides = array<i32>} : memref<256x128xf32, #tpu.memory_space<vmem>>, vector<256x128xf32>,
    %c0_41 = arith.constant 0 : index
    %c1_42 = arith.constant 1 : index
    %c1_43 = arith.constant 1 : index
    %c0_44 = arith.constant 0 : index
    %34 = vector.load %arg1[%c0_41, %c1_42, %c1_43, %c0_44] : memref<1x18x18x128xbf16, #tpu.memory_space<vmem>>, vector<1x16x16x128xbf16>
    %35 = vector.shape_cast %34 : vector<1x16x16x128xbf16> to vector<16x16x128xbf16>
    %36 = vector.shape_cast %35 : vector<16x16x128xbf16> to vector<256x128xbf16>
    %c4 = arith.constant 4 : index
    %c0_45 = arith.constant 0 : index
    %c0_46 = arith.constant 0 : index
    %37 = vector.load %arg2[%c4, %c0_45, %c0_46] : memref<9x128x128xbf16, #tpu.memory_space<vmem>>, vector<1x128x128xbf16>
    %38 = vector.shape_cast %37 : vector<1x128x128xbf16> to vector<128x128xbf16>
    %cst_47 = arith.constant dense<0.000000e+00> : vector<256x128xf32>
    %39 = tpu.matmul %36, %38, %cst_47 {dimension_numbers = #tpu.dot_dimension_numbers<[1], [0], [0], [1], [0, 0, 1, 1], [], []>} : vector<256x128xbf16>, vector<128x128xbf16>, vector<256x128xf32> -> vector<256x128xf32>
    %c0_48 = arith.constant 0 : index
    %c0_49 = arith.constant 0 : index
    %40 = vector.load %arg4[%c0_48, %c0_49] : memref<256x128xf32, #tpu.memory_space<vmem>>, vector<256x128xf32>
    %41 = arith.addf %40, %39 : vector<256x128xf32>
    %c0_50 = arith.constant 0 : index
    %c0_51 = arith.constant 0 : index
    %42 = vector.load %arg4[%c0_50, %c0_51] : memref<256x128xf32, #tpu.memory_space<vmem>>, vector<256x128xf32>
    tpu.vector_store %arg4[%c0_50, %c0_51], %41 {strides = array<i32>} : memref<256x128xf32, #tpu.memory_space<vmem>>, vector<256x128xf32>,
    %c0_52 = arith.constant 0 : index
    %c1_53 = arith.constant 1 : index
    %c2_54 = arith.constant 2 : index
    %c0_55 = arith.constant 0 : index
    %43 = vector.load %arg1[%c0_52, %c1_53, %c2_54, %c0_55] : memref<1x18x18x128xbf16, #tpu.memory_space<vmem>>, vector<1x16x16x128xbf16>
    %44 = vector.shape_cast %43 : vector<1x16x16x128xbf16> to vector<16x16x128xbf16>
    %45 = vector.shape_cast %44 : vector<16x16x128xbf16> to vector<256x128xbf16>
    %c5 = arith.constant 5 : index
    %c0_56 = arith.constant 0 : index
    %c0_57 = arith.constant 0 : index
    %46 = vector.load %arg2[%c5, %c0_56, %c0_57] : memref<9x128x128xbf16, #tpu.memory_space<vmem>>, vector<1x128x128xbf16>
    %47 = vector.shape_cast %46 : vector<1x128x128xbf16> to vector<128x128xbf16>
    %cst_58 = arith.constant dense<0.000000e+00> : vector<256x128xf32>
    %48 = tpu.matmul %45, %47, %cst_58 {dimension_numbers = #tpu.dot_dimension_numbers<[1], [0], [0], [1], [0, 0, 1, 1], [], []>} : vector<256x128xbf16>, vector<128x128xbf16>, vector<256x128xf32> -> vector<256x128xf32>
    %c0_59 = arith.constant 0 : index
    %c0_60 = arith.constant 0 : index
    %49 = vector.load %arg4[%c0_59, %c0_60] : memref<256x128xf32, #tpu.memory_space<vmem>>, vector<256x128xf32>
    %50 = arith.addf %49, %48 : vector<256x128xf32>
    %c0_61 = arith.constant 0 : index
    %c0_62 = arith.constant 0 : index
    %51 = vector.load %arg4[%c0_61, %c0_62] : memref<256x128xf32, #tpu.memory_space<vmem>>, vector<256x128xf32>
    tpu.vector_store %arg4[%c0_61, %c0_62], %50 {strides = array<i32>} : memref<256x128xf32, #tpu.memory_space<vmem>>, vector<256x128xf32>,
    %c0_63 = arith.constant 0 : index
    %c2_64 = arith.constant 2 : index
    %c0_65 = arith.constant 0 : index
    %c0_66 = arith.constant 0 : index
    %52 = vector.load %arg1[%c0_63, %c2_64, %c0_65, %c0_66] : memref<1x18x18x128xbf16, #tpu.memory_space<vmem>>, vector<1x16x16x128xbf16>
    %53 = vector.shape_cast %52 : vector<1x16x16x128xbf16> to vector<16x16x128xbf16>
    %54 = vector.shape_cast %53 : vector<16x16x128xbf16> to vector<256x128xbf16>
    %c6 = arith.constant 6 : index
    %c0_67 = arith.constant 0 : index
    %c0_68 = arith.constant 0 : index
    %55 = vector.load %arg2[%c6, %c0_67, %c0_68] : memref<9x128x128xbf16, #tpu.memory_space<vmem>>, vector<1x128x128xbf16>
    %56 = vector.shape_cast %55 : vector<1x128x128xbf16> to vector<128x128xbf16>
    %cst_69 = arith.constant dense<0.000000e+00> : vector<256x128xf32>
    %57 = tpu.matmul %54, %56, %cst_69 {dimension_numbers = #tpu.dot_dimension_numbers<[1], [0], [0], [1], [0, 0, 1, 1], [], []>} : vector<256x128xbf16>, vector<128x128xbf16>, vector<256x128xf32> -> vector<256x128xf32>
    %c0_70 = arith.constant 0 : index
    %c0_71 = arith.constant 0 : index
    %58 = vector.load %arg4[%c0_70, %c0_71] : memref<256x128xf32, #tpu.memory_space<vmem>>, vector<256x128xf32>
    %59 = arith.addf %58, %57 : vector<256x128xf32>
    %c0_72 = arith.constant 0 : index
    %c0_73 = arith.constant 0 : index
    %60 = vector.load %arg4[%c0_72, %c0_73] : memref<256x128xf32, #tpu.memory_space<vmem>>, vector<256x128xf32>
    tpu.vector_store %arg4[%c0_72, %c0_73], %59 {strides = array<i32>} : memref<256x128xf32, #tpu.memory_space<vmem>>, vector<256x128xf32>,
    %c0_74 = arith.constant 0 : index
    %c2_75 = arith.constant 2 : index
    %c1_76 = arith.constant 1 : index
    %c0_77 = arith.constant 0 : index
    %61 = vector.load %arg1[%c0_74, %c2_75, %c1_76, %c0_77] : memref<1x18x18x128xbf16, #tpu.memory_space<vmem>>, vector<1x16x16x128xbf16>
    %62 = vector.shape_cast %61 : vector<1x16x16x128xbf16> to vector<16x16x128xbf16>
    %63 = vector.shape_cast %62 : vector<16x16x128xbf16> to vector<256x128xbf16>
    %c7 = arith.constant 7 : index
    %c0_78 = arith.constant 0 : index
    %c0_79 = arith.constant 0 : index
    %64 = vector.load %arg2[%c7, %c0_78, %c0_79] : memref<9x128x128xbf16, #tpu.memory_space<vmem>>, vector<1x128x128xbf16>
    %65 = vector.shape_cast %64 : vector<1x128x128xbf16> to vector<128x128xbf16>
    %cst_80 = arith.constant dense<0.000000e+00> : vector<256x128xf32>
    %66 = tpu.matmul %63, %65, %cst_80 {dimension_numbers = #tpu.dot_dimension_numbers<[1], [0], [0], [1], [0, 0, 1, 1], [], []>} : vector<256x128xbf16>, vector<128x128xbf16>, vector<256x128xf32> -> vector<256x128xf32>
    %c0_81 = arith.constant 0 : index
    %c0_82 = arith.constant 0 : index
    %67 = vector.load %arg4[%c0_81, %c0_82] : memref<256x128xf32, #tpu.memory_space<vmem>>, vector<256x128xf32>
    %68 = arith.addf %67, %66 : vector<256x128xf32>
    %c0_83 = arith.constant 0 : index
    %c0_84 = arith.constant 0 : index
    %69 = vector.load %arg4[%c0_83, %c0_84] : memref<256x128xf32, #tpu.memory_space<vmem>>, vector<256x128xf32>
    tpu.vector_store %arg4[%c0_83, %c0_84], %68 {strides = array<i32>} : memref<256x128xf32, #tpu.memory_space<vmem>>, vector<256x128xf32>,
    %c0_85 = arith.constant 0 : index
    %c2_86 = arith.constant 2 : index
    %c2_87 = arith.constant 2 : index
    %c0_88 = arith.constant 0 : index
    %70 = vector.load %arg1[%c0_85, %c2_86, %c2_87, %c0_88] : memref<1x18x18x128xbf16, #tpu.memory_space<vmem>>, vector<1x16x16x128xbf16>
    %71 = vector.shape_cast %70 : vector<1x16x16x128xbf16> to vector<16x16x128xbf16>
    %72 = vector.shape_cast %71 : vector<16x16x128xbf16> to vector<256x128xbf16>
    %c8 = arith.constant 8 : index
    %c0_89 = arith.constant 0 : index
    %c0_90 = arith.constant 0 : index
    %73 = vector.load %arg2[%c8, %c0_89, %c0_90] : memref<9x128x128xbf16, #tpu.memory_space<vmem>>, vector<1x128x128xbf16>
    %74 = vector.shape_cast %73 : vector<1x128x128xbf16> to vector<128x128xbf16>
    %cst_91 = arith.constant dense<0.000000e+00> : vector<256x128xf32>
    %75 = tpu.matmul %72, %74, %cst_91 {dimension_numbers = #tpu.dot_dimension_numbers<[1], [0], [0], [1], [0, 0, 1, 1], [], []>} : vector<256x128xbf16>, vector<128x128xbf16>, vector<256x128xf32> -> vector<256x128xf32>
    %c0_92 = arith.constant 0 : index
    %c0_93 = arith.constant 0 : index
    %76 = vector.load %arg4[%c0_92, %c0_93] : memref<256x128xf32, #tpu.memory_space<vmem>>, vector<256x128xf32>
    %77 = arith.addf %76, %75 : vector<256x128xf32>
    %c0_94 = arith.constant 0 : index
    %c0_95 = arith.constant 0 : index
    %78 = vector.load %arg4[%c0_94, %c0_95] : memref<256x128xf32, #tpu.memory_space<vmem>>, vector<256x128xf32>
    tpu.vector_store %arg4[%c0_94, %c0_95], %77 {strides = array<i32>} : memref<256x128xf32, #tpu.memory_space<vmem>>, vector<256x128xf32>,
    %c0_96 = arith.constant 0 : index
    %c0_97 = arith.constant 0 : index
    %79 = vector.load %arg4[%c0_96, %c0_97] : memref<256x128xf32, #tpu.memory_space<vmem>>, vector<256x128xf32>
    %cst_98 = arith.constant dense<0.000000e+00> : vector<128xf32>
    %80 = vector.multi_reduction <add>, %79, %cst_98 [0] : vector<256x128xf32> to vector<128xf32>
    %81 = vector.shape_cast %80 : vector<128xf32> to vector<1x128xf32>
    %82 = arith.mulf %79, %79 : vector<256x128xf32>
    %cst_99 = arith.constant dense<0.000000e+00> : vector<128xf32>
    %83 = vector.multi_reduction <add>, %82, %cst_99 [0] : vector<256x128xf32> to vector<128xf32>
    %84 = vector.shape_cast %83 : vector<128xf32> to vector<1x128xf32>
    %85 = tpu.concatenate %81, %84 in 0 : vector<1x128xf32>, vector<1x128xf32> -> vector<2x128xf32>
    %c0_100 = arith.constant 0 : index
    %c0_101 = arith.constant 0 : index
    %c0_102 = arith.constant 0 : index
    %86 = vector.load %arg3[%c0_100, %c0_101, %c0_102] : memref<1x2x128xf32, #tpu.memory_space<vmem>>, vector<1x2x128xf32>
    %87 = vector.shape_cast %86 : vector<1x2x128xf32> to vector<2x128xf32>
    %88 = vector.shape_cast %85 : vector<2x128xf32> to vector<1x2x128xf32>
    tpu.vector_store %arg3[%c0_100, %c0_101, %c0_102], %88 {strides = array<i32>} : memref<1x2x128xf32, #tpu.memory_space<vmem>>, vector<1x2x128xf32>,
    return
  }
  func.func @transform_0(%arg0: i32) -> (i32, i32, i32, i32) {
    %c0_i32 = arith.constant 0 : i32
    %c0_i32_0 = arith.constant 0 : i32
    %c0_i32_1 = arith.constant 0 : i32
    %c0_i32_2 = arith.constant 0 : i32
    return %arg0, %c0_i32, %c0_i32_0, %c0_i32_1 : i32, i32, i32, i32
  }
  func.func @transform_1(%arg0: i32) -> (i32, i32, i32) {
    %c0_i32 = arith.constant 0 : i32
    %c0_i32_0 = arith.constant 0 : i32
    %c0_i32_1 = arith.constant 0 : i32
    %c0_i32_2 = arith.constant 0 : i32
    return %c0_i32, %c0_i32_0, %c0_i32_1 : i32, i32, i32
  }
  func.func @transform_2(%arg0: i32) -> (i32, i32, i32) {
    %c0_i32 = arith.constant 0 : i32
    %c0_i32_0 = arith.constant 0 : i32
    %c0_i32_1 = arith.constant 0 : i32
    return %arg0, %c0_i32, %c0_i32_0 : i32, i32, i32
  }
}

</mosaic_0001>

<bundles_post_ra>
// kernel: tpu_custom_call.1
= control target key start
LH: loop header
LB: loop body
LE: loop exit
PB: predicated region body
PF: predicated region fallthrough
CT: control target
= control target key end

     0   :  { %7 = vsyncpa [#allocation4], 0  ;;  %s8896_s0 = inlined_call_operand.vmem [shape: bf16[2,18,18,128], index: 0, kind: input, shape index: {}]   ;;  %s8897_s1 = inlined_call_operand.vmem [shape: bf16[9,128,128], index: 1, kind: input, shape index: {}]   ;;  %s8898_s2 = inlined_call_operand.hbm [shape: f32[2,2,128], index: 2, kind: output, shape index: {}]  }
   0x1   :  { %9 = vsyncpa [#allocation4 + $0x1], 0  ;;  %s7712_s9 = smov 0   ;;  %s7714_s10 = smov 0  }
   0x2   :  { %s7716_s11 = smov 0   ;;  %s7718_s12 = smov 0  }
   0x3 LB: > { %s7733_s13 = sadd.s32 4294967295, %s7694_s12   ;;  %s5886_s14 = sadd.s32 4294967294, %s7694_s12   ;;  %s7694_s12 = sphi %s7718_s12, %s8908_s12   ;;  %s7690_s11 = sphi %s7716_s11, %s8907_s11   ;;  %s7686_s10 = sphi %s7714_s10, %s8906_s10   ;;  %s7682_s9 = sphi %s7712_s9, %s8905_s9  }
   0x4   : > { %s7737_s15 = sadd.s32 1, %s7694_s12   ;;  %s69_s16 = sadd.s32 1, %s7690_s11 }
   0x5   : > { %s66_s17 = ssub.s32 %s7694_s12, %s7737_s15  ;;  %p79_p0 = scmp.ne.s32.totalorder %s7690_s11, %s7686_s10 }
   0x6   : > { %p67_p1 = scmp.eq.s32.totalorder %s66_s17, 0  ;;  %p80_p2 = scmp.eq.s32.totalorder %s7733_s13, 1 }
   0x7   : > { %p85_p3 = scmp.ne.s32.totalorder %s7686_s10, %s7682_s9  ;;  %p86_p4 = scmp.eq.s32.totalorder %s5886_s14, 1 }
   0x8   : > { %s7748_s18 = scalar_select %p67_p1, %s7690_s11, %s69_s16  }
   0x9   : > { %p7750_p5 = por %p80_p2, %p79_p0  ;;  %p7754_p6 = por %p86_p4, %p85_p3 }
   0xa   : > { %p5889_p7 = scmp.ge.s32.totalorder %s7694_s12, 1  ;;  %p115_p8 = scmp.lt.s32.totalorder %s7694_s12, 3 }
   0xc   : > { %p116_p9 = pnand %p5889_p7, %p115_p8 }
   0xd   : > { %v7504_v0 = vld [vmem:[%s8897_s1] sm:$0xff] (!%p116_p9)   ;;  %v7506_v2 = vld [vmem:[%s8897_s1 + $0x8] sm:$0xff] (!%p116_p9)   ;;  %p137_p10 = scmp.lt.s32.totalorder (!%p116_p9), %s7733_s13, 1  ;;  %v7508_v4 = vld [vmem:[%s8897_s1 + $0x10] sm:$0xff] (!%p116_p9)   ;;  %vm576_vm0 = vsmask.f32 (!%p116_p9), 3328 }
   0xe   : > { %119 = sbr.rel (%p116_p9) target bundleno = 593 (0x251), region = 28  ;;  %v7505_v1 = vld [vmem:[%s8897_s1 + $0x100] sm:$0xff] (!%p116_p9)   ;;  %6760 = vmatprep.subr.bf16.mxu1 (!%p116_p9), %v7504_v0  ;;  %v7507_v3 = vld [vmem:[%s8897_s1 + $0x108] sm:$0xff] (!%p116_p9)   ;;  %v7509_v5 = vld [vmem:[%s8897_s1 + $0x110] sm:$0xff] (!%p116_p9)   ;;  %vm577_vm1 = vsmask.f32 (!%p116_p9), 7440 }
   0xf   : > { %6952 = vmatprep.subr.bf16.mxu0 (!%p116_p9), %v7505_v1  ;;  %6761 = vmatpush3.bf16.msra.mxu1 (!%p116_p9), %v7504_v0  ;;  %v7510_v6 = vld [vmem:[%s8897_s1 + $0x18] sm:$0xff] (!%p116_p9)   ;;  %v7512_v8 = vld [vmem:[%s8897_s1 + $0x20] sm:$0xff] (!%p116_p9)   ;;  %v7514_v10 = vld [vmem:[%s8897_s1 + $0x28] sm:$0xff] (!%p116_p9)   ;;  %vm1445_vm3 = vcmask (!%p116_p9), 1042432   ;;  %vm1446_vm4 = vcmask (!%p116_p9), 1046532   ;;  %s6541_s23 = sshll.u32 (!%p116_p9), %s7733_s13, 5 }
  0x10   : > { %6953 = vmatpush3.bf16.msra.mxu0 (!%p116_p9), %v7505_v1  ;;  %6762 = vmatprep.subr.bf16.mxu1 (!%p116_p9), %v7506_v2  ;;  %v7511_v7 = vld [vmem:[%s8897_s1 + $0x118] sm:$0xff] (!%p116_p9)   ;;  %v7513_v9 = vld [vmem:[%s8897_s1 + $0x120] sm:$0xff] (!%p116_p9)   ;;  %v7515_v11 = vld [vmem:[%s8897_s1 + $0x128] sm:$0xff] (!%p116_p9)   ;;  %vm5810_vm6 = vcmask (!%p116_p9), 1040384   ;;  %s8854_s29 = scalar_lea.hbm (!%p116_p9), %s8898_s2, %s6541_s23 }
  0x11   : > { %6954 = vmatprep.subr.bf16.mxu0 (!%p116_p9), %v7507_v3  ;;  %v7516_v18 = vld [vmem:[%s8897_s1 + $0x30] sm:$0xff] (!%p116_p9)   ;;  %v7518_v32 = vld [vmem:[%s8897_s1 + $0x38] sm:$0xff] (!%p116_p9)   ;;  %vm7821_vm2 = vmor (!%p116_p9), %vm576_vm0, %vm577_vm1 }
  0x12   : > { %v7517_v24 = vld [vmem:[%s8897_s1 + $0x130] sm:$0xff] (!%p116_p9)   ;;  %v7519_v38 = vld [vmem:[%s8897_s1 + $0x138] sm:$0xff] (!%p116_p9)   ;;  %v7522_v47 = vld [vmem:[%s8897_s1 + $0x40] sm:$0xff] (!%p116_p9)  }
  0x13   : > { %6763 = vmatpush3.bf16.msra.mxu1 (!%p116_p9), %v7506_v2  ;;  %v7523_v52 = vld [vmem:[%s8897_s1 + $0x140] sm:$0xff] (!%p116_p9)   ;;  %vm7921_vm5 = vmor (!%p116_p9), %vm1445_vm3, %vm1446_vm4 }
  0x14   : > { %6955 = vmatpush3.bf16.msra.mxu0 (!%p116_p9), %v7507_v3  ;;  %6764 = vmatprep.subr.bf16.mxu1 (!%p116_p9), %v7508_v4 }
  0x15   : > { %s138_s5 = scalar_select %p137_p10, %s7733_s13, 1  ;;  %6956 = vmatprep.subr.bf16.mxu0 %v7509_v5 }
  0x16   : > { %s7696_s13 = smov [#allocation3]  }
  0x17   : > { %s7464_s16 = smul.u32 216, %s138_s5  ;;  %6765 = vmatpush3.bf16.msra.mxu1 %v7508_v4  ;;  %s7636_s4 = sshll.u32 %s7696_s13, 4  ;;  %s7637_s4 = int_to_ptr.vmem [resolvable:$false] %s7636_s4 }
  0x18   : > { %6957 = vmatpush3.bf16.msra.mxu0 %v7509_v5  ;;  %6766 = vmatprep.subr.bf16.mxu1 %v7510_v6  ;;  %s7638_s5 = scalar_lea.vmem %s7637_s4, 64 }
  0x19   : > { %6958 = vmatprep.subr.bf16.mxu0 %v7511_v7  ;;  %s7798_s28 = scalar_lea.vmem %s8896_s0, %s7464_s16 }
  0x1a   : > { %v7520_v12 = vld [vmem:[%s7798_s28] sm:$0xff]   ;;  %v6084_v13 = vld [vmem:[%s7798_s28 + $0xc] sm:$0xf]  ;;  %v6085_v14 = vld [vmem:[%s7798_s28 + $0x10] sm:$0xf] }
  0x1b   : > { %6767 = vmatpush3.bf16.msra.mxu1 %v7510_v6  ;;  %6776 = vmatprep.mubr.bf16.mxu1 %v7520_v12  ;;  %v6086_v15 = vld [vmem:[%s7798_s28 + $0x14] sm:$0x1]  ;;  %v2446_v16 = vshrl.u32 %v6084_v13, 16  ;;  %v2449_v17 = vshll.u32 %v6084_v13, 16  ;;  %v2455_v19 = vshll.u32 %v6085_v14, 16  ;;  %v2459_v20 = vshrl.u32 %v6085_v14, 16 }
  0x1c   : > { %6959 = vmatpush3.bf16.msra.mxu0 %v7511_v7  ;;  %6768 = vmatprep.subr.bf16.mxu1 %v7512_v8  ;;  %v2465_v21 = vshll.u32 %v6086_v15, 16  ;;  %v6087_v29 = vld [vmem:[%s7798_s28 + $0x18] sm:$0xf]  ;;  %v6088_v30 = vld [vmem:[%s7798_s28 + $0x1c] sm:$0xf]  ;;  %v7521_v55 = vld [vmem:[%s7798_s28 + $0xc] sm:$0xff]  }
  0x1d   : > { %6960 = vmatprep.subr.bf16.mxu0 %v7513_v9  ;;  %v2448_v22 = vrot.slane %v2446_v16, 4  ;;  %v2451_v23 = vrot.slane %v2449_v17, 5  ;;  %v2457_v25 = vrot.slane %v2455_v19, 5  ;;  %v2461_v26 = vrot.slane %v2459_v20, 4  ;;  %v6089_v31 = vld [vmem:[%s7798_s28 + $0x20] sm:$0x1] }
  0x1e   : > { %v2467_v27 = vrot.slane %v2465_v21, 5  ;;  %v2470_v35 = vshrl.u32 %v6087_v29, 16  ;;  %v2473_v36 = vshll.u32 %v6087_v29, 16  ;;  %v2479_v37 = vshll.u32 %v6088_v30, 16  ;;  %v6090_v53 = vld [vmem:[%s7798_s28 + $0x24] sm:$0xf] }
  0x1f   : > { %6769 = vmatpush3.bf16.msra.mxu1 %v7512_v8  ;;  %v2452_v28 = vor.u32 %v2451_v23, %v2448_v22  ;;  %v2462_v34 = vor.u32 %v2461_v26, %v2457_v25  ;;  %v2483_v40 = vshrl.u32 %v6088_v30, 16  ;;  %v2489_v41 = vshll.u32 %v6089_v31, 16  ;;  %v6091_v57 = vld [vmem:[%s7798_s28 + $0x28] sm:$0xf]  ;;  %v6092_v58 = vld [vmem:[%s7798_s28 + $0x2c] sm:$0x1] }
  0x20   : > { %6961 = vmatpush3.bf16.msra.mxu0 %v7513_v9  ;;  %6770 = vmatprep.subr.bf16.mxu1 %v7514_v10  ;;  %v2472_v43 = vrot.slane %v2470_v35, 4  ;;  %v2475_v44 = vrot.slane %v2473_v36, 5  ;;  %v2481_v45 = vrot.slane %v2479_v37, 5  ;;  %v2494_v59 = vshrl.u32 %v6090_v53, 16  ;;  %v7525_v2 = vld [vmem:[%s7798_s28 + $0x18] sm:$0xff]   ;;  %v7524_v6 = vld [vmem:[%s8897_s1 + $0x148] sm:$0xff]  }
  0x21   : > { %6962 = vmatprep.subr.bf16.mxu0 %v7515_v11  ;;  %v2453_v39 = vrot.slane %v2452_v28, 4  ;;  %v2463_v42 = vrot.slane %v2462_v34, 4  ;;  %v2485_v48 = vrot.slane %v2483_v40, 4  ;;  %v2491_v51 = vrot.slane %v2489_v41, 5  ;;  %v6093_v13 = vld [vmem:[%s7798_s28 + $0x30] sm:$0xf] }
  0x22   : > { %v2476_v50 = vor.u32 %v2475_v44, %v2472_v43  ;;  %v2497_v60 = vshll.u32 %v6090_v53, 16  ;;  %v2503_v62 = vshll.u32 %v6091_v57, 16  ;;  %v2507_v63 = vshrl.u32 %v6091_v57, 16  ;;  %v6094_v14 = vld [vmem:[%s7798_s28 + $0x34] sm:$0xf]  ;;  %v7526_v28 = vld [vmem:[%s7798_s28 + $0x24] sm:$0xff]  }
  0x23   : > { %6771 = vmatpush3.bf16.msra.mxu1 %v7514_v10  ;;  %v2458_v46 = vsel %vm7821_vm2, %v2453_v39, %v2457_v25  ;;  %v2468_v49 = vsel %vm7821_vm2, %v2463_v42, %v2467_v27  ;;  %v2486_v56 = vor.u32 %v2485_v48, %v2481_v45  ;;  %v2513_v0 = vshll.u32 %v6092_v58, 16  ;;  %v7527_v10 = vld [vmem:[%s8897_s1 + $0x48] sm:$0xff]   ;;  %v6095_v17 = vld [vmem:[%s7798_s28 + $0x38] sm:$0x1]  ;;  %v7528_v31 = vld [vmem:[%s8897_s1 + $0x150] sm:$0xff]  }
  0x24   : > { %6963 = vmatpush3.bf16.msra.mxu0 %v7515_v11  ;;  %6772 = vmatprep.subr.bf16.mxu1 %v7516_v18  ;;  %v6148_v54 = vcombine.low %v2458_v46, %v2468_v49  ;;  %v2477_v61 = vrot.slane %v2476_v50, 4  ;;  %v2496_v3 = vrot.slane %v2494_v59, 4  ;;  %v2499_v4 = vrot.slane %v2497_v60, 5  ;;  %v7530_v36 = vld [vmem:[%s7798_s28 + $0x30] sm:$0xff]   ;;  %v6096_v39 = vld [vmem:[%s7798_s28 + $0x3c] sm:$0xf] }
  0x25   : > { %6964 = vmatprep.subr.bf16.mxu0 %v7517_v24  ;;  %v2487_v1 = vrot.slane %v2486_v56, 4  ;;  %v2505_v7 = vrot.slane %v2503_v62, 5  ;;  %v2509_v8 = vrot.slane %v2507_v63, 4  ;;  %v2515_v9 = vrot.slane %v2513_v0, 5  ;;  %v6097_v40 = vld [vmem:[%s7798_s28 + $0x40] sm:$0xf] }
  0x26   : > { %6968 = vmatprep.mubr.bf16.mxu0 %v6148_v54  ;;  %v2482_v5 = vsel %vm7821_vm2, %v2477_v61, %v2481_v45  ;;  %v2500_v12 = vor.u32 %v2499_v4, %v2496_v3  ;;  %v2521_v19 = vshll.u32 %v6093_v13, 16  ;;  %v2527_v21 = vshll.u32 %v6094_v14, 16  ;;  %v6098_v41 = vld [vmem:[%s7798_s28 + $0x44] sm:$0x1]  ;;  %v7532_v54 = vld [vmem:[%s8897_s1 + $0x50] sm:$0xff]  }
  0x27   : > { %6773 = vmatpush3.bf16.msra.mxu1 %v7516_v18  ;;  %v2492_v11 = vsel %vm7821_vm2, %v2487_v1, %v2491_v51  ;;  %v2510_v16 = vor.u32 %v2509_v8, %v2505_v7  ;;  %v2518_v18 = vshrl.u32 %v6093_v13, 16  ;;  %v2531_v22 = vshrl.u32 %v6094_v14, 16  ;;  %v6099_v58 = vld [vmem:[%s7798_s28 + $0x48] sm:$0xf]  ;;  %v6100_v61 = vld [vmem:[%s7798_s28 + $0x4c] sm:$0xf] }
  0x28   : > { %6965 = vmatpush3.bf16.msra.mxu0 %v7517_v24  ;;  %6774 = vmatprep.subr.bf16.mxu1 %v7518_v32  ;;  %v6149_v15 = vcombine.low %v2482_v5, %v2492_v11  ;;  %v2501_v20 = vrot.slane %v2500_v12, 4  ;;  %v2537_v23 = vshll.u32 %v6095_v17, 16  ;;  %v2523_v26 = vrot.slane %v2521_v19, 5  ;;  %v6101_v62 = vld [vmem:[%s7798_s28 + $0x50] sm:$0x1]  ;;  %v7533_v8 = vld [vmem:[%s8897_s1 + $0x160] sm:$0xff]  }
  0x29   : > { %6966 = vmatprep.subr.bf16.mxu0 %v7519_v38  ;;  %v2511_v24 = vrot.slane %v2510_v16, 4  ;;  %v2520_v25 = vrot.slane %v2518_v18, 4  ;;  %v2529_v29 = vrot.slane %v2527_v21, 5  ;;  %v2533_v30 = vrot.slane %v2531_v22, 4  ;;  %v7535_v18 = vld [vmem:[%s7798_s28 + $0x48] sm:$0xff]  }
  0x2a   : > { %v2506_v27 = vsel %vm7821_vm2, %v2501_v20, %v2505_v7  ;;  %v2539_v35 = vrot.slane %v2537_v23, 5  ;;  %v2542_v43 = vshrl.u32 %v6096_v39, 16  ;;  %v2545_v44 = vshll.u32 %v6096_v39, 16  ;;  %v6102_v19 = vld [vmem:[%s7798_s28 + $0x54] sm:$0xf]  ;;  %v7534_v23 = vld [vmem:[%s8897_s1 + $0x168] sm:$0xff]  }
  0x2b   : > { %6775 = vmatpush3.bf16.msra.mxu1 %v7518_v32  ;;  %v2516_v32 = vsel %vm7821_vm2, %v2511_v24, %v2515_v9  ;;  %v2524_v34 = vor.u32 %v2523_v26, %v2520_v25  ;;  %v2551_v45 = vshll.u32 %v6097_v40, 16  ;;  %v2555_v48 = vshrl.u32 %v6097_v40, 16  ;;  %v6103_v20 = vld [vmem:[%s7798_s28 + $0x58] sm:$0xf]  ;;  %v6104_v24 = vld [vmem:[%s7798_s28 + $0x5c] sm:$0x1] }
  0x2c   : > { %6967 = vmatpush3.bf16.msra.mxu0 %v7519_v38  ;;  %6808 = vmatprep.subr.bf16.mxu1 %v7522_v47  ;;  %v6150_v37 = vcombine.low %v2506_v27, %v2516_v32  ;;  %v2534_v38 = vor.u32 %v2533_v30, %v2529_v29  ;;  %v2561_v49 = vshll.u32 %v6098_v41, 16  ;;  %v2544_v51 = vrot.slane %v2542_v43, 4  ;;  %v7536_v39 = vld [vmem:[%s7798_s28 + $0x54] sm:$0xff]   ;;  %v6105_v43 = vld [vmem:[%s7798_s28 + $0x60] sm:$0xf] }
  0x2d   : > { %7000 = vmatprep.subr.bf16.mxu0 %v7523_v52  ;;  %v2525_v42 = vrot.slane %v2524_v34, 4  ;;  %v2553_v53 = vrot.slane %v2551_v45, 5  ;;  %v2557_v56 = vrot.slane %v2555_v48, 4  ;;  %v2566_v63 = vshrl.u32 %v6099_v58, 16  ;;  %v7537_v40 = vld [vmem:[%s8897_s1 + $0x58] sm:$0xff]  }
  0x2e   : > { %6777 = vmatmul.mubr.bf16.vlgmr.msra.gmra.mrb[0].mxu1 %v7521_v55  ;;  %v2535_v46 = vrot.slane %v2534_v38, 4  ;;  %v2563_v57 = vrot.slane %v2561_v49, 5  ;;  %v2569_v0 = vshll.u32 %v6099_v58, 16  ;;  %v2579_v3 = vshrl.u32 %v6100_v61, 16  ;;  %v6107_v45 = vld [vmem:[%s7798_s28 + $0x68] sm:$0x1] }
  0x2f   : > { %6969 = vmatmul.mubr.bf16.vlgmr.msra.gmra.mrb[0].mxu0 %v6149_v15  ;;  %6809 = vmatpush3.bf16.msra.mxu1 %v7522_v47  ;;  %v7529_v47 = vld [vmem:[%s8897_s1 + $0x158] sm:$0xff]   ;;  %v2530_v50 = vsel %vm7821_vm2, %v2525_v42, %v2529_v29  ;;  %v2558_v1 = vor.u32 %v2557_v56, %v2553_v53  ;;  %v2585_v4 = vshll.u32 %v6101_v62, 16  ;;  %v2590_v25 = vshrl.u32 %v6102_v19, 16 }
  0x30   : > { %7001 = vmatpush3.bf16.msra.mxu0 %v7523_v52  ;;  %6780 = vmatprep.mubr.bf16.mxu1 %v7525_v2  ;;  %v2547_v52 = vrot.slane %v2545_v44, 5  ;;  %v2540_v55 = vsel %vm7821_vm2, %v2535_v46, %v2539_v35  ;;  %v2575_v2 = vshll.u32 %v6100_v61, 16  ;;  %v2571_v7 = vrot.slane %v2569_v0, 5  ;;  %v6106_v44 = vld [vmem:[%s7798_s28 + $0x64] sm:$0xf] }
  0x31   : > { %7002 = vmatprep.subr.bf16.mxu0 %v7524_v6  ;;  %6810 = vmatprep.subr.bf16.mxu1 %v7527_v10  ;;  %v6151_v59 = vcombine.low %v2530_v50, %v2540_v55  ;;  %v2559_v9 = vrot.slane %v2558_v1, 4  ;;  %v2581_v12 = vrot.slane %v2579_v3, 4  ;;  %v2587_v17 = vrot.slane %v2585_v4, 5  ;;  %v7538_v50 = vld [vmem:[%s8897_s1 + $0x170] sm:$0xff]   ;;  %v6172_v0 = vld [vmem:[%s7798_s28 + $0xc] sm:$0xe] }
  0x32   : > { %6972 = vmatprep.mubr.bf16.mxu0 %v6150_v37  ;;  %v2548_v60 = vor.u32 %v2547_v52, %v2544_v51  ;;  %v2577_v11 = vrot.slane %v2575_v2, 5  ;;  %v2593_v26 = vshll.u32 %v6102_v19, 16  ;;  %v2603_v29 = vshrl.u32 %v6103_v20, 16 }
  0x33   : > { %6811 = vmatpush3.bf16.msra.mxu1 %v7527_v10  ;;  %v7531_v10 = vld [vmem:[%s7798_s28 + $0x3c] sm:$0xff]   ;;  %v2564_v15 = vsel %vm7821_vm2, %v2559_v9, %v2563_v57  ;;  %v2609_v30 = vshll.u32 %v6104_v24, 16  ;;  %v2592_v32 = vrot.slane %v2590_v25, 4  ;;  %v2617_v48 = vshll.u32 %v6105_v43, 16 }
  0x34   : > { %7003 = vmatpush3.bf16.msra.mxu0 %v7524_v6  ;;  %6812 = vmatprep.subr.bf16.mxu1 %v7532_v54  ;;  %v2549_v5 = vrot.slane %v2548_v60, 4  ;;  %v2568_v6 = vrot.slane %v2566_v63, 4  ;;  %v2582_v16 = vor.u32 %v2581_v12, %v2577_v11  ;;  %v2595_v34 = vrot.slane %v2593_v26, 5  ;;  %v7539_v60 = vld [vmem:[%s8897_s1 + $0x178] sm:$0xff]   ;;  %v7540_v63 = vld [vmem:[%s7798_s28 + $0x60] sm:$0xff]  }
  0x35   : > { %7004 = vmatprep.subr.bf16.mxu0 %v7528_v31  ;;  %v2605_v37 = vrot.slane %v2603_v29, 4  ;;  %v2611_v38 = vrot.slane %v2609_v30, 5  ;;  %v2623_v49 = vshll.u32 %v6106_v44, 16  ;;  %v2627_v52 = vshrl.u32 %v6106_v44, 16  ;;  %v6178_v29 = vld [vmem:[%s7798_s28 + $0x24] sm:$0xe] }
  0x36   : > { %6781 = vmatmul.mubr.bf16.gmra.mrb[4].mxu1 %v7526_v28  ;;  %v2554_v13 = vsel %vm7821_vm2, %v2549_v5, %v2553_v53  ;;  %v2572_v14 = vor.u32 %v2571_v7, %v2568_v6  ;;  %v2583_v27 = vrot.slane %v2582_v16, 4  ;;  %v2599_v28 = vshll.u32 %v6103_v20, 16  ;;  %v6173_v5 = vld [vmem:[%s7798_s28 + $0x10] sm:$0xf]  ;;  %v6174_v6 = vld [vmem:[%s7798_s28 + $0x14] sm:$0x1] }
  0x37   : > { %6784 = vmatprep.mubr.bf16.mxu1 %v7530_v36  ;;  %6813 = vmatpush3.bf16.msra.mxu1 %v7532_v54  ;;  %v6152_v21 = vcombine.low %v2554_v13, %v2564_v15  ;;  %v2596_v42 = vor.u32 %v2595_v34, %v2592_v32  ;;  %v2633_v53 = vshll.u32 %v6107_v45, 16  ;;  %v2619_v56 = vrot.slane %v2617_v48, 5  ;;  %v7543_v13 = vld [vmem:[%s8897_s1 + $0x180] sm:$0xff]   ;;  %v6176_v20 = vld [vmem:[%s7798_s28 + $0x1c] sm:$0xf]  ;;  %v7547_v48 = vld [vmem:[%s8897_s1 + $0x188] sm:$0xff]  }
  0x38   : > { %7005 = vmatpush3.bf16.msra.mxu0 %v7528_v31  ;;  %v2573_v22 = vrot.slane %v2572_v14, 4  ;;  %v2588_v35 = vsel %vm7821_vm2, %v2583_v27, %v2587_v17  ;;  %v2601_v36 = vrot.slane %v2599_v28, 5  ;;  %6814 = vmatprep.subr.bf16.mxu1 %v7537_v40  ;;  %v2625_v57 = vrot.slane %v2623_v49, 5  ;;  %v7541_v17 = vld [vmem:[%s7798_s28 + $0x6c] sm:$0xff]   ;;  %v6182_v44 = vld [vmem:[%s7798_s28 + $0x34] sm:$0xf] }
  0x39   : > { %6973 = vmatmul.mubr.bf16.gmra.mrb[4].mxu0 %v6151_v59  ;;  %7006 = vmatprep.subr.bf16.mxu0 %v7529_v47  ;;  %v2597_v51 = vrot.slane %v2596_v42, 4  ;;  %v2629_v59 = vrot.slane %v2627_v52, 4  ;;  %v2635_v3 = vrot.slane %v2633_v53, 5  ;;  %v6220_v7 = vrot.slane %v6172_v0, 9  ;;  %v6180_v32 = vld [vmem:[%s7798_s28 + $0x2c] sm:$0x1] }
  0x3a   : > { %6976 = vmatprep.mubr.bf16.mxu0 %v6152_v21  ;;  %v2578_v31 = vsel %vm7821_vm2, %v2573_v22, %v2577_v11  ;;  %v2606_v46 = vor.u32 %v2605_v37, %v2601_v36  ;;  %v3313_v9 = vrot.slane %v6173_v5, 5  ;;  %v7542_v11 = vld [vmem:[%s8897_s1 + $0x60] sm:$0xff]   ;;  %v3320_v26 = vrot.slane %v6176_v20, 5  ;;  %v6187_v0 = vld [vmem:[%s7798_s28 + $0x48] sm:$0xe] }
  0x3b   : > { %v6153_v41 = vcombine.low %v2578_v31, %v2588_v35  ;;  %6815 = vmatpush3.bf16.msra.mxu1 %v7537_v40  ;;  %v2602_v58 = vsel %vm7821_vm2, %v2597_v51, %v2601_v36  ;;  %v2630_v2 = vor.u32 %v2629_v59, %v2625_v57  ;;  %v6177_v21 = vld [vmem:[%s7798_s28 + $0x20] sm:$0x1]  ;;  %v6179_v31 = vld [vmem:[%s7798_s28 + $0x28] sm:$0xf]  ;;  %v6222_v34 = vrot.slane %v6178_v29, 9  ;;  %v7550_v59 = vld [vmem:[%s8897_s1 + $0x70] sm:$0xff]  }
  0x3c   : > { %7007 = vmatpush3.bf16.msra.mxu0 %v7529_v47  ;;  %v2614_v47 = vshrl.u32 %v6105_v43, 16  ;;  %v2607_v54 = vrot.slane %v2606_v46, 4  ;;  %v3314_v15 = vsel %vm7921_vm5, %v6220_v7, %v3313_v9  ;;  %v3315_v16 = vrot.slane %v3313_v9, 4  ;;  %6816 = vmatprep.subr.bf16.mxu1 %v7542_v11  ;;  %v7545_v42 = vld [vmem:[%s7798_s28 + $0x84] sm:$0xff]   ;;  %v6181_v43 = vld [vmem:[%s7798_s28 + $0x30] sm:$0xe] }
  0x3d   : > { %7008 = vmatprep.subr.bf16.mxu0 %v7533_v8  ;;  %v2631_v12 = vrot.slane %v2630_v2, 4  ;;  %v3323_v27 = vrot.slane %v6177_v21, 5  ;;  %v3322_v30 = vrot.slane %v3320_v26, 4  ;;  %v3327_v36 = vrot.slane %v6179_v31, 5  ;;  %v6183_v46 = vld [vmem:[%s7798_s28 + $0x38] sm:$0x1] }
  0x3e   : > { %6785 = vmatmul.mubr.bf16.gmra.mrb[8].mxu1 %v7531_v10  ;;  %v2616_v55 = vrot.slane %v2614_v47, 4  ;;  %v2612_v61 = vsel %vm7821_vm2, %v2607_v54, %v2611_v38  ;;  %v3316_v10 = vrot.slane %v6174_v6, 5  ;;  %v3330_v37 = vrot.slane %v6180_v32, 5  ;;  %v7548_v54 = vld [vmem:[%s7798_s28 + $0x90] sm:$0xff]   ;;  %v6188_v5 = vld [vmem:[%s7798_s28 + $0x4c] sm:$0xf] }
  0x3f   : > { %6788 = vmatprep.mubr.bf16.mxu1 %v7535_v18  ;;  %v6154_v1 = vcombine.low %v2602_v58, %v2612_v61  ;;  %v6175_v18 = vld [vmem:[%s7798_s28 + $0x18] sm:$0xe]  ;;  %v2636_v19 = vsel %vm7821_vm2, %v2631_v12, %v2635_v3  ;;  %6817 = vmatpush3.bf16.msra.mxu1 %v7542_v11  ;;  %v3324_v38 = vsel %vm7921_vm5, %v3322_v30, %v3323_v27  ;;  %v3334_v47 = vrot.slane %v6182_v44, 5  ;;  %v7549_v3 = vld [vmem:[%s7798_s28 + $0x9c] sm:$0xff]   ;;  %v6189_v6 = vld [vmem:[%s7798_s28 + $0x50] sm:$0x1] }
  0x40   : > { %7009 = vmatpush3.bf16.msra.mxu0 %v7533_v8  ;;  %v2620_v62 = vor.u32 %v2619_v56, %v2616_v55  ;;  %v6221_v22 = vrot.slane %v6175_v18, 9  ;;  %v3317_v25 = vsel %vm7921_vm5, %v3315_v16, %v3316_v10  ;;  %v3328_v40 = vsel %vm7921_vm5, %v6222_v34, %v3327_v36  ;;  %v6184_v55 = vld [vmem:[%s7798_s28 + $0x3c] sm:$0xe]  ;;  %v6185_v56 = vld [vmem:[%s7798_s28 + $0x40] sm:$0xf]  ;;  %v7551_v12 = vld [vmem:[%s8897_s1 + $0x190] sm:$0xff]  }
  0x41   : > { %7010 = vmatprep.subr.bf16.mxu0 %v7534_v23  ;;  %6977 = vmatmul.mubr.bf16.gmra.mrb[8].mxu0 %v6153_v41  ;;  %v6252_v28 = vcombine.low %v3314_v15, %v3317_v25  ;;  %v3329_v41 = vrot.slane %v3327_v36, 4  ;;  %v3337_v51 = vrot.slane %v6183_v46, 5  ;;  %v3336_v53 = vrot.slane %v3334_v47, 4  ;;  %v7552_v15 = vld [vmem:[%s7798_s28 + $0xa8] sm:$0xff]   ;;  %v6190_v16 = vld [vmem:[%s7798_s28 + $0x54] sm:$0xe] }
  0x42   : > { %v2621_v8 = vrot.slane %v2620_v62, 4  ;;  %6980 = vmatprep.mubr.bf16.mxu0 %v6154_v1  ;;  %v3321_v35 = vsel %vm7921_vm5, %v6221_v22, %v3320_v26  ;;  %v6224_v58 = vrot.slane %v6184_v55, 9  ;;  %v6225_v7 = vrot.slane %v6187_v0, 9  ;;  %v6192_v18 = vld [vmem:[%s7798_s28 + $0x5c] sm:$0x1]  ;;  %v7553_v34 = vld [vmem:[%s7798_s28 + $0xb4] sm:$0xff]  }
  0x43   : > { %v6253_v45 = vcombine.low %v3321_v35, %v3324_v38  ;;  %v3331_v49 = vsel %vm7921_vm5, %v3329_v41, %v3330_v37  ;;  %v3351_v11 = vrot.slane %v6189_v6, 5  ;;  %v3358_v21 = vrot.slane %v6192_v18, 5  ;;  %v7554_v26 = vld [vmem:[%s8897_s1 + $0x78] sm:$0xff]   ;;  %v6193_v27 = vld [vmem:[%s7798_s28 + $0x60] sm:$0xe] }
  0x44   : > { %7011 = vmatpush3.bf16.msra.mxu0 %v7534_v23  ;;  %v2626_v14 = vsel %vm7821_vm2, %v2621_v8, %v2625_v57  ;;  %v7544_v23 = vld [vmem:[%s7798_s28 + $0x78] sm:$0xff]   ;;  %v6254_v52 = vcombine.low %v3328_v40, %v3331_v49  ;;  %v6186_v57 = vld [vmem:[%s7798_s28 + $0x44] sm:$0x1]  ;;  %v3348_v8 = vrot.slane %v6188_v5, 5  ;;  %v6195_v29 = vld [vmem:[%s7798_s28 + $0x68] sm:$0x1] }
  0x45   : > { %7012 = vmatprep.subr.bf16.mxu0 %v7538_v50  ;;  %v6155_v24 = vcombine.low %v2626_v14, %v2636_v19  ;;  %v3344_v61 = vrot.slane %v6186_v57, 5  ;;  %v6226_v19 = vrot.slane %v6190_v16, 9  ;;  %v6227_v30 = vrot.slane %v6193_v27, 9  ;;  %v7555_v31 = vld [vmem:[%s8897_s1 + $0x198] sm:$0xff]   ;;  %v529_v40 = vld [vmem:[%s7798_s28 + $0x4] sm:$0xf] }
  0x46   : > { %6789 = vmatmul.mubr.bf16.gmra.mrb[12].mxu1 %v7536_v39  ;;  %v7546_v39 = vld [vmem:[%s8897_s1 + $0x68] sm:$0xff]   ;;  %v3350_v14 = vrot.slane %v3348_v8, 4  ;;  %v3349_v22 = vsel %vm7921_vm5, %v6225_v7, %v3348_v8  ;;  %v3365_v36 = vrot.slane %v6195_v29, 5  ;;  %v593_v49 = vshrl.u32 %v529_v40, 16  ;;  %v532_v5 = vld [vmem:[%s7798_s28 + $0x10] sm:$0xf] }
  0x47   : > { %6792 = vmatprep.mubr.bf16.mxu1 %v7540_v63  ;;  %6818 = vmatprep.subr.bf16.mxu1 %v7546_v39  ;;  %v3338_v63 = vsel %vm7921_vm5, %v3336_v53, %v3337_v51  ;;  %v530_v41 = vld [vmem:[%s7798_s28 + $0x8] sm:$0x1]  ;;  %v6196_v46 = vld [vmem:[%s7798_s28 + $0x6c] sm:$0xe]  ;;  %v6197_v51 = vld [vmem:[%s7798_s28 + $0x70] sm:$0xf] }
  0x48   : > { %7013 = vmatpush3.bf16.msra.mxu0 %v7538_v50  ;;  %v6223_v50 = vrot.slane %v6181_v43, 9  ;;  %6819 = vmatpush3.bf16.msra.mxu1 %v7546_v39  ;;  %v528_v39 = vld [vmem:[%s7798_s28] sm:$0xf]  ;;  %v3369_v57 = vrot.slane %v6197_v51, 5  ;;  %v533_v6 = vld [vmem:[%s7798_s28 + $0x14] sm:$0x1] }
  0x49   : > { %7014 = vmatprep.subr.bf16.mxu0 %v7539_v60  ;;  %6981 = vmatmul.mubr.bf16.gmra.mrb[12].mxu0 %v6155_v24  ;;  %v580_v44 = vshrl.u32 %v528_v39, 16  ;;  %v6201_v29 = vld [vmem:[%s7798_s28 + $0x80] sm:$0x1] }
  0x4a   : > { %7016 = vmatprep.mubr.bf16.mxu0 %v6252_v28  ;;  %v3335_v62 = vsel %vm7921_vm5, %v6223_v50, %v3334_v47  ;;  %6820 = vmatprep.subr.bf16.mxu1 %v7550_v59  ;;  %v6194_v28 = vld [vmem:[%s7798_s28 + $0x64] sm:$0xf]  ;;  %v599_v50 = vshll.u32 %v530_v41, 16  ;;  %v535_v41 = vld [vmem:[%s7798_s28 + $0x1c] sm:$0xf] }
  0x4b   : > { %v6255_v9 = vcombine.low %v3335_v62, %v3338_v63  ;;  %v3362_v35 = vrot.slane %v6194_v28, 5  ;;  %v8022_v47 = vld [vmem:[%s8897_s1 + $0x80] sm:$0xff]   ;;  %v531_v63 = vld [vmem:[%s7798_s28 + $0xc] sm:$0xf]  ;;  %v641_v51 = vshrl.u32 %v535_v41, 16 }
  0x4c   : > { %7015 = vmatpush3.bf16.msra.mxu0 %v7539_v60  ;;  %v3341_v60 = vrot.slane %v6185_v56, 5  ;;  %6821 = vmatpush3.bf16.msra.mxu1 %v7550_v59  ;;  %v6198_v56 = vld [vmem:[%s7798_s28 + $0x74] sm:$0x1]  ;;  %v601_v62 = vrot.slane %v599_v50, 5  ;;  %v604_v8 = vshrl.u32 %v531_v63, 16 }
  0x4d   : > { %7048 = vmatprep.subr.bf16.mxu0 %v7543_v13  ;;  %6822 = vmatprep.subr.bf16.mxu1 %v7554_v26  ;;  %v3364_v43 = vrot.slane %v3362_v35, 4 }
  0x4e   : > { %6793 = vmatmul.mubr.bf16.gmra.mrb[16].mxu1 %v7541_v17  ;;  %v3342_v1 = vsel %vm7921_vm5, %v6224_v58, %v3341_v60  ;;  %v3343_v2 = vrot.slane %v3341_v60, 4  ;;  %v6191_v17 = vld [vmem:[%s7798_s28 + $0x58] sm:$0xf]  ;;  %v7557_v58 = vld [vmem:[%s8897_s1 + $0x1a0] sm:$0xff]   ;;  %v606_v18 = vrot.slane %v604_v8, 4 }
  0x4f   : > { %6796 = vmatprep.mubr.bf16.mxu1 %v7544_v23  ;;  %v3355_v20 = vrot.slane %v6191_v17, 5  ;;  %v3352_v23 = vsel %vm7921_vm5, %v3350_v14, %v3351_v11  ;;  %v3366_v53 = vsel %vm7921_vm5, %v3364_v43, %v3365_v36  ;;  %v7559_v11 = vld [vmem:[%s8897_s1 + $0x1a8] sm:$0xff]   ;;  %v617_v14 = vshrl.u32 %v532_v5, 16  ;;  %v534_v36 = vld [vmem:[%s7798_s28 + $0x18] sm:$0xf] }
  0x50   : > { %v3345_v10 = vsel %vm7921_vm5, %v3343_v2, %v3344_v61  ;;  %v6257_v37 = vcombine.low %v3349_v22, %v3352_v23  ;;  %6823 = vmatpush3.bf16.msra.mxu1 %v7554_v26  ;;  %v595_v61 = vrot.slane %v593_v49, 4  ;;  %v3371_v2 = vrot.slane %v3369_v57, 4  ;;  %v6200_v26 = vld [vmem:[%s7798_s28 + $0x7c] sm:$0xf] }
  0x51   : > { %7017 = vmatmul.mubr.bf16.vlgmr.msra.gmra.mrb[0].mxu0 %v6253_v45  ;;  %v3356_v24 = vsel %vm7921_vm5, %v6226_v19, %v3355_v20  ;;  %v3357_v25 = vrot.slane %v3355_v20, 4  ;;  %v583_v45 = vshll.u32 %v528_v39, 16  ;;  %6856 = vmatprep.subr.bf16.mxu1 %v8022_v47  ;;  %v6199_v20 = vld [vmem:[%s7798_s28 + $0x78] sm:$0xe] }
  0x52   : > { %7049 = vmatpush3.bf16.msra.mxu0 %v7543_v13  ;;  %7020 = vmatprep.mubr.bf16.mxu0 %v6254_v52  ;;  %v6256_v13 = vcombine.low %v3342_v1, %v3345_v10  ;;  %v6228_v52 = vrot.slane %v6196_v46, 9  ;;  %v613_v10 = vshll.u32 %v532_v5, 16  ;;  %v637_v46 = vshll.u32 %v535_v41, 16 }
  0x53   : > { %7050 = vmatprep.subr.bf16.mxu0 %v7547_v48  ;;  %v3359_v32 = vsel %vm7921_vm5, %v3357_v25, %v3358_v21  ;;  %v585_v55 = vrot.slane %v583_v45, 5  ;;  %v7561_v21 = vld [vmem:[%s8897_s1 + $0x1b0] sm:$0xff]   ;;  %v631_v45 = vshll.u32 %v534_v36, 16 }
  0x54   : > { %v6258_v38 = vcombine.low %v3356_v24, %v3359_v32  ;;  %v3370_v1 = vsel %vm7921_vm5, %v6228_v52, %v3369_v57  ;;  %v615_v23 = vrot.slane %v613_v10, 5  ;;  %v619_v24 = vrot.slane %v617_v14, 4 }
  0x56   : > { %6797 = vmatmul.mubr.bf16.gmra.mrb[20].mxu1 %v7545_v42  ;;  %7051 = vmatpush3.bf16.msra.mxu0 %v7547_v48  ;;  %v8016_v42 = vsel %vm7921_vm5, %v6227_v30, %v3362_v35  ;;  %v589_v48 = vshll.u32 %v529_v40, 16  ;;  %v6229_v30 = vrot.slane %v6199_v20, 9  ;;  %v3379_v35 = vrot.slane %v6201_v29, 5 }
  0x57   : > { %6800 = vmatprep.mubr.bf16.mxu1 %v7548_v54  ;;  %7052 = vmatprep.subr.bf16.mxu0 %v7551_v12  ;;  %v582_v54 = vrot.slane %v580_v44, 4  ;;  %v6259_v59 = vcombine.low %v8016_v42, %v3366_v53  ;;  %v536_v42 = vld [vmem:[%s7798_s28 + $0x20] sm:$0x1]  ;;  %v628_v44 = vshrl.u32 %v534_v36, 16  ;;  %v6203_v53 = vld [vmem:[%s7798_s28 + $0x88] sm:$0xf] }
  0x58   : > { %v591_v60 = vrot.slane %v589_v48, 5  ;;  %v6202_v48 = vld [vmem:[%s7798_s28 + $0x84] sm:$0xe]  ;;  %v647_v52 = vshll.u32 %v536_v42, 16 }
  0x59   : > { %7021 = vmatmul.mubr.bf16.gmra.mrb[4].mxu0 %v6255_v9  ;;  %v586_v0 = vor.u32 %v585_v55, %v582_v54  ;;  %v607_v9 = vshll.u32 %v531_v63, 16  ;;  %v6204_v54 = vld [vmem:[%s7798_s28 + $0x8c] sm:$0x1]  ;;  %v630_v57 = vrot.slane %v628_v44, 4  ;;  %v643_v63 = vrot.slane %v641_v51, 4 }
  0x5a   : > { %7024 = vmatprep.mubr.bf16.mxu0 %v6256_v13  ;;  %7053 = vmatpush3.bf16.msra.mxu0 %v7551_v12  ;;  %v596_v7 = vor.u32 %v595_v61, %v591_v60  ;;  %v6230_v5 = vrot.slane %v6202_v48, 9  ;;  %v6209_v51 = vld [vmem:[%s7798_s28 + $0xa0] sm:$0xf] }
  0x5b   : > { %7054 = vmatprep.subr.bf16.mxu0 %v7555_v31  ;;  %v587_v12 = vrot.slane %v586_v0, 4  ;;  %v609_v19 = vrot.slane %v607_v9, 5  ;;  %v649_v0 = vrot.slane %v647_v52, 5 }
  0x5c   : > { %v597_v16 = vrot.slane %v596_v7, 4  ;;  %v3386_v7 = vrot.slane %v6204_v54, 5 }
  0x5d   : > { %v592_v22 = vsel %vm7821_vm2, %v587_v12, %v591_v60  ;;  %v610_v28 = vor.u32 %v609_v19, %v606_v18  ;;  %v538_v60 = vld [vmem:[%s7798_s28 + $0x28] sm:$0xf]  ;;  %v7560_v12 = vld [vmem:[%s8897_s1 + $0x90] sm:$0xff]   ;;  %v8086_v18 = vld [vmem:[%s8897_s1 + $0x1c0] sm:$0xff]  }
  0x5e   : > { %6801 = vmatmul.mubr.bf16.gmra.mrb[24].mxu1 %v7549_v3  ;;  %7055 = vmatpush3.bf16.msra.mxu0 %v7555_v31  ;;  %v3372_v3 = vrot.slane %v6198_v56, 5  ;;  %v602_v27 = vsel %vm7821_vm2, %v597_v16, %v601_v62  ;;  %v3376_v31 = vrot.slane %v6200_v26, 5  ;;  %v639_v62 = vrot.slane %v637_v46, 5 }
  0x5f   : > { %6804 = vmatprep.mubr.bf16.mxu1 %v7552_v15  ;;  %7056 = vmatprep.subr.bf16.mxu0 %v7557_v58  ;;  %v623_v15 = vshll.u32 %v533_v6, 16  ;;  %v5932_v32 = vcombine.low %v592_v22, %v602_v27  ;;  %v3383_v6 = vrot.slane %v6203_v53, 5  ;;  %v665_v16 = vshrl.u32 %v538_v60, 16  ;;  %v6207_v27 = vld [vmem:[%s7798_s28 + $0x98] sm:$0x1] }
  0x60   : > { %v3373_v13 = vsel %vm7921_vm5, %v3371_v2, %v3372_v3  ;;  %v3377_v39 = vsel %vm7921_vm5, %v6229_v30, %v3376_v31  ;;  %v3378_v40 = vrot.slane %v3376_v31, 4  ;;  %v7558_v2 = vld [vmem:[%s8897_s1 + $0x88] sm:$0xff]   ;;  %v644_v8 = vor.u32 %v643_v63, %v639_v62 }
  0x61   : > { %7025 = vmatmul.mubr.bf16.gmra.mrb[8].mxu0 %v6257_v37  ;;  %v6260_v17 = vcombine.low %v3370_v1, %v3373_v13  ;;  %v625_v25 = vrot.slane %v623_v15, 5  ;;  %v7563_v37 = vld [vmem:[%s8897_s1 + $0x1b8] sm:$0xff]   ;;  %v539_v1 = vld [vmem:[%s7798_s28 + $0x2c] sm:$0x1]  ;;  %v3384_v14 = vsel %vm7921_vm5, %v6230_v5, %v3383_v6  ;;  %v3385_v15 = vrot.slane %v3383_v6, 4  ;;  %v7565_v5 = vld [vmem:[%s8897_s1 + $0xa0] sm:$0xff]  }
  0x62   : > { %7028 = vmatprep.mubr.bf16.mxu0 %v6258_v38  ;;  %7057 = vmatpush3.bf16.msra.mxu0 %v7557_v58  ;;  %v611_v38 = vrot.slane %v610_v28, 4  ;;  %v3380_v50 = vsel %vm7921_vm5, %v3378_v40, %v3379_v35  ;;  %v633_v58 = vrot.slane %v631_v45, 5  ;;  %v645_v19 = vrot.slane %v644_v8, 4  ;;  %v542_v40 = vld [vmem:[%s7798_s28 + $0x38] sm:$0x1] }
  0x63   : > { %7058 = vmatprep.subr.bf16.mxu0 %v7559_v11  ;;  %v6261_v56 = vcombine.low %v3377_v39, %v3380_v50  ;;  %v671_v26 = vshll.u32 %v539_v1, 16  ;;  %v541_v39 = vld [vmem:[%s7798_s28 + $0x34] sm:$0xf]  ;;  %v3393_v42 = vrot.slane %v6207_v27, 5  ;;  %v6208_v45 = vld [vmem:[%s7798_s28 + $0x9c] sm:$0xe] }
  0x64   : > { %v616_v49 = vsel %vm7821_vm2, %v611_v38, %v615_v23  ;;  %v634_v3 = vor.u32 %v633_v58, %v630_v57  ;;  %v650_v28 = vsel %vm7821_vm2, %v645_v19, %v649_v0  ;;  %v685_v50 = vshll.u32 %v541_v39, 16 }
  0x65   : > { %v3397_v8 = vrot.slane %v6209_v51, 5 }
  0x66   : > { %6805 = vmatmul.mubr.bf16.gmra.mrb[28].mxu1 %v7553_v34  ;;  %v620_v34 = vor.u32 %v619_v24, %v615_v23  ;;  %7059 = vmatpush3.bf16.msra.mxu0 %v7559_v11  ;;  %v661_v11 = vshll.u32 %v538_v60, 16  ;;  %v635_v13 = vrot.slane %v634_v3, 4  ;;  %v3387_v24 = vsel %vm7921_vm5, %v3385_v15, %v3386_v7  ;;  %v545_v3 = vld [vmem:[%s7798_s28 + $0x44] sm:$0x1] }
  0x67   : > { %7060 = vmatprep.subr.bf16.mxu0 %v7561_v21  ;;  %6824 = vmatprep.mubr.bf16.mxu1 %v5932_v32  ;;  %v6262_v29 = vcombine.low %v3384_v14, %v3387_v24  ;;  %v540_v32 = vld [vmem:[%s7798_s28 + $0x30] sm:$0xf]  ;;  %v695_v60 = vshll.u32 %v542_v40, 16  ;;  %v6232_v7 = vrot.slane %v6208_v45, 9  ;;  %v6211_v14 = vld [vmem:[%s7798_s28 + $0xa8] sm:$0xe] }
  0x68   : > { %v621_v43 = vrot.slane %v620_v34, 4  ;;  %v663_v22 = vrot.slane %v661_v11, 5  ;;  %v640_v23 = vsel %vm7821_vm2, %v635_v13, %v639_v62  ;;  %v7562_v34 = vld [vmem:[%s8897_s1 + $0x98] sm:$0xff]   ;;  %v679_v44 = vshll.u32 %v540_v32, 16  ;;  %v544_v62 = vld [vmem:[%s7798_s28 + $0x40] sm:$0xf] }
  0x69   : > { %7029 = vmatmul.mubr.bf16.gmra.mrb[12].mxu0 %v6259_v59  ;;  %v537_v59 = vld [vmem:[%s7798_s28 + $0x24] sm:$0xf]  ;;  %v5934_v35 = vcombine.low %v640_v23, %v650_v28  ;;  %v697_v6 = vrot.slane %v695_v60, 5  ;;  %v3398_v15 = vsel %vm7921_vm5, %v6232_v7, %v3397_v8  ;;  %v713_v19 = vshrl.u32 %v544_v62, 16  ;;  %v6213_v24 = vld [vmem:[%s7798_s28 + $0xb0] sm:$0x1] }
  0x6a   : > { %7032 = vmatprep.mubr.bf16.mxu0 %v6260_v17  ;;  %v626_v55 = vsel %vm7821_vm2, %v621_v43, %v625_v25  ;;  %7061 = vmatpush3.bf16.msra.mxu0 %v7561_v21  ;;  %v652_v9 = vshrl.u32 %v537_v59, 16  ;;  %v655_v10 = vshll.u32 %v537_v59, 16  ;;  %v6205_v17 = vld [vmem:[%s7798_s28 + $0x90] sm:$0xe]  ;;  %v667_v25 = vrot.slane %v665_v16, 4  ;;  %v7577_v7 = vld [vmem:[%s8897_s1 + $0xb8] sm:$0xff]  }
  0x6b   : > { %v5933_v61 = vcombine.low %v616_v49, %v626_v55  ;;  %7062 = vmatprep.subr.bf16.mxu0 %v7563_v37  ;;  %v6231_v31 = vrot.slane %v6205_v17, 9  ;;  %v676_v43 = vshrl.u32 %v540_v32, 16  ;;  %v681_v54 = vrot.slane %v679_v44, 5 }
  0x6c   : > { %v654_v20 = vrot.slane %v652_v9, 4  ;;  %v657_v21 = vrot.slane %v655_v10, 5  ;;  %v668_v36 = vor.u32 %v667_v25, %v663_v22  ;;  %v689_v55 = vshrl.u32 %v541_v39, 16  ;;  %v7569_v25 = vld [vmem:[%s8897_s1 + $0xa8] sm:$0xff]  }
  0x6d   : > { %v678_v53 = vrot.slane %v676_v43, 4  ;;  %v687_v59 = vrot.slane %v685_v50, 5  ;;  %v3399_v16 = vrot.slane %v3397_v8, 4  ;;  %v709_v17 = vshll.u32 %v544_v62, 16 }
  0x6e   : > { %6825 = vmatmul.mubr.bf16.vlgmr.msra.gmra.mrb[0].mxu1 %v5933_v61  ;;  %7063 = vmatpush3.bf16.msra.mxu0 %v7563_v37  ;;  %v658_v30 = vor.u32 %v657_v21, %v654_v20  ;;  %v673_v37 = vrot.slane %v671_v26, 5  ;;  %v669_v46 = vrot.slane %v668_v36, 4  ;;  %v543_v61 = vld [vmem:[%s7798_s28 + $0x3c] sm:$0xf]  ;;  %v6212_v20 = vld [vmem:[%s7798_s28 + $0xac] sm:$0xf] }
  0x6f   : > { %6857 = vmatpush3.bf16.msra.mxu1 %v8022_v47  ;;  %v6206_v47 = vld [vmem:[%s7798_s28 + $0x94] sm:$0xf]  ;;  %7096 = vmatprep.subr.bf16.mxu0 %v8086_v18  ;;  %v682_v1 = vor.u32 %v681_v54, %v678_v53  ;;  %v703_v13 = vshll.u32 %v543_v61, 16  ;;  %v711_v27 = vrot.slane %v709_v17, 5  ;;  %v715_v28 = vrot.slane %v713_v19, 4 }
  0x70   : > { %6858 = vmatprep.subr.bf16.mxu1 %v7558_v2  ;;  %v3390_v38 = vrot.slane %v6206_v47, 5  ;;  %v659_v41 = vrot.slane %v658_v30, 4  ;;  %6828 = vmatprep.mubr.bf16.mxu1 %v5934_v35  ;;  %v674_v57 = vsel %vm7821_vm2, %v669_v46, %v673_v37  ;;  %v546_v35 = vld [vmem:[%s7798_s28 + $0x48] sm:$0xf]  ;;  %v7573_v36 = vld [vmem:[%s8897_s1 + $0xb0] sm:$0xff]   ;;  %v3404_v40 = vrot.slane %v6212_v20, 5 }
  0x71   : > { %7033 = vmatmul.mubr.bf16.gmra.mrb[16].mxu0 %v6261_v56  ;;  %v6210_v56 = vld [vmem:[%s7798_s28 + $0xa4] sm:$0x1]  ;;  %v683_v10 = vrot.slane %v682_v1, 4  ;;  %v705_v23 = vrot.slane %v703_v13, 5  ;;  %v3407_v44 = vrot.slane %v6213_v24, 5  ;;  %v724_v45 = vshrl.u32 %v546_v35, 16 }
  0x72   : > { %7036 = vmatprep.mubr.bf16.mxu0 %v6262_v29  ;;  %v3391_v48 = vsel %vm7921_vm5, %v6231_v31, %v3390_v38  ;;  %v3392_v49 = vrot.slane %v3390_v38, 4  ;;  %v664_v52 = vsel %vm7821_vm2, %v659_v41, %v663_v22  ;;  %v3400_v9 = vrot.slane %v6210_v56, 5  ;;  %v547_v41 = vld [vmem:[%s7798_s28 + $0x4c] sm:$0xf]  ;;  %v6215_v53 = vld [vmem:[%s7798_s28 + $0xb8] sm:$0xf] }
  0x73   : > { %6859 = vmatpush3.bf16.msra.mxu1 %v7558_v2  ;;  %v5935_v63 = vcombine.low %v664_v52, %v674_v57  ;;  %v691_v2 = vrot.slane %v689_v55, 4  ;;  %v688_v21 = vsel %vm7821_vm2, %v683_v10, %v687_v59  ;;  %v719_v29 = vshll.u32 %v545_v3, 16 }
  0x74   : > { %6860 = vmatprep.subr.bf16.mxu1 %v7560_v12  ;;  %v3394_v58 = vsel %vm7921_vm5, %v3392_v49, %v3393_v42  ;;  %v3401_v26 = vsel %vm7921_vm5, %v3399_v16, %v3400_v9  ;;  %v716_v38 = vor.u32 %v715_v28, %v711_v27  ;;  %v548_v42 = vld [vmem:[%s7798_s28 + $0x50] sm:$0x1]  ;;  %v727_v46 = vshll.u32 %v546_v35, 16  ;;  %v6217_v16 = vld [vmem:[%s7798_s28 + $0xc0] sm:$0xe] }
  0x75   : > { %v6263_v0 = vcombine.low %v3391_v48, %v3394_v58  ;;  %v692_v11 = vor.u32 %v691_v2, %v687_v59  ;;  %v6264_v31 = vcombine.low %v3398_v15, %v3401_v26  ;;  %v721_v39 = vrot.slane %v719_v29, 5  ;;  %v6214_v48 = vld [vmem:[%s7798_s28 + $0xb4] sm:$0xe]  ;;  %v6216_v58 = vld [vmem:[%s7798_s28 + $0xbc] sm:$0x1] }
  0x76   : > { %6829 = vmatmul.mubr.bf16.gmra.mrb[4].mxu1 %v5935_v63  ;;  %v717_v49 = vrot.slane %v716_v38, 4  ;;  %v3406_v51 = vrot.slane %v3404_v40, 4  ;;  %v733_v52 = vshll.u32 %v547_v41, 16  ;;  %v726_v55 = vrot.slane %v724_v45, 4  ;;  %v549_v63 = vld [vmem:[%s7798_s28 + $0x54] sm:$0xf] }
  0x77   : > { %6861 = vmatpush3.bf16.msra.mxu1 %v7560_v12  ;;  %v700_v12 = vshrl.u32 %v543_v61, 16  ;;  %v693_v22 = vrot.slane %v692_v11, 4  ;;  %v729_v56 = vrot.slane %v727_v46, 5  ;;  %v737_v57 = vshrl.u32 %v547_v41, 16  ;;  %v6219_v26 = vld [vmem:[%s7798_s28 + $0xc8] sm:$0x1] }
  0x78   : > { %6862 = vmatprep.subr.bf16.mxu1 %v7562_v34  ;;  %v722_v59 = vsel %vm7821_vm2, %v717_v49, %v721_v39  ;;  %v3408_v60 = vsel %vm7921_vm5, %v3406_v51, %v3407_v44  ;;  %v735_v61 = vrot.slane %v733_v52, 5  ;;  %v743_v62 = vshll.u32 %v548_v42, 16  ;;  %v553_v42 = vld [vmem:[%s7798_s28 + $0x64] sm:$0xf] }
  0x79   : > { %7037 = vmatmul.mubr.bf16.gmra.mrb[20].mxu0 %v6263_v0  ;;  %v702_v47 = vrot.slane %v700_v12, 4  ;;  %v698_v30 = vsel %vm7821_vm2, %v693_v22, %v697_v6  ;;  %v550_v0 = vld [vmem:[%s7798_s28 + $0x58] sm:$0xf]  ;;  %v730_v3 = vor.u32 %v729_v56, %v726_v55  ;;  %v551_v6 = vld [vmem:[%s7798_s28 + $0x5c] sm:$0x1]  ;;  %v6234_v9 = vrot.slane %v6214_v48, 9 }
  0x7a   : > { %v5936_v37 = vcombine.low %v688_v21, %v698_v30  ;;  %7040 = vmatprep.mubr.bf16.mxu0 %v6264_v31  ;;  %v745_v8 = vrot.slane %v743_v62, 5  ;;  %v3411_v10 = vrot.slane %v6215_v53, 5  ;;  %v3414_v11 = vrot.slane %v6216_v58, 5  ;;  %v6218_v22 = vld [vmem:[%s7798_s28 + $0xc4] sm:$0xf] }
  0x7b   : > { %6863 = vmatpush3.bf16.msra.mxu1 %v7562_v34  ;;  %v706_v32 = vor.u32 %v705_v23, %v702_v47  ;;  %v6233_v34 = vrot.slane %v6211_v14, 9  ;;  %v731_v12 = vrot.slane %v730_v3, 4  ;;  %v748_v14 = vshrl.u32 %v549_v63, 16  ;;  %v555_v58 = vld [vmem:[%s7798_s28 + $0x6c] sm:$0xf] }
  0x7c   : > { %6864 = vmatprep.subr.bf16.mxu1 %v7565_v5  ;;  %6832 = vmatprep.mubr.bf16.mxu1 %v5936_v37  ;;  %v751_v15 = vshll.u32 %v549_v63, 16  ;;  %v3412_v17 = vsel %vm7921_vm5, %v6234_v9, %v3411_v10  ;;  %v3413_v19 = vrot.slane %v3411_v10, 4  ;;  %v757_v20 = vshll.u32 %v550_v0, 16  ;;  %v552_v37 = vld [vmem:[%s7798_s28 + $0x60] sm:$0xf] }
  0x7d   : > { %v707_v43 = vrot.slane %v706_v32, 4  ;;  %v3405_v50 = vsel %vm7921_vm5, %v6233_v34, %v3404_v40  ;;  %v761_v21 = vshrl.u32 %v550_v0, 16  ;;  %v736_v47 = vsel %vm7821_vm2, %v731_v12, %v735_v61  ;;  %v556_v63 = vld [vmem:[%s7798_s28 + $0x70] sm:$0xf]  ;;  %v557_v0 = vld [vmem:[%s7798_s28 + $0x74] sm:$0x1] }
  0x7e   : > { %v6265_v2 = vcombine.low %v3405_v50, %v3408_v60  ;;  %v750_v24 = vrot.slane %v748_v14, 4  ;;  %v3415_v28 = vsel %vm7921_vm5, %v3413_v19, %v3414_v11  ;;  %v759_v29 = vrot.slane %v757_v20, 5 }
  0x7f   : > { %6865 = vmatpush3.bf16.msra.mxu1 %v7565_v5  ;;  %v712_v54 = vsel %vm7821_vm2, %v707_v43, %v711_v27  ;;  %v739_v5 = vrot.slane %v737_v57, 4  ;;  %v8167_v27 = vld [vmem:[%s8897_s1 + $0xc0] sm:$0xff]   ;;  %v763_v30 = vrot.slane %v761_v21, 4  ;;  %v767_v31 = vshll.u32 %v551_v6, 16  ;;  %v554_v43 = vld [vmem:[%s7798_s28 + $0x68] sm:$0x1] }
  0x80   : > { %6866 = vmatprep.subr.bf16.mxu1 %v7569_v25  ;;  %v5937_v1 = vcombine.low %v712_v54, %v722_v59  ;;  %v6266_v34 = vcombine.low %v3412_v17, %v3415_v28  ;;  %v3418_v41 = vrot.slane %v6218_v22, 5  ;;  %v3421_v45 = vrot.slane %v6219_v26, 5  ;;  %v7564_v57 = vld [vmem:[%s7798_s28 + $0x18] sm:$0xff]   ;;  %v7566_v22 = vld [vmem:[%s7798_s28 + $0x24] sm:$0xff]   ;;  %v7568_v26 = vld [vmem:[%s7798_s28 + $0x30] sm:$0xff]  }
  0x81   : > { %7041 = vmatmul.mubr.bf16.gmra.mrb[24].mxu0 %v6265_v2  ;;  %v740_v13 = vor.u32 %v739_v5, %v735_v61  ;;  %v764_v39 = vor.u32 %v763_v30, %v759_v29  ;;  %v769_v40 = vrot.slane %v767_v31, 5  ;;  %v772_v46 = vshrl.u32 %v552_v37, 16 }
  0x82   : > { %6833 = vmatmul.mubr.bf16.gmra.mrb[8].mxu1 %v5937_v1  ;;  %7044 = vmatprep.mubr.bf16.mxu0 %v6266_v34  ;;  %v775_v48 = vshll.u32 %v552_v37, 16  ;;  %v3420_v51 = vrot.slane %v3418_v41, 4  ;;  %v781_v52 = vshll.u32 %v553_v42, 16  ;;  %v785_v56 = vshrl.u32 %v553_v42, 16  ;;  %v561_v37 = vld [vmem:[%s7798_s28 + $0x84] sm:$0xf] }
  0x83   : > { %6867 = vmatpush3.bf16.msra.mxu1 %v7569_v25  ;;  %v741_v23 = vrot.slane %v740_v13, 4  ;;  %v753_v25 = vrot.slane %v751_v15, 5  ;;  %v765_v49 = vrot.slane %v764_v39, 4  ;;  %v774_v54 = vrot.slane %v772_v46, 4 }
  0x84   : > { %6868 = vmatprep.subr.bf16.mxu1 %v7573_v36  ;;  %v777_v55 = vrot.slane %v775_v48, 5  ;;  %v3422_v60 = vsel %vm7921_vm5, %v3420_v51, %v3421_v45  ;;  %v783_v61 = vrot.slane %v781_v52, 5  ;;  %v791_v62 = vshll.u32 %v554_v43, 16  ;;  %v562_v43 = vld [vmem:[%s7798_s28 + $0x88] sm:$0xf] }
  0x85   : > { %v746_v32 = vsel %vm7821_vm2, %v741_v23, %v745_v8  ;;  %v754_v35 = vor.u32 %v753_v25, %v750_v24  ;;  %v770_v59 = vsel %vm7821_vm2, %v765_v49, %v769_v40  ;;  %v787_v5 = vrot.slane %v785_v56, 4  ;;  %v558_v23 = vld [vmem:[%s7798_s28 + $0x78] sm:$0xf]  ;;  %v559_v24 = vld [vmem:[%s7798_s28 + $0x7c] sm:$0xf] }
  0x86   : > { %v5938_v38 = vcombine.low %v736_v47, %v746_v32  ;;  %v778_v3 = vor.u32 %v777_v55, %v774_v54  ;;  %v793_v6 = vrot.slane %v791_v62, 5  ;;  %v799_v8 = vshll.u32 %v555_v58, 16  ;;  %v560_v25 = vld [vmem:[%s7798_s28 + $0x80] sm:$0x1]  ;;  %v563_v48 = vld [vmem:[%s7798_s28 + $0x8c] sm:$0x1] }
  0x87   : > { %6869 = vmatpush3.bf16.msra.mxu1 %v7573_v36  ;;  %v6235_v36 = vrot.slane %v6217_v16, 9  ;;  %v755_v44 = vrot.slane %v754_v35, 4  ;;  %v805_v9 = vshll.u32 %v556_v63, 16  ;;  %v788_v11 = vor.u32 %v787_v5, %v783_v61  ;;  %v7575_v54 = vld [vmem:[%s8897_s1 + $0x1d0] sm:$0xff]  }
  0x88   : > { %6870 = vmatprep.subr.bf16.mxu1 %v7577_v7  ;;  %6836 = vmatprep.mubr.bf16.mxu1 %v5938_v38  ;;  %v779_v10 = vrot.slane %v778_v3, 4  ;;  %v809_v12 = vshrl.u32 %v556_v63, 16  ;;  %v815_v13 = vshll.u32 %v557_v0, 16  ;;  %v801_v15 = vrot.slane %v799_v8, 5  ;;  %v7571_v38 = vld [vmem:[%s8897_s1 + $0x1c8] sm:$0xff]   ;;  %v7570_v63 = vld [vmem:[%s7798_s28 + $0x3c] sm:$0xff]  }
  0x89   : > { %v3419_v50 = vsel %vm7921_vm5, %v6235_v36, %v3418_v41  ;;  %v760_v53 = vsel %vm7821_vm2, %v755_v44, %v759_v29  ;;  %v807_v16 = vrot.slane %v805_v9, 5  ;;  %v789_v19 = vrot.slane %v788_v11, 4  ;;  %v7572_v3 = vld [vmem:[%s7798_s28 + $0x48] sm:$0xff]   ;;  %v565_v8 = vld [vmem:[%s7798_s28 + $0x94] sm:$0xf] }
  0x8a   : > { %v5939_v1 = vcombine.low %v760_v53, %v770_v59  ;;  %v6267_v2 = vcombine.low %v3419_v50, %v3422_v60  ;;  %v784_v17 = vsel %vm7821_vm2, %v779_v10, %v783_v61  ;;  %v811_v20 = vrot.slane %v809_v12, 4  ;;  %v566_v9 = vld [vmem:[%s7798_s28 + $0x98] sm:$0x1] }
  0x8b   : > { %6871 = vmatpush3.bf16.msra.mxu1 %v7577_v7  ;;  %v796_v7 = vshrl.u32 %v555_v58, 16  ;;  %v817_v21 = vrot.slane %v815_v13, 5  ;;  %v794_v28 = vsel %vm7821_vm2, %v789_v19, %v793_v6  ;;  %v820_v30 = vshrl.u32 %v558_v23, 16 }
  0x8c   : > { %6904 = vmatprep.subr.bf16.mxu1 %v8167_v27  ;;  %6837 = vmatmul.mubr.bf16.gmra.mrb[12].mxu1 %v5939_v1  ;;  %v812_v29 = vor.u32 %v811_v20, %v807_v16  ;;  %v823_v31 = vshll.u32 %v558_v23, 16  ;;  %v5940_v32 = vcombine.low %v784_v17, %v794_v28  ;;  %v829_v35 = vshll.u32 %v559_v24, 16  ;;  %v567_v20 = vld [vmem:[%s7798_s28 + $0x9c] sm:$0xf] }
  0x8d   : > { %7045 = vmatmul.mubr.bf16.gmra.mrb[28].mxu0 %v6267_v2  ;;  %v798_v14 = vrot.slane %v796_v7, 4  ;;  %v833_v36 = vshrl.u32 %v559_v24, 16  ;;  %v822_v40 = vrot.slane %v820_v30, 4  ;;  %v839_v42 = vshll.u32 %v560_v25, 16  ;;  %v564_v2 = vld [vmem:[%s7798_s28 + $0x90] sm:$0xf] }
  0x8e   : > { %7064 = vmatprep.mubr.bf16.mxu0 %v7564_v57  ;;  %v813_v39 = vrot.slane %v812_v29, 4  ;;  %v825_v41 = vrot.slane %v823_v31, 5  ;;  %6840 = vmatprep.mubr.bf16.mxu1 %v5940_v32  ;;  %v831_v45 = vrot.slane %v829_v35, 5  ;;  %v844_v49 = vshrl.u32 %v561_v37, 16  ;;  %v568_v24 = vld [vmem:[%s7798_s28 + $0xa0] sm:$0xf] }
  0x8f   : > { %v802_v47 = vor.u32 %v801_v15, %v798_v14  ;;  %v835_v46 = vrot.slane %v833_v36, 4  ;;  %v841_v52 = vrot.slane %v839_v42, 5  ;;  %v847_v53 = vshll.u32 %v561_v37, 16  ;;  %v7579_v14 = vld [vmem:[%s8897_s1 + $0x1d8] sm:$0xff]   ;;  %v569_v29 = vld [vmem:[%s7798_s28 + $0xa4] sm:$0x1] }
  0x90   : > { %v818_v50 = vsel %vm7821_vm2, %v813_v39, %v817_v21  ;;  %v826_v51 = vor.u32 %v825_v41, %v822_v40  ;;  %v846_v57 = vrot.slane %v844_v49, 4  ;;  %v853_v58 = vshll.u32 %v562_v43, 16  ;;  %v7583_v36 = vld [vmem:[%s8897_s1 + $0x1e0] sm:$0xff]  }
  0x91   : > { %v803_v34 = vrot.slane %v802_v47, 4  ;;  %v836_v56 = vor.u32 %v835_v46, %v831_v45  ;;  %v849_v60 = vrot.slane %v847_v53, 5  ;;  %v857_v61 = vshrl.u32 %v562_v43, 16  ;;  %v570_v53 = vld [vmem:[%s7798_s28 + $0xa8] sm:$0xf] }
  0x92   : > { %v827_v59 = vrot.slane %v826_v51, 4  ;;  %v863_v62 = vshll.u32 %v563_v48, 16  ;;  %v855_v1 = vrot.slane %v853_v58, 5  ;;  %v868_v11 = vshrl.u32 %v564_v2, 16  ;;  %v572_v58 = vld [vmem:[%s7798_s28 + $0xb0] sm:$0x1] }
  0x93   : > { %v808_v44 = vsel %vm7821_vm2, %v803_v34, %v807_v16  ;;  %v837_v0 = vrot.slane %v836_v56, 4  ;;  %v850_v5 = vor.u32 %v849_v60, %v846_v57  ;;  %v859_v6 = vrot.slane %v857_v61, 4 }
  0x94   : > { %v5941_v55 = vcombine.low %v808_v44, %v818_v50  ;;  %v865_v7 = vrot.slane %v863_v62, 5  ;;  %v871_v12 = vshll.u32 %v564_v2, 16  ;;  %v877_v13 = vshll.u32 %v565_v8, 16  ;;  %v7576_v50 = vld [vmem:[%s7798_s28 + $0x60] sm:$0xff]  }
  0x95   : > { %7065 = vmatmul.mubr.bf16.vlgmr.msra.gmra.mrb[0].mxu0 %v7566_v22  ;;  %v842_v10 = vsel %vm7821_vm2, %v837_v0, %v841_v52  ;;  %v851_v16 = vrot.slane %v850_v5, 4  ;;  %v860_v17 = vor.u32 %v859_v6, %v855_v1  ;;  %v881_v19 = vshrl.u32 %v565_v8, 16  ;;  %v7587_v0 = vld [vmem:[%s8897_s1 + $0x1e8] sm:$0xff]   ;;  %v573_v5 = vld [vmem:[%s7798_s28 + $0xb4] sm:$0xf] }
  0x96   : > { %7097 = vmatpush3.bf16.msra.mxu0 %v8086_v18  ;;  %7068 = vmatprep.mubr.bf16.mxu0 %v7568_v26  ;;  %v832_v18 = vsel %vm7821_vm2, %v827_v59, %v831_v45  ;;  %v870_v21 = vrot.slane %v868_v11, 4  ;;  %v873_v22 = vrot.slane %v871_v12, 5  ;;  %v879_v47 = vrot.slane %v877_v13, 5  ;;  %v7574_v45 = vld [vmem:[%s7798_s28 + $0x54] sm:$0xff]  }
  0x97   : > { %7098 = vmatprep.subr.bf16.mxu0 %v7571_v38  ;;  %6841 = vmatmul.mubr.bf16.gmra.mrb[16].mxu1 %v5941_v55  ;;  %v5942_v15 = vcombine.low %v832_v18, %v842_v10  ;;  %v887_v23 = vshll.u32 %v566_v9, 16  ;;  %v856_v25 = vsel %vm7821_vm2, %v851_v16, %v855_v1  ;;  %v861_v26 = vrot.slane %v860_v17, 4  ;;  %v574_v9 = vld [vmem:[%s7798_s28 + $0xb8] sm:$0xf]  ;;  %v575_v10 = vld [vmem:[%s7798_s28 + $0xbc] sm:$0x1] }
  0x98   : > { %v883_v28 = vrot.slane %v881_v19, 4  ;;  %v892_v30 = vshrl.u32 %v567_v20, 16  ;;  %v874_v31 = vor.u32 %v873_v22, %v870_v21  ;;  %v895_v34 = vshll.u32 %v567_v20, 16 }
  0x99   : > { %6844 = vmatprep.mubr.bf16.mxu1 %v5942_v15  ;;  %v889_v32 = vrot.slane %v887_v23, 5  ;;  %v901_v35 = vshll.u32 %v568_v24, 16  ;;  %v866_v37 = vsel %vm7821_vm2, %v861_v26, %v865_v7  ;;  %v905_v40 = vshrl.u32 %v568_v24, 16  ;;  %v7591_v15 = vld [vmem:[%s8897_s1 + $0x1f0] sm:$0xff]  }
  0x9a   : > { %7099 = vmatpush3.bf16.msra.mxu0 %v7571_v38  ;;  %v884_v38 = vor.u32 %v883_v28, %v879_v47  ;;  %v894_v39 = vrot.slane %v892_v30, 4  ;;  %v5943_v41 = vcombine.low %v856_v25, %v866_v37  ;;  %v875_v42 = vrot.slane %v874_v31, 4  ;;  %v7578_v24 = vld [vmem:[%s7798_s28 + $0x6c] sm:$0xff]   ;;  %v1349_v37 = vld [vmem:[%s7798_s28] sm:$0xe] }
  0x9b   : > { %7100 = vmatprep.subr.bf16.mxu0 %v7575_v54  ;;  %v897_v43 = vrot.slane %v895_v34, 5  ;;  %v903_v44 = vrot.slane %v901_v35, 5  ;;  %v907_v48 = vrot.slane %v905_v40, 4  ;;  %v911_v49 = vshll.u32 %v569_v29, 16  ;;  %v7580_v29 = vld [vmem:[%s7798_s28 + $0x78] sm:$0xff]  }
  0x9c   : > { %v885_v46 = vrot.slane %v884_v38, 4  ;;  %v880_v51 = vsel %vm7821_vm2, %v875_v42, %v879_v47  ;;  %v916_v59 = vshrl.u32 %v570_v53, 16  ;;  %v919_v62 = vshll.u32 %v570_v53, 16  ;;  %v7595_v34 = vld [vmem:[%s8897_s1 + $0x1f8] sm:$0xff]   ;;  %v1350_v38 = vld [vmem:[%s7798_s28 + $0x4] sm:$0xf] }
  0x9d   : > { %7069 = vmatmul.mubr.bf16.gmra.mrb[4].mxu0 %v7570_v63  ;;  %v898_v52 = vor.u32 %v897_v43, %v894_v39  ;;  %v908_v56 = vor.u32 %v907_v48, %v903_v44  ;;  %v913_v57 = vrot.slane %v911_v49, 5  ;;  %v935_v18 = vshll.u32 %v572_v58, 16  ;;  %v1351_v39 = vld [vmem:[%s7798_s28 + $0x8] sm:$0x1]  ;;  %v1352_v48 = vld [vmem:[%s7798_s28 + $0xc] sm:$0xe] }
  0x9e   : > { %7072 = vmatprep.mubr.bf16.mxu0 %v7572_v3  ;;  %7101 = vmatpush3.bf16.msra.mxu0 %v7575_v54  ;;  %v571_v54 = vld [vmem:[%s7798_s28 + $0xac] sm:$0xf]  ;;  %v890_v55 = vsel %vm7821_vm2, %v885_v46, %v889_v32  ;;  %v918_v2 = vrot.slane %v916_v59, 4  ;;  %v921_v7 = vrot.slane %v919_v62, 5  ;;  %v943_v19 = vshll.u32 %v573_v5, 16 }
  0x9f   : > { %7102 = vmatprep.subr.bf16.mxu0 %v7579_v14  ;;  %6845 = vmatmul.mubr.bf16.gmra.mrb[20].mxu1 %v5943_v41  ;;  %v5944_v60 = vcombine.low %v880_v51, %v890_v55  ;;  %v899_v61 = vrot.slane %v898_v52, 4  ;;  %v925_v63 = vshll.u32 %v571_v54, 16  ;;  %v909_v1 = vrot.slane %v908_v56, 4  ;;  %v1353_v49 = vld [vmem:[%s7798_s28 + $0x10] sm:$0xf]  ;;  %v7582_v55 = vld [vmem:[%s7798_s28 + $0x84] sm:$0xff]  }
  0xa0   : > { %v929_v3 = vshrl.u32 %v571_v54, 16  ;;  %v937_v13 = vrot.slane %v935_v18, 5  ;;  %v922_v17 = vor.u32 %v921_v7, %v918_v2  ;;  %v949_v20 = vshll.u32 %v574_v9, 16  ;;  %v1354_v53 = vld [vmem:[%s7798_s28 + $0x14] sm:$0x1]  ;;  %v8277_v56 = vld [vmem:[%s8897_s1 + $0x200] sm:$0xff]  }
  0xa1   : > { %6848 = vmatprep.mubr.bf16.mxu1 %v5944_v60  ;;  %v904_v6 = vsel %vm7821_vm2, %v899_v61, %v903_v44  ;;  %v927_v8 = vrot.slane %v925_v63, 5  ;;  %v914_v11 = vsel %vm7821_vm2, %v909_v1, %v913_v57  ;;  %v953_v47 = vshrl.u32 %v574_v9, 16  ;;  %v1355_v1 = vld [vmem:[%s7798_s28 + $0x18] sm:$0xe]  ;;  %v7584_v2 = vld [vmem:[%s7798_s28 + $0x90] sm:$0xff]  }
  0xa2   : > { %7103 = vmatpush3.bf16.msra.mxu0 %v7579_v14  ;;  %v931_v12 = vrot.slane %v929_v3, 4  ;;  %v940_v14 = vshrl.u32 %v573_v5, 16  ;;  %v5945_v16 = vcombine.low %v904_v6, %v914_v11  ;;  %v959_v23 = vshll.u32 %v575_v10, 16  ;;  %v1356_v3 = vld [vmem:[%s7798_s28 + $0x1c] sm:$0xf] }
  0xa3   : > { %7104 = vmatprep.subr.bf16.mxu0 %v7583_v36  ;;  %v923_v25 = vrot.slane %v922_v17, 4  ;;  %v945_v26 = vrot.slane %v943_v19, 5  ;;  %v951_v28 = vrot.slane %v949_v20, 5  ;;  %v955_v31 = vrot.slane %v953_v47, 4  ;;  %v1357_v18 = vld [vmem:[%s7798_s28 + $0x20] sm:$0x1] }
  0xa4   : > { %v932_v21 = vor.u32 %v931_v12, %v927_v8  ;;  %v942_v22 = vrot.slane %v940_v14, 4  ;;  %v961_v32 = vrot.slane %v959_v23, 5  ;;  %v5956_v42 = vrot.slane %v1349_v37, 9  ;;  %v1358_v10 = vld [vmem:[%s7798_s28 + $0x24] sm:$0xe]  ;;  %v7586_v47 = vld [vmem:[%s7798_s28 + $0x9c] sm:$0xff]  }
  0xa5   : > { %7073 = vmatmul.mubr.bf16.gmra.mrb[8].mxu0 %v7574_v45  ;;  %v928_v35 = vsel %vm7821_vm2, %v923_v25, %v927_v8  ;;  %v956_v41 = vor.u32 %v955_v31, %v951_v28  ;;  %v1450_v43 = vrot.slane %v1350_v38, 5  ;;  %v1453_v46 = vrot.slane %v1351_v39, 5  ;;  %v1359_v11 = vld [vmem:[%s7798_s28 + $0x28] sm:$0xf]  ;;  %v1360_v12 = vld [vmem:[%s7798_s28 + $0x2c] sm:$0x1] }
  0xa6   : > { %7076 = vmatprep.mubr.bf16.mxu0 %v7576_v50  ;;  %7105 = vmatpush3.bf16.msra.mxu0 %v7583_v36  ;;  %v933_v30 = vrot.slane %v932_v21, 4  ;;  %v946_v36 = vor.u32 %v945_v26, %v942_v22  ;;  %v5957_v54 = vrot.slane %v1352_v48, 9  ;;  %v1457_v58 = vrot.slane %v1353_v49, 5  ;;  %v7585_v22 = vld [vmem:[%s8897_s1 + $0xc8] sm:$0xff]   ;;  %v1362_v25 = vld [vmem:[%s7798_s28 + $0x34] sm:$0xf] }
  0xa7   : > { %7106 = vmatprep.subr.bf16.mxu0 %v7587_v0  ;;  %6849 = vmatmul.mubr.bf16.gmra.mrb[24].mxu1 %v5945_v16  ;;  %v957_v50 = vrot.slane %v956_v41, 4  ;;  %v1451_v51 = vsel %vm7921_vm5, %v5956_v42, %v1450_v43  ;;  %v1452_v52 = vrot.slane %v1450_v43, 4  ;;  %v1460_v59 = vrot.slane %v1354_v53, 5  ;;  %v1363_v26 = vld [vmem:[%s7798_s28 + $0x38] sm:$0x1]  ;;  %v7588_v31 = vld [vmem:[%s7798_s28 + $0xa8] sm:$0xff]  }
  0xa8   : > { %v938_v40 = vsel %vm7821_vm2, %v933_v30, %v937_v13  ;;  %v947_v45 = vrot.slane %v946_v36, 4  ;;  %v5958_v5 = vrot.slane %v1355_v1, 9  ;;  %v1464_v6 = vrot.slane %v1356_v3, 5  ;;  %v1366_v36 = vld [vmem:[%s7798_s28 + $0x44] sm:$0x1]  ;;  %v7590_v48 = vld [vmem:[%s7798_s28 + $0xb4] sm:$0xff]  }
  0xa9   : > { %v5946_v44 = vcombine.low %v928_v35, %v938_v40  ;;  %v962_v60 = vsel %vm7821_vm2, %v957_v50, %v961_v32  ;;  %v1454_v61 = vsel %vm7921_vm5, %v1452_v52, %v1453_v46  ;;  %v1467_v7 = vrot.slane %v1357_v18, 5  ;;  %v1364_v32 = vld [vmem:[%s7798_s28 + $0x3c] sm:$0xe]  ;;  %v1365_v35 = vld [vmem:[%s7798_s28 + $0x40] sm:$0xf]  ;;  %v7589_v40 = vld [vmem:[%s8897_s1 + $0xd0] sm:$0xff]  }
  0xaa   : > { %7107 = vmatpush3.bf16.msra.mxu0 %v7587_v0  ;;  %v952_v57 = vsel %vm7821_vm2, %v947_v45, %v951_v28  ;;  %v5988_v63 = vcombine.low %v1451_v51, %v1454_v61  ;;  %v1459_v0 = vrot.slane %v1457_v58, 4  ;;  %v1458_v8 = vsel %vm7921_vm5, %v5957_v54, %v1457_v58  ;;  %v1368_v49 = vld [vmem:[%s7798_s28 + $0x4c] sm:$0xf]  ;;  %v1369_v50 = vld [vmem:[%s7798_s28 + $0x50] sm:$0x1]  ;;  %v7593_v52 = vld [vmem:[%s8897_s1 + $0xd8] sm:$0xff]  }
  0xab   : > { %7108 = vmatprep.subr.bf16.mxu0 %v7591_v15  ;;  %6852 = vmatprep.mubr.bf16.mxu1 %v5946_v44  ;;  %v5947_v62 = vcombine.low %v952_v57, %v962_v60  ;;  %v1465_v13 = vsel %vm7921_vm5, %v5958_v5, %v1464_v6  ;;  %v1466_v14 = vrot.slane %v1464_v6, 4  ;;  %v5959_v16 = vrot.slane %v1358_v10, 9  ;;  %v1367_v44 = vld [vmem:[%s7798_s28 + $0x48] sm:$0xe]  ;;  %v1370_v57 = vld [vmem:[%s7798_s28 + $0x54] sm:$0xe] }
  0xac   : > { %v1461_v9 = vsel %vm7921_vm5, %v1459_v0, %v1460_v59  ;;  %v1474_v21 = vrot.slane %v1360_v12, 5  ;;  %v1481_v30 = vrot.slane %v1363_v26, 5  ;;  %v1485_v39 = vrot.slane %v1365_v35, 5  ;;  %v1371_v58 = vld [vmem:[%s7798_s28 + $0x58] sm:$0xf]  ;;  %v7592_v61 = vld [vmem:[%s7798_s28 + $0xc0] sm:$0xff]  }
  0xad   : > { %7077 = vmatmul.mubr.bf16.gmra.mrb[12].mxu0 %v7578_v24  ;;  %v5989_v17 = vcombine.low %v1458_v8, %v1461_v9  ;;  %v1468_v19 = vsel %vm7921_vm5, %v1466_v14, %v1467_v7  ;;  %v1361_v24 = vld [vmem:[%s7798_s28 + $0x30] sm:$0xe]  ;;  %v5961_v42 = vrot.slane %v1364_v32, 9  ;;  %v1488_v43 = vrot.slane %v1366_v36, 5  ;;  %v1372_v59 = vld [vmem:[%s7798_s28 + $0x5c] sm:$0x1] }
  0xae   : > { %7080 = vmatprep.mubr.bf16.mxu0 %v7580_v29  ;;  %7109 = vmatpush3.bf16.msra.mxu0 %v7591_v15  ;;  %v1471_v15 = vrot.slane %v1359_v11, 5  ;;  %v5990_v23 = vcombine.low %v1465_v13, %v1468_v19  ;;  %v5960_v28 = vrot.slane %v1361_v24, 9  ;;  %v1478_v29 = vrot.slane %v1362_v25, 5  ;;  %v7596_v6 = vld [vmem:[%s8897_s1 + $0xe0] sm:$0xff]   ;;  %v1375_v11 = vld [vmem:[%s7798_s28 + $0x68] sm:$0x1] }
  0xaf   : > { %7110 = vmatprep.subr.bf16.mxu0 %v7595_v34  ;;  %6853 = vmatmul.mubr.bf16.gmra.mrb[28].mxu1 %v5947_v62  ;;  %v1487_v46 = vrot.slane %v1485_v39, 4  ;;  %v5962_v51 = vrot.slane %v1367_v44, 9  ;;  %v1492_v54 = vrot.slane %v1368_v49, 5  ;;  %v5963_v62 = vrot.slane %v1370_v57, 9  ;;  %v1373_v7 = vld [vmem:[%s7798_s28 + $0x60] sm:$0xe] }
  0xb0   : > { %6872 = vmatprep.mubr.bf16.mxu1 %v5988_v63  ;;  %v1473_v20 = vrot.slane %v1471_v15, 4  ;;  %v1472_v37 = vsel %vm7921_vm5, %v5959_v16, %v1471_v15  ;;  %v1499_v63 = vrot.slane %v1371_v58, 5  ;;  %v1486_v0 = vsel %vm7921_vm5, %v5961_v42, %v1485_v39  ;;  %v1374_v8 = vld [vmem:[%s7798_s28 + $0x64] sm:$0xf]  ;;  %v6348_v13 = vld [vmem:[%s7798_s28 + $0x18] sm:$0xf] }
  0xb1   : > { %v1494_v60 = vrot.slane %v1492_v54, 4  ;;  %v1489_v1 = vsel %vm7921_vm5, %v1487_v46, %v1488_v43  ;;  %v1493_v3 = vsel %vm7921_vm5, %v5962_v51, %v1492_v54  ;;  %v1506_v12 = vrot.slane %v1374_v8, 5  ;;  %v7594_v16 = vld [vmem:[%s7798_s28 + $0xcc] sm:$0xff]   ;;  %v6349_v19 = vld [vmem:[%s7798_s28 + $0x1c] sm:$0xf] }
  0xb2   : > { %7111 = vmatpush3.bf16.msra.mxu0 %v7595_v34  ;;  %v1480_v34 = vrot.slane %v1478_v29, 4  ;;  %v1475_v38 = vsel %vm7921_vm5, %v1473_v20, %v1474_v21  ;;  %v1501_v5 = vrot.slane %v1499_v63, 4  ;;  %v5993_v9 = vcombine.low %v1486_v0, %v1489_v1  ;;  %v6350_v20 = vld [vmem:[%s7798_s28 + $0x20] sm:$0x1]  ;;  %v1376_v26 = vld [vmem:[%s7798_s28 + $0x6c] sm:$0xe] }
  0xb3   : > { %7144 = vmatprep.subr.bf16.mxu0 %v8277_v56  ;;  %v5991_v45 = vcombine.low %v1472_v37, %v1475_v38  ;;  %v8350_v10 = vsel %vm7921_vm5, %v5963_v62, %v1499_v63  ;;  %v4309_v21 = vshrl.u32 %v6348_v13, 16  ;;  %v4312_v24 = vshll.u32 %v6348_v13, 16  ;;  %v1378_v36 = vld [vmem:[%s7798_s28 + $0x74] sm:$0x1]  ;;  %v6351_v46 = vld [vmem:[%s7798_s28 + $0x24] sm:$0xf] }
  0xb4   : > { %v1482_v41 = vsel %vm7921_vm5, %v1480_v34, %v1481_v30  ;;  %v4318_v25 = vshll.u32 %v6349_v19, 16  ;;  %v4328_v30 = vshll.u32 %v6350_v20, 16  ;;  %v5965_v32 = vrot.slane %v1376_v26, 9  ;;  %v6353_v51 = vld [vmem:[%s7798_s28 + $0x2c] sm:$0x1] }
  0xb5   : > { %7081 = vmatmul.mubr.bf16.gmra.mrb[16].mxu0 %v7582_v55  ;;  %v1495_v55 = vrot.slane %v1369_v50, 5  ;;  %v4314_v34 = vrot.slane %v4312_v24, 5  ;;  %v6352_v50 = vld [vmem:[%s7798_s28 + $0x28] sm:$0xf]  ;;  %v1381_v8 = vld [vmem:[%s7798_s28 + $0x80] sm:$0x1] }
  0xb6   : > { %7084 = vmatprep.mubr.bf16.mxu0 %v7584_v2  ;;  %v1502_v2 = vrot.slane %v1372_v59, 5  ;;  %v4320_v35 = vrot.slane %v4318_v25, 5  ;;  %v4330_v44 = vrot.slane %v4328_v30, 5  ;;  %v4342_v57 = vshll.u32 %v6352_v50, 16  ;;  %v6356_v20 = vld [vmem:[%s7798_s28 + $0x38] sm:$0x1] }
  0xb7   : > { %6873 = vmatmul.mubr.bf16.vlgmr.msra.gmra.mrb[0].mxu1 %v5989_v17  ;;  %v1496_v18 = vsel %vm7921_vm5, %v1494_v60, %v1495_v55  ;;  %v5964_v17 = vrot.slane %v1373_v7, 9  ;;  %v4346_v58 = vshrl.u32 %v6352_v50, 16  ;;  %v1380_v7 = vld [vmem:[%s7798_s28 + $0x7c] sm:$0xf]  ;;  %v1382_v26 = vld [vmem:[%s7798_s28 + $0x84] sm:$0xe] }
  0xb8   : > { %6905 = vmatpush3.bf16.msra.mxu1 %v8167_v27  ;;  %6876 = vmatprep.mubr.bf16.mxu1 %v5990_v23  ;;  %v1479_v27 = vsel %vm7921_vm5, %v5960_v28, %v1478_v29  ;;  %v5994_v14 = vcombine.low %v1493_v3, %v1496_v18  ;;  %v8356_v15 = vsel %vm7921_vm5, %v1501_v5, %v1502_v2  ;;  %v1509_v23 = vrot.slane %v1375_v11, 5  ;;  %v1379_v3 = vld [vmem:[%s7798_s28 + $0x78] sm:$0xe] }
  0xb9   : > { %6906 = vmatprep.subr.bf16.mxu1 %v7585_v22  ;;  %v5992_v53 = vcombine.low %v1479_v27, %v1482_v41  ;;  %v4311_v28 = vrot.slane %v4309_v21, 4  ;;  %v4322_v29 = vshrl.u32 %v6349_v19, 16  ;;  %v5995_v38 = vcombine.low %v8350_v10, %v8356_v15  ;;  %v7600_v41 = vld [vmem:[%s8897_s1 + $0xf0] sm:$0xff]   ;;  %v7602_v10 = vld [vmem:[%s8897_s1 + $0xf8] sm:$0xff]  }
  0xba   : > { %v1507_v39 = vsel %vm7921_vm5, %v5964_v17, %v1506_v12  ;;  %v1516_v27 = vrot.slane %v1378_v36, 5  ;;  %v4344_v0 = vrot.slane %v4342_v57, 5  ;;  %v4348_v1 = vrot.slane %v4346_v58, 4  ;;  %v6354_v15 = vld [vmem:[%s7798_s28 + $0x30] sm:$0xf] }
  0xbb   : > { %v4315_v43 = vor.u32 %v4314_v34, %v4311_v28  ;;  %v4352_v2 = vshll.u32 %v6353_v51, 16  ;;  %v1523_v19 = vrot.slane %v1381_v8, 5  ;;  %v4357_v21 = vshrl.u32 %v6354_v15, 16 }
  0xbc   : > { %6907 = vmatpush3.bf16.msra.mxu1 %v7585_v22  ;;  %v7598_v22 = vld [vmem:[%s8897_s1 + $0xe8] sm:$0xff]  }
  0xbd   : > { %7085 = vmatmul.mubr.bf16.gmra.mrb[20].mxu0 %v7586_v47  ;;  %6908 = vmatprep.subr.bf16.mxu1 %v7589_v40  ;;  %v1508_v47 = vrot.slane %v1506_v12, 4  ;;  %v4316_v54 = vrot.slane %v4315_v43, 4  ;;  %v4349_v12 = vor.u32 %v4348_v1, %v4344_v0  ;;  %v4354_v13 = vrot.slane %v4352_v2, 5  ;;  %v6357_v43 = vld [vmem:[%s7798_s28 + $0x3c] sm:$0xf] }
  0xbe   : > { %7088 = vmatprep.mubr.bf16.mxu0 %v7588_v31  ;;  %v1377_v31 = vld [vmem:[%s7798_s28 + $0x70] sm:$0xf] }
  0xbf   : > { %6877 = vmatmul.mubr.bf16.gmra.mrb[4].mxu1 %v5991_v45  ;;  %v1513_v37 = vrot.slane %v1377_v31, 5  ;;  %v1510_v42 = vsel %vm7921_vm5, %v1508_v47, %v1509_v23  ;;  %v4321_v63 = vsel %vm7821_vm2, %v4316_v54, %v4320_v35  ;;  %v4350_v47 = vrot.slane %v4349_v12, 4  ;;  %v7603_v12 = vld [vmem:[%s8897_s1 + $0x218] sm:$0xff]  }
  0xc0   : > { %6880 = vmatprep.mubr.bf16.mxu1 %v5992_v53  ;;  %6909 = vmatpush3.bf16.msra.mxu1 %v7589_v40  ;;  %v4324_v40 = vrot.slane %v4322_v29, 4  ;;  %v4336_v53 = vshll.u32 %v6351_v46, 16  ;;  %v5996_v59 = vcombine.low %v1507_v39, %v1510_v42  ;;  %v4359_v29 = vrot.slane %v4357_v21, 4 }
  0xc1   : > { %6910 = vmatprep.subr.bf16.mxu1 %v7593_v52  ;;  %v1515_v45 = vrot.slane %v1513_v37, 4  ;;  %v8379_v49 = vsel %vm7921_vm5, %v5965_v32, %v1513_v37  ;;  %v1383_v32 = vld [vmem:[%s7798_s28 + $0x88] sm:$0xf]  ;;  %v4355_v34 = vsel %vm7821_vm2, %v4350_v47, %v4354_v13  ;;  %v4376_v37 = vshll.u32 %v6356_v20, 16 }
  0xc2   : > { %v4338_v62 = vrot.slane %v4336_v53, 5  ;;  %v4381_v53 = vshrl.u32 %v6357_v43, 16  ;;  %v4384_v54 = vshll.u32 %v6357_v43, 16 }
  0xc3   : > { %v8385_v55 = vsel %vm7921_vm5, %v1515_v45, %v1516_v27  ;;  %v5967_v45 = vrot.slane %v1382_v26, 9 }
  0xc4   : > { %6911 = vmatpush3.bf16.msra.mxu1 %v7593_v52  ;;  %v4333_v52 = vshrl.u32 %v6351_v46, 16  ;;  %v5997_v5 = vcombine.low %v8379_v49, %v8385_v55  ;;  %v1527_v46 = vrot.slane %v1383_v32, 5  ;;  %v6358_v49 = vld [vmem:[%s7798_s28 + $0x40] sm:$0xf] }
  0xc5   : > { %7089 = vmatmul.mubr.bf16.gmra.mrb[24].mxu0 %v7590_v48  ;;  %6912 = vmatprep.subr.bf16.mxu1 %v7596_v6  ;;  %v4325_v48 = vor.u32 %v4324_v40, %v4320_v35  ;;  %v4390_v58 = vshll.u32 %v6358_v49, 16 }
  0xc6   : > { %7092 = vmatprep.mubr.bf16.mxu0 %v7592_v61  ;;  %v4335_v61 = vrot.slane %v4333_v52, 4  ;;  %v6359_v52 = vld [vmem:[%s7798_s28 + $0x44] sm:$0x1]  ;;  %v1528_v55 = vsel %vm7921_vm5, %v5967_v45, %v1527_v46  ;;  %v1529_v57 = vrot.slane %v1527_v46, 4 }
  0xc7   : > { %6881 = vmatmul.mubr.bf16.gmra.mrb[8].mxu1 %v5993_v9  ;;  %v4326_v60 = vrot.slane %v4325_v48, 4  ;;  %v5966_v9 = vrot.slane %v1379_v3, 9  ;;  %v4392_v2 = vrot.slane %v4390_v58, 5  ;;  %v7606_v45 = vld [vmem:[%s8897_s1 + $0x220] sm:$0xff]  }
  0xc8   : > { %6884 = vmatprep.mubr.bf16.mxu1 %v5994_v14  ;;  %6913 = vmatpush3.bf16.msra.mxu1 %v7596_v6  ;;  %v4339_v6 = vor.u32 %v4338_v62, %v4335_v61  ;;  %v1520_v14 = vrot.slane %v1380_v7, 5  ;;  %v4383_v62 = vrot.slane %v4381_v53, 4 }
  0xc9   : > { %6914 = vmatprep.subr.bf16.mxu1 %v7598_v22  ;;  %v4331_v18 = vsel %vm7821_vm2, %v4326_v60, %v4330_v44  ;;  %v4378_v44 = vrot.slane %v4376_v37, 5  ;;  %v8425_v60 = vld [vmem:[%s8897_s1 + $0x100] sm:$0xff]  }
  0xca   : > { %v6412_v11 = vcombine.low %v4321_v63, %v4331_v18  ;;  %v4340_v17 = vrot.slane %v4339_v6, 4  ;;  %v1521_v23 = vsel %vm7921_vm5, %v5966_v9, %v1520_v14  ;;  %v1522_v24 = vrot.slane %v1520_v14, 4  ;;  %v1386_v9 = vld [vmem:[%s7798_s28 + $0x94] sm:$0xf] }
  0xcb   : > { %v4386_v63 = vrot.slane %v4384_v54, 5  ;;  %v4400_v18 = vshll.u32 %v6359_v52, 16  ;;  %v6365_v54 = vld [vmem:[%s7798_s28 + $0x5c] sm:$0x1] }
  0xcc   : > { %6915 = vmatpush3.bf16.msra.mxu1 %v7598_v22  ;;  %v4360_v22 = vshll.u32 %v6354_v15, 16  ;;  %v4345_v28 = vsel %vm7821_vm2, %v4340_v17, %v4344_v0  ;;  %v1524_v35 = vsel %vm7921_vm5, %v1522_v24, %v1523_v19  ;;  %v7601_v0 = vld [vmem:[%s8897_s1 + $0x210] sm:$0xff]   ;;  %v6360_v17 = vld [vmem:[%s7798_s28 + $0x48] sm:$0xf]  ;;  %v6361_v19 = vld [vmem:[%s7798_s28 + $0x4c] sm:$0xf] }
  0xcd   : > { %7093 = vmatmul.mubr.bf16.gmra.mrb[28].mxu0 %v7594_v16  ;;  %6916 = vmatprep.subr.bf16.mxu1 %v7600_v41  ;;  %v6355_v16 = vld [vmem:[%s7798_s28 + $0x34] sm:$0xf]  ;;  %v6413_v39 = vcombine.low %v4345_v28, %v4355_v34  ;;  %v5998_v40 = vcombine.low %v1521_v23, %v1524_v35  ;;  %v4387_v8 = vor.u32 %v4386_v63, %v4383_v62  ;;  %v4402_v15 = vrot.slane %v4400_v18, 5  ;;  %v1389_v35 = vld [vmem:[%s7798_s28 + $0xa0] sm:$0xf] }
  0xce   : > { %7112 = vmatprep.mubr.bf16.mxu0 %v6412_v11  ;;  %v4366_v25 = vshll.u32 %v6355_v16, 16  ;;  %v4362_v30 = vrot.slane %v4360_v22, 5  ;;  %v4370_v31 = vshrl.u32 %v6355_v16, 16  ;;  %v1534_v16 = vrot.slane %v1386_v9, 5  ;;  %v6362_v22 = vld [vmem:[%s7798_s28 + $0x50] sm:$0x1] }
  0xcf   : > { %6885 = vmatmul.mubr.bf16.gmra.mrb[12].mxu1 %v5995_v38  ;;  %v1384_v38 = vld [vmem:[%s7798_s28 + $0x8c] sm:$0x1]  ;;  %v4388_v20 = vrot.slane %v4387_v8, 4  ;;  %v4405_v47 = vshrl.u32 %v6360_v17, 16  ;;  %v4408_v23 = vshll.u32 %v6360_v17, 16  ;;  %v4414_v28 = vshll.u32 %v6361_v19, 16 }
  0xd0   : > { %6888 = vmatprep.mubr.bf16.mxu1 %v5996_v59  ;;  %6917 = vmatpush3.bf16.msra.mxu1 %v7600_v41  ;;  %v4368_v36 = vrot.slane %v4366_v25, 5  ;;  %v4363_v27 = vor.u32 %v4362_v30, %v4359_v29  ;;  %v4372_v42 = vrot.slane %v4370_v31, 4  ;;  %v7599_v41 = vld [vmem:[%s8897_s1 + $0x208] sm:$0xff]   ;;  %v1530_v48 = vrot.slane %v1384_v38, 5  ;;  %v1388_v29 = vld [vmem:[%s7798_s28 + $0x9c] sm:$0xe] }
  0xd1   : > { %6918 = vmatprep.subr.bf16.mxu1 %v7602_v10  ;;  %v4394_v59 = vshrl.u32 %v6358_v49, 16  ;;  %v1536_v26 = vrot.slane %v1534_v16, 4  ;;  %v4393_v30 = vsel %vm7821_vm2, %v4388_v20, %v4392_v2  ;;  %v4407_v31 = vrot.slane %v4405_v47, 4  ;;  %v6366_v20 = vld [vmem:[%s7798_s28 + $0x60] sm:$0xf] }
  0xd2   : > { %v4364_v50 = vrot.slane %v4363_v27, 4  ;;  %v4373_v51 = vor.u32 %v4372_v42, %v4368_v36  ;;  %v1531_v1 = vsel %vm7921_vm5, %v1529_v57, %v1530_v48  ;;  %v4410_v32 = vrot.slane %v4408_v23, 5  ;;  %v6368_v23 = vld [vmem:[%s7798_s28 + $0x68] sm:$0x1] }
  0xd3   : > { %v4396_v3 = vrot.slane %v4394_v59, 4  ;;  %v5999_v7 = vcombine.low %v1528_v55, %v1531_v1  ;;  %v4418_v34 = vshrl.u32 %v6361_v19, 16  ;;  %v4416_v38 = vrot.slane %v4414_v28, 5 }
  0xd4   : > { %6919 = vmatpush3.bf16.msra.mxu1 %v7602_v10  ;;  %v4369_v61 = vsel %vm7821_vm2, %v4364_v50, %v4368_v36  ;;  %v1387_v10 = vld [vmem:[%s7798_s28 + $0x98] sm:$0x1]  ;;  %v4411_v43 = vor.u32 %v4410_v32, %v4407_v31  ;;  %v5969_v48 = vrot.slane %v1388_v29, 9  ;;  %v1541_v49 = vrot.slane %v1389_v35, 5  ;;  %v1394_v31 = vld [vmem:[%s7798_s28 + $0xb4] sm:$0xe] }
  0xd5   : > { %7113 = vmatmul.mubr.bf16.vlgmr.msra.gmra.mrb[0].mxu0 %v6413_v39  ;;  %7192 = vmatprep.subr.bf16.mxu1 %v8425_v60  ;;  %v4397_v14 = vor.u32 %v4396_v3, %v4392_v2  ;;  %v1537_v21 = vrot.slane %v1387_v10, 5  ;;  %v4424_v39 = vshll.u32 %v6362_v22, 16  ;;  %v7609_v2 = vld [vmem:[%s8897_s1 + $0x228] sm:$0xff]  }
  0xd6   : > { %7145 = vmatpush3.bf16.msra.mxu0 %v8277_v56  ;;  %v4374_v56 = vrot.slane %v4373_v51, 4  ;;  %v6364_v51 = vld [vmem:[%s7798_s28 + $0x58] sm:$0xf]  ;;  %v4412_v52 = vrot.slane %v4411_v43, 4  ;;  %v1542_v58 = vsel %vm7921_vm5, %v5969_v48, %v1541_v49  ;;  %v1543_v59 = vrot.slane %v1541_v49, 4 }
  0xd7   : > { %6889 = vmatmul.mubr.bf16.gmra.mrb[16].mxu1 %v5997_v5  ;;  %7146 = vmatprep.subr.bf16.mxu0 %v7599_v41  ;;  %v1385_v5 = vld [vmem:[%s7798_s28 + $0x90] sm:$0xe]  ;;  %v4398_v24 = vrot.slane %v4397_v14, 4  ;;  %v1538_v37 = vsel %vm7921_vm5, %v1536_v26, %v1537_v21  ;;  %v4426_v46 = vrot.slane %v4424_v39, 5  ;;  %v6367_v21 = vld [vmem:[%s7798_s28 + $0x64] sm:$0xf] }
  0xd8   : > { %6892 = vmatprep.mubr.bf16.mxu1 %v5998_v40  ;;  %v4379_v6 = vsel %vm7821_vm2, %v4374_v56, %v4378_v44  ;;  %v5968_v11 = vrot.slane %v1385_v5, 9  ;;  %v1390_v40 = vld [vmem:[%s7798_s28 + $0xa4] sm:$0x1]  ;;  %v6363_v44 = vld [vmem:[%s7798_s28 + $0x54] sm:$0xf]  ;;  %v4442_v56 = vshrl.u32 %v6364_v51, 16  ;;  %v4417_v62 = vsel %vm7821_vm2, %v4412_v52, %v4416_v38 }
  0xd9   : > { %v6414_v13 = vcombine.low %v4369_v61, %v4379_v6  ;;  %v4403_v36 = vsel %vm7821_vm2, %v4398_v24, %v4402_v15  ;;  %v1544_v50 = vrot.slane %v1390_v40, 5  ;;  %v4429_v55 = vshrl.u32 %v6363_v44, 16  ;;  %v7612_v14 = vld [vmem:[%s8897_s1 + $0x230] sm:$0xff]   ;;  %v7615_v48 = vld [vmem:[%s8897_s1 + $0x238] sm:$0xff]  }
  0xda   : > { %7147 = vmatpush3.bf16.msra.mxu0 %v7599_v41  ;;  %v1535_v25 = vsel %vm7921_vm5, %v5968_v11, %v1534_v16  ;;  %v6415_v27 = vcombine.low %v4393_v30, %v4403_v36  ;;  %v4420_v41 = vrot.slane %v4418_v34, 4  ;;  %v4432_v57 = vshll.u32 %v6363_v44, 16  ;;  %v1392_v11 = vld [vmem:[%s7798_s28 + $0xac] sm:$0xf] }
  0xdb   : > { %7148 = vmatprep.subr.bf16.mxu0 %v7601_v0  ;;  %7116 = vmatprep.mubr.bf16.mxu0 %v6414_v13  ;;  %v6000_v42 = vcombine.low %v1535_v25, %v1538_v37  ;;  %v4438_v61 = vshll.u32 %v6364_v51, 16  ;;  %v1545_v3 = vsel %vm7921_vm5, %v1543_v59, %v1544_v50  ;;  %v4444_v5 = vrot.slane %v4442_v56, 4  ;;  %v1395_v37 = vld [vmem:[%s7798_s28 + $0xb8] sm:$0xf] }
  0xdc   : > { %v4421_v53 = vor.u32 %v4420_v41, %v4416_v38  ;;  %v4434_v1 = vrot.slane %v4432_v57, 5  ;;  %v4448_v6 = vshll.u32 %v6365_v54, 16  ;;  %v6001_v9 = vcombine.low %v1542_v58, %v1545_v3  ;;  %v6371_v57 = vld [vmem:[%s7798_s28 + $0x74] sm:$0x1] }
  0xdd   : > { %7117 = vmatmul.mubr.bf16.gmra.mrb[4].mxu0 %v6415_v27  ;;  %v4440_v18 = vrot.slane %v4438_v61, 5  ;;  %v1548_v19 = vrot.slane %v1392_v11, 5  ;;  %v4453_v24 = vshrl.u32 %v6366_v20, 16  ;;  %v4456_v25 = vshll.u32 %v6366_v20, 16 }
  0xde   : > { %7149 = vmatpush3.bf16.msra.mxu0 %v7601_v0  ;;  %v4422_v63 = vrot.slane %v4421_v53, 4  ;;  %v4431_v0 = vrot.slane %v4429_v55, 4  ;;  %v4450_v17 = vrot.slane %v4448_v6, 5  ;;  %v4462_v30 = vshll.u32 %v6367_v21, 16  ;;  %v6370_v53 = vld [vmem:[%s7798_s28 + $0x70] sm:$0xf] }
  0xdf   : > { %6893 = vmatmul.mubr.bf16.gmra.mrb[20].mxu1 %v5999_v7  ;;  %7150 = vmatprep.subr.bf16.mxu0 %v7603_v12  ;;  %v1391_v7 = vld [vmem:[%s7798_s28 + $0xa8] sm:$0xe]  ;;  %v4445_v16 = vor.u32 %v4444_v5, %v4440_v18  ;;  %v1550_v29 = vrot.slane %v1548_v19, 4  ;;  %v4455_v34 = vrot.slane %v4453_v24, 4  ;;  %v4458_v35 = vrot.slane %v4456_v25, 5 }
  0xe0   : > { %6896 = vmatprep.mubr.bf16.mxu1 %v6000_v42  ;;  %v4427_v8 = vsel %vm7821_vm2, %v4422_v63, %v4426_v46  ;;  %v4435_v10 = vor.u32 %v4434_v1, %v4431_v0  ;;  %v5970_v13 = vrot.slane %v1391_v7, 9  ;;  %v4466_v36 = vshrl.u32 %v6367_v21, 16  ;;  %v1396_v42 = vld [vmem:[%s7798_s28 + $0xbc] sm:$0x1]  ;;  %v6369_v46 = vld [vmem:[%s7798_s28 + $0x6c] sm:$0xf] }
  0xe1   : > { %v6416_v15 = vcombine.low %v4417_v62, %v4427_v8  ;;  %v4446_v26 = vrot.slane %v4445_v16, 4  ;;  %v4464_v40 = vrot.slane %v4462_v30, 5  ;;  %v4472_v27 = vshll.u32 %v6368_v23, 16  ;;  %v7604_v8 = vld [vmem:[%s7798_s28 + $0xc] sm:$0xff]  }
  0xe2   : > { %7151 = vmatpush3.bf16.msra.mxu0 %v7603_v12  ;;  %v1393_v12 = vld [vmem:[%s7798_s28 + $0xb0] sm:$0x1]  ;;  %v4436_v22 = vrot.slane %v4435_v10, 4  ;;  %v1549_v28 = vsel %vm7921_vm5, %v5970_v13, %v1548_v19  ;;  %v4459_v44 = vor.u32 %v4458_v35, %v4455_v34  ;;  %v5971_v50 = vrot.slane %v1394_v31, 9  ;;  %v6373_v13 = vld [vmem:[%s7798_s28 + $0x7c] sm:$0xf] }
  0xe3   : > { %7152 = vmatprep.subr.bf16.mxu0 %v7606_v45  ;;  %v1551_v47 = vrot.slane %v1393_v12, 5  ;;  %7120 = vmatprep.mubr.bf16.mxu0 %v6416_v15  ;;  %v4451_v38 = vsel %vm7821_vm2, %v4446_v26, %v4450_v17  ;;  %v4474_v49 = vrot.slane %v4472_v27, 5  ;;  %v1555_v51 = vrot.slane %v1395_v37, 5  ;;  %v6372_v12 = vld [vmem:[%s7798_s28 + $0x78] sm:$0xf] }
  0xe4   : > { %v4441_v32 = vsel %vm7821_vm2, %v4436_v22, %v4440_v18  ;;  %v1558_v52 = vrot.slane %v1396_v42, 5  ;;  %v4460_v54 = vrot.slane %v4459_v44, 4  ;;  %v4477_v58 = vshrl.u32 %v6369_v46, 16  ;;  %v6374_v17 = vld [vmem:[%s7798_s28 + $0x80] sm:$0x1] }
  0xe5   : > { %v1552_v39 = vsel %vm7921_vm5, %v1550_v29, %v1551_v47  ;;  %v6417_v43 = vcombine.low %v4441_v32, %v4451_v38  ;;  %v4480_v59 = vshll.u32 %v6369_v46, 16  ;;  %v1556_v61 = vsel %vm7921_vm5, %v5971_v50, %v1555_v51  ;;  %v6375_v26 = vld [vmem:[%s7798_s28 + $0x84] sm:$0xf]  ;;  %v6376_v32 = vld [vmem:[%s7798_s28 + $0x88] sm:$0xf] }
  0xe6   : > { %7153 = vmatpush3.bf16.msra.mxu0 %v7606_v45  ;;  %v6002_v41 = vcombine.low %v1549_v28, %v1552_v39  ;;  %v4468_v45 = vrot.slane %v4466_v36, 4  ;;  %v1557_v56 = vrot.slane %v1555_v51, 4  ;;  %v4486_v62 = vshll.u32 %v6370_v53, 16  ;;  %v7605_v36 = vld [vmem:[%s7798_s28 + $0x18] sm:$0xff]   ;;  %v6377_v37 = vld [vmem:[%s7798_s28 + $0x8c] sm:$0x1] }
  0xe7   : > { %6897 = vmatmul.mubr.bf16.gmra.mrb[24].mxu1 %v6001_v9  ;;  %7154 = vmatprep.subr.bf16.mxu0 %v7609_v2  ;;  %v4490_v63 = vshrl.u32 %v6370_v53, 16  ;;  %v4465_v0 = vsel %vm7821_vm2, %v4460_v54, %v4464_v40  ;;  %v4482_v3 = vrot.slane %v4480_v59, 5  ;;  %v4496_v7 = vshll.u32 %v6371_v57, 16  ;;  %v6379_v57 = vld [vmem:[%s7798_s28 + $0x94] sm:$0xf] }
  0xe8   : > { %7121 = vmatmul.mubr.bf16.gmra.mrb[8].mxu0 %v6417_v43  ;;  %6900 = vmatprep.mubr.bf16.mxu1 %v6002_v41  ;;  %v4469_v55 = vor.u32 %v4468_v45, %v4464_v40  ;;  %v1559_v18 = vsel %vm7921_vm5, %v1557_v56, %v1558_v52  ;;  %v4488_v5 = vrot.slane %v4486_v62, 5  ;;  %v4501_v19 = vshrl.u32 %v6372_v12, 16  ;;  %v7607_v41 = vld [vmem:[%s7798_s28 + $0x24] sm:$0xff]  }
  0xe9   : > { %v4492_v6 = vrot.slane %v4490_v63, 4  ;;  %v6003_v10 = vcombine.low %v1556_v61, %v1559_v18  ;;  %v4498_v16 = vrot.slane %v4496_v7, 5  ;;  %v4504_v21 = vshll.u32 %v6372_v12, 16  ;;  %v6380_v61 = vld [vmem:[%s7798_s28 + $0x98] sm:$0x1] }
  0xea   : > { %7155 = vmatpush3.bf16.msra.mxu0 %v7609_v2  ;;  %v4470_v1 = vrot.slane %v4469_v55, 4  ;;  %v4479_v2 = vrot.slane %v4477_v58, 4  ;;  %v4510_v22 = vshll.u32 %v6373_v13, 16  ;;  %v4514_v47 = vshrl.u32 %v6373_v13, 16  ;;  %v6378_v55 = vld [vmem:[%s7798_s28 + $0x90] sm:$0xf] }
  0xeb   : > { %7156 = vmatprep.subr.bf16.mxu0 %v7612_v14  ;;  %v4493_v15 = vor.u32 %v4492_v6, %v4488_v5  ;;  %v4503_v24 = vrot.slane %v4501_v19, 4  ;;  %v4520_v25 = vshll.u32 %v6374_v17, 16  ;;  %v4506_v29 = vrot.slane %v4504_v21, 5  ;;  %v6383_v12 = vld [vmem:[%s7798_s28 + $0xa4] sm:$0x1]  ;;  %v7608_v17 = vld [vmem:[%s7798_s28 + $0x30] sm:$0xff]  }
  0xec   : > { %v4475_v9 = vsel %vm7821_vm2, %v4470_v1, %v4474_v49  ;;  %v4483_v11 = vor.u32 %v4482_v3, %v4479_v2  ;;  %v4512_v30 = vrot.slane %v4510_v22, 5  ;;  %v4516_v31 = vrot.slane %v4514_v47, 4  ;;  %v6381_v3 = vld [vmem:[%s7798_s28 + $0x9c] sm:$0xf] }
  0xed   : > { %v4494_v23 = vrot.slane %v4493_v15, 4  ;;  %v4522_v35 = vrot.slane %v4520_v25, 5  ;;  %v4525_v38 = vshrl.u32 %v6375_v26, 16  ;;  %v4528_v39 = vshll.u32 %v6375_v26, 16 }
  0xee   : > { %7157 = vmatpush3.bf16.msra.mxu0 %v7612_v14  ;;  %v6418_v14 = vcombine.low %v4465_v0, %v4475_v9  ;;  %v4484_v20 = vrot.slane %v4483_v11, 4  ;;  %v4507_v27 = vor.u32 %v4506_v29, %v4503_v24  ;;  %v4517_v42 = vor.u32 %v4516_v31, %v4512_v30  ;;  %v6382_v9 = vld [vmem:[%s7798_s28 + $0xa0] sm:$0xf]  ;;  %v7626_v29 = vld [vmem:[%s8897_s1 + $0x110] sm:$0xff]  }
  0xef   : > { %7158 = vmatprep.subr.bf16.mxu0 %v7615_v48  ;;  %6901 = vmatmul.mubr.bf16.gmra.mrb[28].mxu1 %v6003_v10  ;;  %v4499_v34 = vsel %vm7821_vm2, %v4494_v23, %v4498_v16  ;;  %v4534_v43 = vshll.u32 %v6376_v32, 16  ;;  %v4527_v44 = vrot.slane %v4525_v38, 4  ;;  %v4530_v45 = vrot.slane %v4528_v39, 5  ;;  %v7610_v23 = vld [vmem:[%s7798_s28 + $0x3c] sm:$0xff]   ;;  %v6385_v38 = vld [vmem:[%s7798_s28 + $0xac] sm:$0xf] }
  0xf0   : > { %7124 = vmatprep.mubr.bf16.mxu0 %v6418_v14  ;;  %6920 = vmatprep.mubr.bf16.mxu1 %v7604_v8  ;;  %v4489_v28 = vsel %vm7821_vm2, %v4484_v20, %v4488_v5  ;;  %v4538_v46 = vshrl.u32 %v6376_v32, 16  ;;  %v4508_v49 = vrot.slane %v4507_v27, 4  ;;  %v4518_v50 = vrot.slane %v4517_v42, 4  ;;  %v7625_v8 = vld [vmem:[%s8897_s1 + $0x108] sm:$0xff]   ;;  %v6386_v39 = vld [vmem:[%s7798_s28 + $0xb0] sm:$0x1] }
  0xf1   : > { %v6419_v40 = vcombine.low %v4489_v28, %v4499_v34  ;;  %v4536_v51 = vrot.slane %v4534_v43, 5  ;;  %v4531_v52 = vor.u32 %v4530_v45, %v4527_v44  ;;  %v4549_v56 = vshrl.u32 %v6378_v55, 16  ;;  %v6384_v34 = vld [vmem:[%s7798_s28 + $0xa8] sm:$0xf] }
  0xf2   : > { %7159 = vmatpush3.bf16.msra.mxu0 %v7615_v48  ;;  %v4544_v48 = vshll.u32 %v6377_v37, 16  ;;  %v4540_v53 = vrot.slane %v4538_v46, 4  ;;  %v4513_v58 = vsel %vm7821_vm2, %v4508_v49, %v4512_v30  ;;  %v4523_v59 = vsel %vm7821_vm2, %v4518_v50, %v4522_v35  ;;  %v7611_v49 = vld [vmem:[%s7798_s28 + $0x48] sm:$0xff]   ;;  %v7627_v50 = vld [vmem:[%s8897_s1 + $0x118] sm:$0xff]  }
  0xf3   : > { %7125 = vmatmul.mubr.bf16.gmra.mrb[12].mxu0 %v6419_v40  ;;  %v4552_v62 = vshll.u32 %v6378_v55, 16  ;;  %v6420_v63 = vcombine.low %v4513_v58, %v4523_v59  ;;  %v4532_v0 = vrot.slane %v4531_v52, 4  ;;  %v4558_v2 = vshll.u32 %v6379_v57, 16  ;;  %v6387_v55 = vld [vmem:[%s7798_s28 + $0xb4] sm:$0xf] }
  0xf4   : > { %v4546_v54 = vrot.slane %v4544_v48, 5  ;;  %v4541_v1 = vor.u32 %v4540_v53, %v4536_v51  ;;  %v4551_v18 = vrot.slane %v4549_v56, 4  ;;  %v4562_v6 = vshrl.u32 %v6379_v57, 16  ;;  %v7613_v57 = vld [vmem:[%s7798_s28 + $0x54] sm:$0xff]  }
  0xf5   : > { %v4554_v5 = vrot.slane %v4552_v62, 5  ;;  %v4568_v7 = vshll.u32 %v6380_v61, 16  ;;  %7128 = vmatprep.mubr.bf16.mxu0 %v6420_v63  ;;  %v4537_v10 = vsel %vm7821_vm2, %v4532_v0, %v4536_v51  ;;  %v4560_v11 = vrot.slane %v4558_v2, 5  ;;  %v6388_v56 = vld [vmem:[%s7798_s28 + $0xb8] sm:$0xf] }
  0xf6   : > { %v4573_v13 = vshrl.u32 %v6381_v3, 16  ;;  %v4564_v15 = vrot.slane %v4562_v6, 4  ;;  %v4576_v19 = vshll.u32 %v6381_v3, 16  ;;  %v4582_v22 = vshll.u32 %v6382_v9, 16  ;;  %v6389_v62 = vld [vmem:[%s7798_s28 + $0xbc] sm:$0x1] }
  0xf7   : > { %6921 = vmatmul.mubr.bf16.vlgmr.msra.gmra.mrb[0].mxu1 %v7605_v36  ;;  %v4555_v14 = vor.u32 %v4554_v5, %v4551_v18  ;;  %v4570_v16 = vrot.slane %v4568_v7, 5  ;;  %v4586_v47 = vshrl.u32 %v6382_v9, 16  ;;  %v4592_v32 = vshll.u32 %v6383_v12, 16  ;;  %v7628_v7 = vld [vmem:[%s8897_s1 + $0x120] sm:$0xff]  }
  0xf8   : > { %7200 = vmatpush3.bf16.msra.mxu1 %v8425_v60  ;;  %6924 = vmatprep.mubr.bf16.mxu1 %v7607_v41  ;;  %v4542_v60 = vrot.slane %v4541_v1, 4  ;;  %v4575_v21 = vrot.slane %v4573_v13, 4  ;;  %v4565_v26 = vor.u32 %v4564_v15, %v4560_v11  ;;  %v4578_v28 = vrot.slane %v4576_v19, 5  ;;  %v6391_v15 = vld [vmem:[%s7798_s28 + $0xc4] sm:$0xf] }
  0xf9   : > { %7193 = vmatprep.subr.bf16.mxu1 %v7625_v8  ;;  %v4556_v25 = vrot.slane %v4555_v14, 4  ;;  %v4584_v30 = vrot.slane %v4582_v22, 5  ;;  %v4588_v31 = vrot.slane %v4586_v47, 4  ;;  %v4597_v40 = vshrl.u32 %v6384_v34, 16 }
  0xfa   : > { %v4547_v20 = vsel %vm7821_vm2, %v4542_v60, %v4546_v54  ;;  %v4566_v36 = vrot.slane %v4565_v26, 4  ;;  %v4579_v37 = vor.u32 %v4578_v28, %v4575_v21  ;;  %v4594_v42 = vrot.slane %v4592_v32, 5  ;;  %v6392_v21 = vld [vmem:[%s7798_s28 + $0xc8] sm:$0x1]  ;;  %v7614_v26 = vld [vmem:[%s7798_s28 + $0x60] sm:$0xff]  }
  0xfb   : > { %v6421_v24 = vcombine.low %v4537_v10, %v4547_v20  ;;  %v4561_v35 = vsel %vm7821_vm2, %v4556_v25, %v4560_v11  ;;  %v4589_v27 = vor.u32 %v4588_v31, %v4584_v30  ;;  %v4600_v43 = vshll.u32 %v6384_v34, 16  ;;  %v6390_v11 = vld [vmem:[%s7798_s28 + $0xc0] sm:$0xf]  ;;  %v7629_v28 = vld [vmem:[%s8897_s1 + $0x128] sm:$0xff]  }
  0xfc   : > { %7201 = vmatpush3.bf16.msra.mxu1 %v7625_v8  ;;  %v4606_v41 = vshll.u32 %v6385_v38, 16  ;;  %v4571_v44 = vsel %vm7821_vm2, %v4566_v36, %v4570_v16  ;;  %v4580_v45 = vrot.slane %v4579_v37, 4  ;;  %v4599_v46 = vrot.slane %v4597_v40, 4  ;;  %v6393_v34 = vld [vmem:[%s7798_s28 + $0xcc] sm:$0xf] }
  0xfd   : > { %7194 = vmatprep.subr.bf16.mxu1 %v7626_v29  ;;  %7129 = vmatmul.mubr.bf16.gmra.mrb[16].mxu0 %v6421_v24  ;;  %v4610_v48 = vshrl.u32 %v6385_v38, 16  ;;  %v6422_v51 = vcombine.low %v4561_v35, %v4571_v44  ;;  %v4590_v52 = vrot.slane %v4589_v27, 4  ;;  %v4602_v53 = vrot.slane %v4600_v43, 5  ;;  %v6394_v35 = vld [vmem:[%s7798_s28 + $0xd0] sm:$0xf] }
  0xfe   : > { %v4608_v54 = vrot.slane %v4606_v41, 5  ;;  %v4585_v58 = vsel %vm7821_vm2, %v4580_v45, %v4584_v30  ;;  %v4616_v61 = vshll.u32 %v6386_v39, 16  ;;  %v4621_v1 = vshrl.u32 %v6387_v55, 16  ;;  %v7616_v36 = vld [vmem:[%s7798_s28 + $0x6c] sm:$0xff]   ;;  %v6395_v40 = vld [vmem:[%s7798_s28 + $0xd4] sm:$0x1] }
  0xff   : > { %6925 = vmatmul.mubr.bf16.gmra.mrb[4].mxu1 %v7608_v17  ;;  %v4612_v59 = vrot.slane %v4610_v48, 4  ;;  %7132 = vmatprep.mubr.bf16.mxu0 %v6422_v51  ;;  %v4595_v63 = vsel %vm7821_vm2, %v4590_v52, %v4594_v42  ;;  %v4603_v0 = vor.u32 %v4602_v53, %v4599_v46  ;;  %v4624_v2 = vshll.u32 %v6387_v55, 16 }
 0x100   : > { %6928 = vmatprep.mubr.bf16.mxu1 %v7610_v23  ;;  %7202 = vmatpush3.bf16.msra.mxu1 %v7626_v29  ;;  %v6423_v3 = vcombine.low %v4585_v58, %v4595_v63  ;;  %v4618_v5 = vrot.slane %v4616_v61, 5  ;;  %v4630_v6 = vshll.u32 %v6388_v56, 16  ;;  %v4623_v9 = vrot.slane %v4621_v1, 4  ;;  %v6436_v61 = vld [vmem:[%s7798_s28 + $0x18] sm:$0xe] }
 0x101   : > { %7195 = vmatprep.subr.bf16.mxu1 %v7627_v50  ;;  %v4613_v18 = vor.u32 %v4612_v59, %v4608_v54  ;;  %v4604_v8 = vrot.slane %v4603_v0, 4  ;;  %v4626_v10 = vrot.slane %v4624_v2, 5  ;;  %v4634_v60 = vshrl.u32 %v6388_v56, 16  ;;  %v6437_v56 = vld [vmem:[%s7798_s28 + $0x1c] sm:$0xf] }
 0x102   : > { %v4632_v13 = vrot.slane %v4630_v6, 5  ;;  %v4640_v14 = vshll.u32 %v6389_v62, 16  ;;  %v4645_v16 = vshrl.u32 %v6390_v11, 16  ;;  %v4648_v22 = vshll.u32 %v6390_v11, 16  ;;  %v6438_v0 = vld [vmem:[%s7798_s28 + $0x20] sm:$0x1] }
 0x103   : > { %v4614_v12 = vrot.slane %v4613_v18, 4  ;;  %v4609_v17 = vsel %vm7821_vm2, %v4604_v8, %v4608_v54  ;;  %v4627_v19 = vor.u32 %v4626_v10, %v4623_v9  ;;  %v4636_v20 = vrot.slane %v4634_v60, 4  ;;  %v7617_v6 = vld [vmem:[%s7798_s28 + $0x78] sm:$0xff]   ;;  %v6439_v60 = vld [vmem:[%s7798_s28 + $0x24] sm:$0xe] }
 0x104   : > { %7203 = vmatpush3.bf16.msra.mxu1 %v7627_v50  ;;  %v4642_v23 = vrot.slane %v4640_v14, 5  ;;  %v4647_v24 = vrot.slane %v4645_v16, 4  ;;  %v4654_v25 = vshll.u32 %v6391_v15, 16  ;;  %v4650_v32 = vrot.slane %v4648_v22, 5  ;;  %v7630_v50 = vld [vmem:[%s8897_s1 + $0x130] sm:$0xff]   ;;  %v7618_v16 = vld [vmem:[%s7798_s28 + $0x84] sm:$0xff]  }
 0x105   : > { %7196 = vmatprep.subr.bf16.mxu1 %v7628_v7  ;;  %7133 = vmatmul.mubr.bf16.gmra.mrb[20].mxu0 %v6423_v3  ;;  %v4619_v47 = vsel %vm7821_vm2, %v4614_v12, %v4618_v5  ;;  %v4628_v30 = vrot.slane %v4627_v19, 4  ;;  %v4637_v31 = vor.u32 %v4636_v20, %v4632_v13  ;;  %v4658_v38 = vshrl.u32 %v6391_v15, 16  ;;  %v6440_v11 = vld [vmem:[%s7798_s28 + $0x28] sm:$0xf]  ;;  %v6441_v15 = vld [vmem:[%s7798_s28 + $0x2c] sm:$0x1] }
 0x106   : > { %v6424_v29 = vcombine.low %v4609_v17, %v4619_v47  ;;  %v4656_v37 = vrot.slane %v4654_v25, 5  ;;  %v4664_v39 = vshll.u32 %v6392_v21, 16  ;;  %v4669_v27 = vshrl.u32 %v6393_v34, 16  ;;  %v6442_v22 = vld [vmem:[%s7798_s28 + $0x30] sm:$0xe] }
 0x107   : > { %6929 = vmatmul.mubr.bf16.gmra.mrb[8].mxu1 %v7611_v49  ;;  %v4633_v42 = vsel %vm7821_vm2, %v4628_v30, %v4632_v13  ;;  %v4638_v43 = vrot.slane %v4637_v31, 4  ;;  %v4651_v41 = vor.u32 %v4650_v32, %v4647_v24  ;;  %v4672_v44 = vshll.u32 %v6393_v34, 16  ;;  %v6443_v25 = vld [vmem:[%s7798_s28 + $0x34] sm:$0xf] }
 0x108   : > { %6932 = vmatprep.mubr.bf16.mxu1 %v7613_v57  ;;  %7204 = vmatpush3.bf16.msra.mxu1 %v7628_v7  ;;  %v4660_v45 = vrot.slane %v4658_v38, 4  ;;  %v4666_v46 = vrot.slane %v4664_v39, 5  ;;  %v4671_v48 = vrot.slane %v4669_v27, 4  ;;  %v4678_v49 = vshll.u32 %v6394_v35, 16  ;;  %v7631_v7 = vld [vmem:[%s8897_s1 + $0x138] sm:$0xff]  }
 0x109   : > { %7197 = vmatprep.subr.bf16.mxu1 %v7629_v28  ;;  %7136 = vmatprep.mubr.bf16.mxu0 %v6424_v29  ;;  %v4643_v51 = vsel %vm7821_vm2, %v4638_v43, %v4642_v23  ;;  %v4652_v52 = vrot.slane %v4651_v41, 4  ;;  %v4674_v53 = vrot.slane %v4672_v44, 5  ;;  %v4682_v54 = vshrl.u32 %v6394_v35, 16  ;;  %v6447_v38 = vld [vmem:[%s7798_s28 + $0x44] sm:$0x1] }
 0x10a   : > { %v6425_v55 = vcombine.low %v4633_v42, %v4643_v51  ;;  %v4661_v57 = vor.u32 %v4660_v45, %v4656_v37  ;;  %v4680_v58 = vrot.slane %v4678_v49, 5  ;;  %v4688_v59 = vshll.u32 %v6395_v40, 16  ;;  %v7619_v42 = vld [vmem:[%s7798_s28 + $0x90] sm:$0xff]   ;;  %v6448_v41 = vld [vmem:[%s7798_s28 + $0x48] sm:$0xe] }
 0x10b   : > { %v4675_v62 = vor.u32 %v4674_v53, %v4671_v48  ;;  %v4684_v63 = vrot.slane %v4682_v54, 4  ;;  %v6484_v1 = vrot.slane %v6436_v61, 9  ;;  %v4657_v2 = vsel %vm7821_vm2, %v4652_v52, %v4656_v37  ;;  %v6446_v37 = vld [vmem:[%s7798_s28 + $0x40] sm:$0xf]  ;;  %v6449_v49 = vld [vmem:[%s7798_s28 + $0x4c] sm:$0xf] }
 0x10c   : > { %7205 = vmatpush3.bf16.msra.mxu1 %v7629_v28  ;;  %v4662_v3 = vrot.slane %v4661_v57, 4  ;;  %v5176_v18 = vrot.slane %v6437_v56, 5  ;;  %v5179_v5 = vrot.slane %v6438_v0, 5  ;;  %v4690_v10 = vrot.slane %v4688_v59, 5  ;;  %v7620_v48 = vld [vmem:[%s7798_s28 + $0x9c] sm:$0xff]  }
 0x10d   : > { %7198 = vmatprep.subr.bf16.mxu1 %v7630_v50  ;;  %7137 = vmatmul.mubr.bf16.gmra.mrb[24].mxu0 %v6425_v55  ;;  %v4676_v8 = vrot.slane %v4675_v62, 4  ;;  %v4685_v9 = vor.u32 %v4684_v63, %v4680_v58  ;;  %v5183_v21 = vrot.slane %v6440_v11, 5  ;;  %v6485_v23 = vrot.slane %v6439_v60, 9  ;;  %v6451_v57 = vld [vmem:[%s7798_s28 + $0x54] sm:$0xe] }
 0x10e   : > { %v4667_v12 = vsel %vm7821_vm2, %v4662_v3, %v4666_v46  ;;  %v5177_v13 = vsel %vm7921_vm5, %v6484_v1, %v5176_v18  ;;  %v5178_v14 = vrot.slane %v5176_v18, 4  ;;  %v5186_v24 = vrot.slane %v6441_v15, 5  ;;  %v6453_v59 = vld [vmem:[%s7798_s28 + $0x5c] sm:$0x1]  ;;  %v6454_v18 = vld [vmem:[%s7798_s28 + $0x60] sm:$0xe] }
 0x10f   : > { %6933 = vmatmul.mubr.bf16.gmra.mrb[12].mxu1 %v7614_v26  ;;  %v6426_v17 = vcombine.low %v4657_v2, %v4667_v12  ;;  %v4681_v19 = vsel %vm7821_vm2, %v4676_v8, %v4680_v58  ;;  %v4686_v20 = vrot.slane %v4685_v9, 4  ;;  %v6444_v26 = vld [vmem:[%s7798_s28 + $0x38] sm:$0x1]  ;;  %v5185_v30 = vrot.slane %v5183_v21, 4  ;;  %v6456_v8 = vld [vmem:[%s7798_s28 + $0x68] sm:$0x1] }
 0x110   : > { %6936 = vmatprep.mubr.bf16.mxu1 %v7616_v36  ;;  %7206 = vmatpush3.bf16.msra.mxu1 %v7630_v50  ;;  %v5180_v47 = vsel %vm7921_vm5, %v5178_v14, %v5179_v5  ;;  %v6486_v31 = vrot.slane %v6442_v22, 9  ;;  %v5190_v34 = vrot.slane %v6443_v25, 5  ;;  %v5193_v35 = vrot.slane %v6444_v26, 5  ;;  %v6445_v36 = vld [vmem:[%s7798_s28 + $0x3c] sm:$0xe]  ;;  %v7621_v15 = vld [vmem:[%s7798_s28 + $0xa8] sm:$0xff]  }
 0x111   : > { %7199 = vmatprep.subr.bf16.mxu1 %v7631_v7  ;;  %7140 = vmatprep.mubr.bf16.mxu0 %v6426_v17  ;;  %v4691_v28 = vsel %vm7821_vm2, %v4686_v20, %v4690_v10  ;;  %v6516_v29 = vcombine.low %v5177_v13, %v5180_v47  ;;  %v6487_v39 = vrot.slane %v6445_v36, 9  ;;  %v5197_v40 = vrot.slane %v6446_v37, 5  ;;  %v6450_v50 = vld [vmem:[%s7798_s28 + $0x50] sm:$0x1]  ;;  %v6452_v58 = vld [vmem:[%s7798_s28 + $0x58] sm:$0xf] }
 0x112   : > { %v6427_v32 = vcombine.low %v4681_v19, %v4691_v28  ;;  %v5192_v27 = vrot.slane %v5190_v34, 4  ;;  %v5200_v43 = vrot.slane %v6447_v38, 5  ;;  %v5184_v44 = vsel %vm7921_vm5, %v6485_v23, %v5183_v21  ;;  %v6455_v5 = vld [vmem:[%s7798_s28 + $0x64] sm:$0xf]  ;;  %v6457_v13 = vld [vmem:[%s7798_s28 + $0x6c] sm:$0xe] }
 0x113   : > { %v5187_v45 = vsel %vm7921_vm5, %v5185_v30, %v5186_v24  ;;  %v5199_v46 = vrot.slane %v5197_v40, 4  ;;  %v6488_v51 = vrot.slane %v6448_v41, 9  ;;  %v5191_v52 = vsel %vm7921_vm5, %v6486_v31, %v5190_v34  ;;  %v6458_v19 = vld [vmem:[%s7798_s28 + $0x70] sm:$0xf]  ;;  %v6459_v20 = vld [vmem:[%s7798_s28 + $0x74] sm:$0x1] }
 0x114   : > { %7207 = vmatpush3.bf16.msra.mxu1 %v7631_v7  ;;  %v5194_v53 = vsel %vm7921_vm5, %v5192_v27, %v5193_v35  ;;  %v5204_v54 = vrot.slane %v6449_v49, 5  ;;  %v5207_v55 = vrot.slane %v6450_v50, 5  ;;  %v6517_v61 = vcombine.low %v5184_v44, %v5187_v45  ;;  %v7622_v23 = vld [vmem:[%s7798_s28 + $0xb4] sm:$0xff]   ;;  %v6108_v26 = vld [vmem:[%s7798_s28 + $0x6c] sm:$0xf] }
 0x115   : > { %7141 = vmatmul.mubr.bf16.gmra.mrb[28].mxu0 %v6427_v32  ;;  %v8635_v56 = vsel %vm7921_vm5, %v6487_v39, %v5197_v40  ;;  %v6489_v63 = vrot.slane %v6451_v57, 9  ;;  %v6518_v0 = vcombine.low %v5191_v52, %v5194_v53  ;;  %v8639_v1 = vsel %vm7921_vm5, %v5199_v46, %v5200_v43  ;;  %v6109_v28 = vld [vmem:[%s7798_s28 + $0x70] sm:$0xf]  ;;  %v6110_v31 = vld [vmem:[%s7798_s28 + $0x74] sm:$0x1] }
 0x116   : > { %7160 = vmatprep.mubr.bf16.mxu0 %v6516_v29  ;;  %v5206_v62 = vrot.slane %v5204_v54, 4  ;;  %v5211_v2 = vrot.slane %v6452_v58, 5  ;;  %v5214_v3 = vrot.slane %v6453_v59, 5  ;;  %v6490_v9 = vrot.slane %v6454_v18, 9  ;;  %v6460_v35 = vld [vmem:[%s7798_s28 + $0x78] sm:$0xe] }
 0x117   : > { %6937 = vmatmul.mubr.bf16.gmra.mrb[16].mxu1 %v7617_v6  ;;  %v8645_v6 = vsel %vm7921_vm5, %v6488_v51, %v5204_v54  ;;  %v5218_v10 = vrot.slane %v6455_v5, 5  ;;  %v5221_v12 = vrot.slane %v6456_v8, 5  ;;  %v6519_v14 = vcombine.low %v8635_v56, %v8639_v1  ;;  %v6461_v40 = vld [vmem:[%s7798_s28 + $0x7c] sm:$0xf]  ;;  %v6462_v27 = vld [vmem:[%s7798_s28 + $0x80] sm:$0x1] }
 0x118   : > { %6940 = vmatprep.mubr.bf16.mxu1 %v7618_v16  ;;  %v8649_v7 = vsel %vm7921_vm5, %v5206_v62, %v5207_v55  ;;  %v8654_v60 = vsel %vm7921_vm5, %v6489_v63, %v5211_v2  ;;  %v5213_v11 = vrot.slane %v5211_v2, 4  ;;  %v6491_v21 = vrot.slane %v6457_v13, 9  ;;  %v6111_v45 = vld [vmem:[%s7798_s28 + $0x78] sm:$0xf]  ;;  %v6112_v51 = vld [vmem:[%s7798_s28 + $0x7c] sm:$0xf] }
 0x119   : > { %v8662_v16 = vsel %vm7921_vm5, %v6490_v9, %v5218_v10  ;;  %v5220_v17 = vrot.slane %v5218_v10, 4  ;;  %v6520_v22 = vcombine.low %v8645_v6, %v8649_v7  ;;  %v5225_v24 = vrot.slane %v6458_v19, 5  ;;  %v6113_v57 = vld [vmem:[%s7798_s28 + $0x80] sm:$0x1]  ;;  %v6463_v62 = vld [vmem:[%s7798_s28 + $0x84] sm:$0xe] }
 0x11a   : > { %v8670_v47 = vsel %vm7921_vm5, %v5213_v11, %v5214_v3  ;;  %v5228_v25 = vrot.slane %v6459_v20, 5  ;;  %v2638_v32 = vshrl.u32 %v6108_v26, 16  ;;  %v2641_v34 = vshll.u32 %v6108_v26, 16  ;;  %v6464_v3 = vld [vmem:[%s7798_s28 + $0x88] sm:$0xf]  ;;  %v7623_v9 = vld [vmem:[%s7798_s28 + $0xc0] sm:$0xff]  }
 0x11b   : > { %v6521_v29 = vcombine.low %v8654_v60, %v8670_v47  ;;  %v8679_v30 = vsel %vm7921_vm5, %v5220_v17, %v5221_v12  ;;  %v8687_v37 = vsel %vm7921_vm5, %v6491_v21, %v5225_v24  ;;  %v5227_v38 = vrot.slane %v5225_v24, 4  ;;  %v6465_v8 = vld [vmem:[%s7798_s28 + $0x8c] sm:$0x1]  ;;  %v6115_v21 = vld [vmem:[%s7798_s28 + $0x88] sm:$0xf] }
 0x11c   : > { %v6522_v36 = vcombine.low %v8662_v16, %v8679_v30  ;;  %v2647_v39 = vshll.u32 %v6109_v28, 16  ;;  %v2643_v43 = vrot.slane %v2641_v34, 5  ;;  %v2651_v41 = vshrl.u32 %v6109_v28, 16 }
 0x11d   : > { %7161 = vmatmul.mubr.bf16.vlgmr.msra.gmra.mrb[0].mxu0 %v6517_v61  ;;  %v2657_v44 = vshll.u32 %v6110_v31, 16  ;;  %v8694_v46 = vsel %vm7921_vm5, %v5227_v38, %v5228_v25  ;;  %v6492_v49 = vrot.slane %v6460_v35, 9  ;;  %v5232_v50 = vrot.slane %v6461_v40, 5  ;;  %v6116_v31 = vld [vmem:[%s7798_s28 + $0x8c] sm:$0x1] }
 0x11e   : > { %7164 = vmatprep.mubr.bf16.mxu0 %v6518_v0  ;;  %v6523_v52 = vcombine.low %v8687_v37, %v8694_v46  ;;  %v2653_v54 = vrot.slane %v2651_v41, 4  ;;  %v5235_v61 = vrot.slane %v6462_v27, 5  ;;  %v2662_v56 = vshrl.u32 %v6111_v45, 16  ;;  %v6466_v27 = vld [vmem:[%s7798_s28 + $0x90] sm:$0xe] }
 0x11f   : > { %6941 = vmatmul.mubr.bf16.gmra.mrb[20].mxu1 %v7619_v42  ;;  %v2640_v42 = vrot.slane %v2638_v32, 4  ;;  %v2659_v55 = vrot.slane %v2657_v44, 5  ;;  %v8702_v58 = vsel %vm7921_vm5, %v6492_v49, %v5232_v50  ;;  %v5234_v59 = vrot.slane %v5232_v50, 4 }
 0x120   : > { %6944 = vmatprep.mubr.bf16.mxu1 %v7620_v48  ;;  %v2649_v48 = vrot.slane %v2647_v39, 5  ;;  %v2665_v1 = vshll.u32 %v6111_v45, 16  ;;  %v2671_v2 = vshll.u32 %v6112_v51, 16  ;;  %v2664_v5 = vrot.slane %v2662_v56, 4  ;;  %v6467_v45 = vld [vmem:[%s7798_s28 + $0x94] sm:$0xf] }
 0x121   : > { %v2644_v53 = vor.u32 %v2643_v43, %v2640_v42  ;;  %v8708_v18 = vsel %vm7921_vm5, %v5234_v59, %v5235_v61  ;;  %v2675_v6 = vshrl.u32 %v6112_v51, 16  ;;  %v2681_v7 = vshll.u32 %v6113_v57, 16  ;;  %v6118_v57 = vld [vmem:[%s7798_s28 + $0x94] sm:$0xf] }
 0x122   : > { %v2654_v0 = vor.u32 %v2653_v54, %v2649_v48  ;;  %v6524_v12 = vcombine.low %v8702_v58, %v8708_v18  ;;  %v2667_v13 = vrot.slane %v2665_v1, 5  ;;  %v6493_v20 = vrot.slane %v6463_v62, 9  ;;  %v6117_v54 = vld [vmem:[%s7798_s28 + $0x90] sm:$0xf]  ;;  %v6469_v1 = vld [vmem:[%s7798_s28 + $0x9c] sm:$0xe] }
 0x123   : > { %v2645_v63 = vrot.slane %v2644_v53, 4  ;;  %v2677_v17 = vrot.slane %v2675_v6, 4  ;;  %v2683_v19 = vrot.slane %v2681_v7, 5  ;;  %v5239_v24 = vrot.slane %v6464_v3, 5  ;;  %v6468_v53 = vld [vmem:[%s7798_s28 + $0x98] sm:$0x1] }
 0x124   : > { %v2655_v11 = vrot.slane %v2654_v0, 4  ;;  %v5242_v25 = vrot.slane %v6465_v8, 5  ;;  %v2695_v40 = vshll.u32 %v6115_v21, 16  ;;  %v2699_v44 = vshrl.u32 %v6115_v21, 16  ;;  %v6470_v7 = vld [vmem:[%s7798_s28 + $0xa0] sm:$0xf] }
 0x125   : > { %7165 = vmatmul.mubr.bf16.gmra.mrb[4].mxu0 %v6519_v14  ;;  %v2650_v10 = vsel %vm7821_vm2, %v2645_v63, %v2649_v48  ;;  %v6114_v14 = vld [vmem:[%s7798_s28 + $0x84] sm:$0xf]  ;;  %v8723_v38 = vsel %vm7921_vm5, %v6493_v20, %v5239_v24  ;;  %v5241_v39 = vrot.slane %v5239_v24, 4  ;;  %v2705_v51 = vshll.u32 %v6116_v31, 16  ;;  %v6119_v63 = vld [vmem:[%s7798_s28 + $0x98] sm:$0x1] }
 0x126   : > { %7168 = vmatprep.mubr.bf16.mxu0 %v6520_v22  ;;  %v2660_v22 = vsel %vm7821_vm2, %v2655_v11, %v2659_v55  ;;  %v2686_v32 = vshrl.u32 %v6114_v14, 16  ;;  %v2689_v34 = vshll.u32 %v6114_v14, 16  ;;  %v2697_v50 = vrot.slane %v2695_v40, 5  ;;  %v6120_v20 = vld [vmem:[%s7798_s28 + $0x9c] sm:$0xf] }
 0x127   : > { %6945 = vmatmul.mubr.bf16.gmra.mrb[24].mxu1 %v7621_v15  ;;  %v2673_v15 = vrot.slane %v2671_v2, 5  ;;  %v6156_v26 = vcombine.low %v2650_v10, %v2660_v22  ;;  %v8734_v49 = vsel %vm7921_vm5, %v5241_v39, %v5242_v25  ;;  %v2701_v55 = vrot.slane %v2699_v44, 4  ;;  %v6121_v25 = vld [vmem:[%s7798_s28 + $0xa0] sm:$0xf]  ;;  %v6122_v39 = vld [vmem:[%s7798_s28 + $0xa4] sm:$0x1] }
 0x128   : > { %6948 = vmatprep.mubr.bf16.mxu1 %v7622_v23  ;;  %v2668_v23 = vor.u32 %v2667_v13, %v2664_v5  ;;  %v2688_v43 = vrot.slane %v2686_v32, 4  ;;  %v2691_v41 = vrot.slane %v2689_v34, 5  ;;  %v6525_v47 = vcombine.low %v8723_v38, %v8734_v49  ;;  %v6471_v13 = vld [vmem:[%s7798_s28 + $0xa4] sm:$0x1]  ;;  %v6473_v44 = vld [vmem:[%s7798_s28 + $0xac] sm:$0xf] }
 0x129   : > { %v2678_v28 = vor.u32 %v2677_v17, %v2673_v15  ;;  %v2707_v61 = vrot.slane %v2705_v51, 5  ;;  %v6494_v56 = vrot.slane %v6466_v27, 9  ;;  %v5246_v62 = vrot.slane %v6467_v45, 5 }
 0x12a   : > { %v2669_v35 = vrot.slane %v2668_v23, 4  ;;  %v2702_v16 = vor.u32 %v2701_v55, %v2697_v50  ;;  %v5249_v30 = vrot.slane %v6468_v53, 5  ;;  %v2713_v5 = vshll.u32 %v6117_v54, 16  ;;  %v6474_v53 = vld [vmem:[%s7798_s28 + $0xb0] sm:$0x1] }
 0x12b   : > { %v2679_v42 = vrot.slane %v2678_v28, 4  ;;  %v8750_v2 = vsel %vm7921_vm5, %v6494_v56, %v5246_v62  ;;  %v5248_v3 = vrot.slane %v5246_v62, 4  ;;  %v2719_v6 = vshll.u32 %v6118_v57, 16 }
 0x12c   : > { %v2674_v48 = vsel %vm7821_vm2, %v2669_v35, %v2673_v15  ;;  %v2723_v11 = vshrl.u32 %v6118_v57, 16  ;;  %v2715_v15 = vrot.slane %v2713_v5, 5  ;;  %v6495_v24 = vrot.slane %v6469_v1, 9 }
 0x12d   : > { %7169 = vmatmul.mubr.bf16.gmra.mrb[8].mxu0 %v6521_v29  ;;  %v2684_v60 = vsel %vm7821_vm2, %v2679_v42, %v2683_v19  ;;  %v2692_v29 = vor.u32 %v2691_v41, %v2688_v43  ;;  %v5250_v14 = vsel %vm7921_vm5, %v5248_v3, %v5249_v30  ;;  %v2721_v17 = vrot.slane %v2719_v6, 5  ;;  %v6472_v43 = vld [vmem:[%s7798_s28 + $0xa8] sm:$0xe] }
 0x12e   : > { %7172 = vmatprep.mubr.bf16.mxu0 %v6522_v36  ;;  %v6157_v59 = vcombine.low %v2674_v48, %v2684_v60  ;;  %v2710_v36 = vshrl.u32 %v6117_v54, 16  ;;  %v2729_v19 = vshll.u32 %v6119_v63, 16  ;;  %v6526_v22 = vcombine.low %v8750_v2, %v5250_v14  ;;  %v6123_v54 = vld [vmem:[%s7798_s28 + $0xa8] sm:$0xf]  ;;  %v6475_v2 = vld [vmem:[%s7798_s28 + $0xb4] sm:$0xe] }
 0x12f   : > { %6949 = vmatmul.mubr.bf16.gmra.mrb[28].mxu1 %v7623_v9  ;;  %v2693_v0 = vrot.slane %v2692_v29, 4  ;;  %v2703_v9 = vrot.slane %v2702_v16, 4  ;;  %v2725_v23 = vrot.slane %v2723_v11, 4  ;;  %v5253_v32 = vrot.slane %v6470_v7, 5  ;;  %v6477_v14 = vld [vmem:[%s7798_s28 + $0xbc] sm:$0x1] }
 0x130   : > { %6984 = vmatprep.mubr.bf16.mxu1 %v6156_v26  ;;  %v2712_v10 = vrot.slane %v2710_v36, 4  ;;  %v2731_v31 = vrot.slane %v2729_v19, 5  ;;  %v5256_v35 = vrot.slane %v6471_v13, 5  ;;  %v2734_v40 = vshrl.u32 %v6120_v20, 16 }
 0x131   : > { %v2698_v8 = vsel %vm7821_vm2, %v2693_v0, %v2697_v50  ;;  %v2708_v21 = vsel %vm7821_vm2, %v2703_v9, %v2707_v61  ;;  %v2726_v34 = vor.u32 %v2725_v23, %v2721_v17  ;;  %v2737_v27 = vshll.u32 %v6120_v20, 16  ;;  %v6125_v0 = vld [vmem:[%s7798_s28 + $0xb0] sm:$0x1]  ;;  %v6127_v23 = vld [vmem:[%s7798_s28 + $0xb8] sm:$0xf] }
 0x132   : > { %v6158_v26 = vcombine.low %v2698_v8, %v2708_v21  ;;  %v2716_v28 = vor.u32 %v2715_v15, %v2712_v10  ;;  %v8772_v46 = vsel %vm7921_vm5, %v6495_v24, %v5253_v32  ;;  %v2743_v42 = vshll.u32 %v6121_v25, 16  ;;  %v6476_v8 = vld [vmem:[%s7798_s28 + $0xb8] sm:$0xf] }
 0x133   : > { %v2727_v58 = vrot.slane %v2726_v34, 4  ;;  %v2736_v18 = vrot.slane %v2734_v40, 4  ;;  %v2747_v41 = vshrl.u32 %v6121_v25, 16  ;;  %v2753_v51 = vshll.u32 %v6122_v39, 16  ;;  %v6128_v34 = vld [vmem:[%s7798_s28 + $0xbc] sm:$0x1] }
 0x134   : > { %v2717_v37 = vrot.slane %v2716_v28, 4  ;;  %v2745_v50 = vrot.slane %v2743_v42, 5  ;;  %v6496_v62 = vrot.slane %v6472_v43, 9  ;;  %v5260_v63 = vrot.slane %v6473_v44, 5 }
 0x135   : > { %7173 = vmatmul.mubr.bf16.gmra.mrb[12].mxu0 %v6523_v52  ;;  %v5255_v52 = vrot.slane %v5253_v32, 4  ;;  %v2732_v60 = vsel %vm7821_vm2, %v2727_v58, %v2731_v31  ;;  %v2749_v57 = vrot.slane %v2747_v41, 4  ;;  %v2755_v56 = vrot.slane %v2753_v51, 5  ;;  %v6129_v51 = vld [vmem:[%s7798_s28 + $0xc0] sm:$0xf] }
 0x136   : > { %7176 = vmatprep.mubr.bf16.mxu0 %v6524_v12  ;;  %v2739_v12 = vrot.slane %v2737_v27, 5  ;;  %v2722_v45 = vsel %vm7821_vm2, %v2717_v37, %v2721_v17  ;;  %v5263_v36 = vrot.slane %v6474_v53, 5  ;;  %v2758_v1 = vshrl.u32 %v6123_v54, 16  ;;  %v6126_v17 = vld [vmem:[%s7798_s28 + $0xb4] sm:$0xf] }
 0x137   : > { %6985 = vmatmul.mubr.bf16.vlgmr.msra.gmra.mrb[16].mxu1 %v6157_v59  ;;  %v8780_v48 = vsel %vm7921_vm5, %v5255_v52, %v5256_v35  ;;  %v6124_v59 = vld [vmem:[%s7798_s28 + $0xac] sm:$0xf]  ;;  %v6159_v61 = vcombine.low %v2722_v45, %v2732_v60  ;;  %v2750_v30 = vor.u32 %v2749_v57, %v2745_v50  ;;  %v5261_v3 = vsel %vm7921_vm5, %v6496_v62, %v5260_v63  ;;  %v6478_v52 = vld [vmem:[%s7798_s28 + $0xc0] sm:$0xe] }
 0x138   : > { %6988 = vmatprep.mubr.bf16.mxu1 %v6158_v26  ;;  %v6527_v29 = vcombine.low %v8772_v46, %v8780_v48  ;;  %v2740_v55 = vor.u32 %v2739_v12, %v2736_v18  ;;  %v5262_v5 = vrot.slane %v5260_v63, 4  ;;  %v2761_v6 = vshll.u32 %v6123_v54, 16  ;;  %v6479_v12 = vld [vmem:[%s7798_s28 + $0xc4] sm:$0xf] }
 0x139   : > { %v2767_v7 = vshll.u32 %v6124_v59, 16  ;;  %v2751_v10 = vrot.slane %v2750_v30, 4  ;;  %v2760_v11 = vrot.slane %v2758_v1, 4  ;;  %v2771_v13 = vshrl.u32 %v6124_v59, 16 }
 0x13a   : > { %v2741_v16 = vrot.slane %v2740_v55, 4  ;;  %v5264_v38 = vsel %vm7921_vm5, %v5262_v5, %v5263_v36  ;;  %v2763_v49 = vrot.slane %v2761_v6, 5  ;;  %v2777_v15 = vshll.u32 %v6125_v0, 16  ;;  %v6481_v5 = vld [vmem:[%s7798_s28 + $0xcc] sm:$0xe] }
 0x13b   : > { %v2756_v19 = vsel %vm7821_vm2, %v2751_v10, %v2755_v56  ;;  %v6528_v20 = vcombine.low %v5261_v3, %v5264_v38  ;;  %v2773_v21 = vrot.slane %v2771_v13, 4  ;;  %v5267_v28 = vrot.slane %v6476_v8, 5  ;;  %v6482_v10 = vld [vmem:[%s7798_s28 + $0xd0] sm:$0xf] }
 0x13c   : > { %v2746_v9 = vsel %vm7821_vm2, %v2741_v16, %v2745_v50  ;;  %v2764_v25 = vor.u32 %v2763_v49, %v2760_v11  ;;  %v2779_v26 = vrot.slane %v2777_v15, 5  ;;  %v5270_v32 = vrot.slane %v6477_v14, 5  ;;  %v6480_v50 = vld [vmem:[%s7798_s28 + $0xc8] sm:$0x1]  ;;  %v6483_v49 = vld [vmem:[%s7798_s28 + $0xd4] sm:$0x1] }
 0x13d   : > { %7177 = vmatmul.mubr.bf16.gmra.mrb[16].mxu0 %v6525_v47  ;;  %v2769_v47 = vrot.slane %v2767_v7, 5  ;;  %v6160_v24 = vcombine.low %v2746_v9, %v2756_v19  ;;  %v2782_v35 = vshrl.u32 %v6126_v17, 16  ;;  %v2785_v39 = vshll.u32 %v6126_v17, 16  ;;  %v6131_v16 = vld [vmem:[%s7798_s28 + $0xc8] sm:$0x1] }
 0x13e   : > { %7180 = vmatprep.mubr.bf16.mxu0 %v6526_v22  ;;  %v6497_v22 = vrot.slane %v6475_v2, 9  ;;  %v2765_v40 = vrot.slane %v2764_v25, 4  ;;  %v5269_v37 = vrot.slane %v5267_v28, 4  ;;  %v2791_v46 = vshll.u32 %v6127_v23, 16 }
 0x13f   : > { %6989 = vmatmul.mubr.bf16.gmra.mrb[20].mxu1 %v6159_v61  ;;  %v2774_v31 = vor.u32 %v2773_v21, %v2769_v47  ;;  %v2784_v43 = vrot.slane %v2782_v35, 4  ;;  %v2787_v58 = vrot.slane %v2785_v39, 5  ;;  %v2795_v18 = vshrl.u32 %v6127_v23, 16 }
 0x140   : > { %6992 = vmatprep.mubr.bf16.mxu1 %v6160_v24  ;;  %v5268_v27 = vsel %vm7921_vm5, %v6497_v22, %v5267_v28  ;;  %v2770_v41 = vsel %vm7821_vm2, %v2765_v40, %v2769_v47  ;;  %v5271_v44 = vsel %vm7921_vm5, %v5269_v37, %v5270_v32  ;;  %v2793_v45 = vrot.slane %v2791_v46, 5 }
 0x141   : > { %v2775_v42 = vrot.slane %v2774_v31, 4  ;;  %v2801_v48 = vshll.u32 %v6128_v34, 16  ;;  %v6529_v54 = vcombine.low %v5268_v27, %v5271_v44  ;;  %v2788_v60 = vor.u32 %v2787_v58, %v2784_v43 }
 0x142   : > { %v2797_v55 = vrot.slane %v2795_v18, 4  ;;  %v6498_v61 = vrot.slane %v6478_v52, 9  ;;  %v5274_v56 = vrot.slane %v6479_v12, 5  ;;  %v5277_v0 = vrot.slane %v6480_v50, 5 }
 0x143   : > { %v2780_v53 = vsel %vm7821_vm2, %v2775_v42, %v2779_v26  ;;  %v2803_v59 = vrot.slane %v2801_v48, 5  ;;  %v2789_v62 = vrot.slane %v2788_v60, 4  ;;  %v2806_v30 = vshrl.u32 %v6129_v51, 16 }
 0x144   : > { %v6161_v57 = vcombine.low %v2770_v41, %v2780_v53  ;;  %v2798_v63 = vor.u32 %v2797_v55, %v2793_v45  ;;  %v5275_v36 = vsel %vm7921_vm5, %v6498_v61, %v5274_v56  ;;  %v5276_v1 = vrot.slane %v5274_v56, 4 }
 0x145   : > { %7181 = vmatmul.mubr.bf16.gmra.mrb[20].mxu0 %v6527_v29  ;;  %v6130_v29 = vld [vmem:[%s7798_s28 + $0xc4] sm:$0xf]  ;;  %v2809_v2 = vshll.u32 %v6129_v51, 16  ;;  %v2794_v6 = vsel %vm7821_vm2, %v2789_v62, %v2793_v45  ;;  %v2808_v8 = vrot.slane %v2806_v30, 4  ;;  %v2825_v38 = vshll.u32 %v6131_v16, 16  ;;  %s134_s28 = sand.u32 1, %s7686_s10  }
 0x146   : > { %7184 = vmatprep.mubr.bf16.mxu0 %v6528_v20  ;;  %v2815_v3 = vshll.u32 %v6130_v29, 16  ;;  %v2799_v7 = vrot.slane %v2798_v63, 4  ;;  %v2819_v9 = vshrl.u32 %v6130_v29, 16  ;;  %v5278_v11 = vsel %vm7921_vm5, %v5276_v1, %v5277_v0  ;;  %s5890_s22 = sshll.u32 %s134_s28, 1  ;;  %s5814_s30 = scalar_lea.sflag [#allocation4], %s134_s28 }
 0x147   : > { %6993 = vmatmul.mubr.bf16.gmra.mrb[24].mxu1 %v6161_v57  ;;  %v2811_v13 = vrot.slane %v2809_v2, 5  ;;  %v6530_v15 = vcombine.low %v5275_v36, %v5278_v11  ;;  %v6499_v19 = vrot.slane %v6481_v5, 9  ;;  %v5281_v22 = vrot.slane %v6482_v10, 5  ;;  %s136_s24 = scalar_lea.vmem [#allocation3], %s5890_s22 }
 0x148   : > { %v2817_v14 = vrot.slane %v2815_v3, 5  ;;  %v2804_v47 = vsel %vm7821_vm2, %v2799_v7, %v2803_v59  ;;  %v2821_v17 = vrot.slane %v2819_v9, 4  ;;  %v2827_v24 = vrot.slane %v2825_v38, 5  ;;  %s5827_s25 = sshll.u32 %s136_s24, 4  ;;  %s8856_s25 = int_to_ptr.vmem [resolvable:$true] %s5827_s25 }
 0x149   : > { %v6162_v20 = vcombine.low %v2794_v6, %v2804_v47  ;;  %v2812_v21 = vor.u32 %v2811_v13, %v2808_v8  ;;  %v5284_v25 = vrot.slane %v6483_v49, 5  ;;  %v5282_v28 = vsel %vm7921_vm5, %v6499_v19, %v5281_v22  ;;  %s7632_s3 = scalar_lea.vmem %s8856_s25, 32  ;;  %p7639_p0 = scmp.lt.s32.totalorder %s8856_s25, %s7637_s4 }
 0x14a   : > { %v2822_v23 = vor.u32 %v2821_v17, %v2817_v14  ;;  %v5283_v31 = vrot.slane %v5281_v22, 4  ;;  %p7633_p11 = scmp.ne.s32.totalorder %s8856_s25, %s7632_s3  ;;  %p7640_p1 = scmp.lt.s32.totalorder %s7638_s5, %s7632_s3 }
 0x14b   : > { %6996 = vmatprep.mubr.bf16.mxu1 %v6162_v20  ;;  %v2813_v26 = vrot.slane %v2812_v21, 4 }
 0x14c   : > { %v2823_v32 = vrot.slane %v2822_v23, 4  ;;  %v5285_v35 = vsel %vm7921_vm5, %v5283_v31, %v5284_v25  ;;  %p7634_p12 = pnand %p7633_p11, %p7750_p5  ;;  %p7641_p2 = por %p7640_p1, %p7639_p0 }
 0x14d   : > { %7185 = vmatmul.mubr.bf16.gmra.mrb[24].mxu0 %v6529_v54  ;;  %v2818_v34 = vsel %vm7821_vm2, %v2813_v26, %v2817_v14  ;;  %v6531_v40 = vcombine.low %v5282_v28, %v5285_v35 }
 0x14e   : > { %7188 = vmatprep.mubr.bf16.mxu0 %v6530_v15  ;;  %v2828_v39 = vsel %vm7821_vm2, %v2823_v32, %v2827_v24  ;;  %p7635_p13 = pneg %p7634_p12 }
 0x14f   : > { %v6163_v27 = vcombine.low %v2818_v34, %v2828_v39 }
 0x150   : > { %p7642_p3 = pnand %p7641_p2, %p7635_p13 }
 0x151   : > { %6997 = vmatmul.mubr.bf16.gmra.mrb[28].mxu1 %v6163_v27 }
 0x155   : > { %7189 = vmatmul.mubr.bf16.gmra.mrb[28].mxu0 %v6531_v40 }
 0x1ca   : > { %v6922_v37 = vpop.f32.mrb[0].mxu1 }
 0x1cb   : > { %v2174_v46 = vpop.f32.mrb[1].mxu1 }
 0x1cc   : > { %v6923_v52 = vpop.f32.mrb[2].mxu1 }
 0x1cd   : > { %v2177_v42 = vpop.f32.mrb[3].mxu1 }
 0x1d2   : > { %v6926_v43 = vpop.f32.mrb[4].mxu1 }
 0x1d3   : > { %v2190_v58 = vpop.f32.mrb[5].mxu1 }
 0x1d4   : > { %v6927_v18 = vpop.f32.mrb[6].mxu1 }
 0x1d5   : > { %v2193_v12 = vpop.f32.mrb[7].mxu1 }
 0x1da   : > { %v6930_v41 = vpop.f32.mrb[8].mxu1 }
 0x1db   : > { %v2206_v44 = vpop.f32.mrb[9].mxu1 }
 0x1dc   : > { %v6931_v45 = vpop.f32.mrb[10].mxu1 }
 0x1dd   : > { %v2209_v4 = vpop.f32.mrb[11].mxu1 }
 0x1e2   : > { %v6934_v48 = vpop.f32.mrb[12].mxu1 }
 0x1e3   : > { %v8840_v50 = vpop.f32.mrb[13].mxu1 }
 0x1e4   : > { %v8842_v33 = vpop.f32.mrb[14].mxu1 }
 0x1e5   : > { %v8844_v51 = vpop.f32.mrb[15].mxu1 }
 0x1f0   : > { %v7162_v53 = vpop.f32.mrb[0].mxu0 }
 0x1f1   : > { %v7208_v54 = vadd.f32 %v7162_v53, %v6922_v37  ;;  %v5449_v60 = vpop.f32.mrb[1].mxu0 }
 0x1f2   : > { %v7209_v55 = vadd.f32 %v5449_v60, %v2174_v46  ;;  %v7163_v29 = vpop.f32.mrb[2].mxu0 }
 0x1f3   : > { %v7210_v57 = vadd.f32 %v7163_v29, %v6923_v52  ;;  %v5452_v59 = vpop.f32.mrb[3].mxu0  ;;  %v5743_v0 = vmul.f32 %v7208_v54, %v7208_v54 }
 0x1f4   : > { %v7211_v61 = vadd.f32 %v5452_v59, %v2177_v42  ;;  %v5741_v56 = vmul.f32 %v7209_v55, %v7209_v55 }
 0x1f5   : > { %v5744_v3 = vmul.f32 %v7210_v57, %v7210_v57 }
 0x1f6   : > { %v5704_v62 = vadd.f32 %v7211_v61, %v7209_v55  ;;  %v5742_v63 = vmul.f32 %v7211_v61, %v7211_v61 }
 0x1f8   : > { %v5705_v16 = vadd.f32 %v7208_v54, %v5704_v62  ;;  %v5773_v30 = vadd.f32 %v5742_v63, %v5741_v56  ;;  %v7166_v36 = vpop.f32.mrb[4].mxu0 }
 0x1f9   : > { %v7212_v1 = vadd.f32 %v7166_v36, %v6926_v43  ;;  %v5465_v2 = vpop.f32.mrb[5].mxu0 }
 0x1fa   : > { %v5774_v5 = vadd.f32 %v5773_v30, %v5743_v0  ;;  %v7213_v6 = vadd.f32 %v5465_v2, %v2190_v58  ;;  %v5706_v7 = vadd.f32 %v7210_v57, %v5705_v16  ;;  %v7167_v8 = vpop.f32.mrb[6].mxu0 }
 0x1fb   : > { %v7214_v9 = vadd.f32 %v7167_v8, %v6927_v18  ;;  %v5468_v10 = vpop.f32.mrb[7].mxu0  ;;  %v5747_v17 = vmul.f32 %v7212_v1, %v7212_v1 }
 0x1fc   : > { %v5707_v11 = vadd.f32 %v7213_v6, %v5706_v7  ;;  %v5745_v13 = vmul.f32 %v7213_v6, %v7213_v6  ;;  %v5775_v14 = vadd.f32 %v5774_v5, %v5744_v3  ;;  %v7215_v38 = vadd.f32 %v5468_v10, %v2193_v12 }
 0x1fd   : > { %v5748_v24 = vmul.f32 %v7214_v9, %v7214_v9 }
 0x1fe   : > { %v5776_v49 = vadd.f32 %v5775_v14, %v5745_v13  ;;  %v5708_v47 = vadd.f32 %v7215_v38, %v5707_v11  ;;  %v5746_v15 = vmul.f32 %v7215_v38, %v7215_v38 }
 0x200   : > { %v5709_v19 = vadd.f32 %v7212_v1, %v5708_v47  ;;  %v5777_v20 = vadd.f32 %v5776_v49, %v5746_v15  ;;  %v7170_v21 = vpop.f32.mrb[8].mxu0 }
 0x201   : > { %v7216_v22 = vadd.f32 %v7170_v21, %v6930_v41  ;;  %v5481_v23 = vpop.f32.mrb[9].mxu0 }
 0x202   : > { %v5778_v25 = vadd.f32 %v5777_v20, %v5747_v17  ;;  %v7217_v26 = vadd.f32 %v5481_v23, %v2206_v44  ;;  %v5710_v28 = vadd.f32 %v7214_v9, %v5709_v19  ;;  %v7171_v31 = vpop.f32.mrb[10].mxu0 }
 0x203   : > { %v7218_v32 = vadd.f32 %v7171_v31, %v6931_v45  ;;  %v5484_v34 = vpop.f32.mrb[11].mxu0  ;;  %v5751_v58 = vmul.f32 %v7216_v22, %v7216_v22 }
 0x204   : > { %v5711_v35 = vadd.f32 %v7217_v26, %v5710_v28  ;;  %v5749_v39 = vmul.f32 %v7217_v26, %v7217_v26  ;;  %v5779_v40 = vadd.f32 %v5778_v25, %v5748_v24  ;;  %v7219_v27 = vadd.f32 %v5484_v34, %v2209_v4 }
 0x205   : > { %v5752_v55 = vmul.f32 %v7218_v32, %v7218_v32 }
 0x206   : > { %v5780_v37 = vadd.f32 %v5779_v40, %v5749_v39  ;;  %v5712_v46 = vadd.f32 %v7219_v27, %v5711_v35  ;;  %v5750_v52 = vmul.f32 %v7219_v27, %v7219_v27 }
 0x208   : > { %v5713_v18 = vadd.f32 %v7216_v22, %v5712_v46  ;;  %v5781_v12 = vadd.f32 %v5780_v37, %v5750_v52  ;;  %v7174_v41 = vpop.f32.mrb[12].mxu0 }
 0x209   : > { %v7220_v54 = vadd.f32 %v7174_v41, %v6934_v48  ;;  %v5497_v44 = vpop.f32.mrb[13].mxu0 }
 0x20a   : > { %v6986_v42 = vpop.f32.mrb[16].mxu1  ;;  %v5782_v45 = vadd.f32 %v5781_v12, %v5751_v58  ;;  %v7221_v29 = vadd.f32 %v5497_v44, %v8840_v50  ;;  %v5714_v57 = vadd.f32 %v7218_v32, %v5713_v18  ;;  %v7175_v59 = vpop.f32.mrb[14].mxu0 }
 0x20b   : > { %v3056_v43 = vpop.f32.mrb[17].mxu1  ;;  %v7222_v4 = vadd.f32 %v7175_v59, %v8842_v33  ;;  %v5500_v61 = vpop.f32.mrb[15].mxu0  ;;  %v5755_v48 = vmul.f32 %v7220_v54, %v7220_v54 }
 0x20c   : > { %v6987_v53 = vpop.f32.mrb[18].mxu1  ;;  %v5715_v56 = vadd.f32 %v7221_v29, %v5714_v57  ;;  %v5753_v62 = vmul.f32 %v7221_v29, %v7221_v29  ;;  %v5783_v63 = vadd.f32 %v5782_v45, %v5752_v55  ;;  %v7223_v0 = vadd.f32 %v5500_v61, %v8844_v51 }
 0x20d   : > { %v3059_v60 = vpop.f32.mrb[19].mxu1  ;;  %v5756_v8 = vmul.f32 %v7222_v4, %v7222_v4 }
 0x20e   : > { %v5784_v16 = vadd.f32 %v5783_v63, %v5753_v62  ;;  %v5716_v30 = vadd.f32 %v7223_v0, %v5715_v56  ;;  %v5754_v36 = vmul.f32 %v7223_v0, %v7223_v0 }
 0x210   : > { %v5717_v1 = vadd.f32 %v7220_v54, %v5716_v30  ;;  %v5785_v2 = vadd.f32 %v5784_v16, %v5754_v36  ;;  %v7178_v3 = vpop.f32.mrb[16].mxu0 }
 0x211   : > { %v7224_v6 = vadd.f32 %v7178_v3, %v6986_v42  ;;  %v5513_v50 = vpop.f32.mrb[17].mxu0 }
 0x212   : > { %v6990_v5 = vpop.f32.mrb[20].mxu1  ;;  %v5786_v9 = vadd.f32 %v5785_v2, %v5755_v48  ;;  %v7225_v33 = vadd.f32 %v5513_v50, %v3056_v43  ;;  %v5718_v10 = vadd.f32 %v7222_v4, %v5717_v1  ;;  %v7179_v11 = vpop.f32.mrb[18].mxu0 }
 0x213   : > { %v3072_v7 = vpop.f32.mrb[21].mxu1  ;;  %v7226_v14 = vadd.f32 %v7179_v11, %v6987_v53  ;;  %v5516_v38 = vpop.f32.mrb[19].mxu0  ;;  %v5759_v22 = vmul.f32 %v7224_v6, %v7224_v6 }
 0x214   : > { %v6991_v13 = vpop.f32.mrb[22].mxu1  ;;  %v5719_v49 = vadd.f32 %v7225_v33, %v5718_v10  ;;  %v5757_v47 = vmul.f32 %v7225_v33, %v7225_v33  ;;  %v5787_v15 = vadd.f32 %v5786_v9, %v5756_v8  ;;  %v7227_v17 = vadd.f32 %v5516_v38, %v3059_v60 }
 0x215   : > { %v3075_v51 = vpop.f32.mrb[23].mxu1  ;;  %v5760_v31 = vmul.f32 %v7226_v14, %v7226_v14 }
 0x216   : > { %v5788_v19 = vadd.f32 %v5787_v15, %v5757_v47  ;;  %v5720_v20 = vadd.f32 %v7227_v17, %v5719_v49  ;;  %v5758_v21 = vmul.f32 %v7227_v17, %v7227_v17 }
 0x218   : > { %v5721_v23 = vadd.f32 %v7224_v6, %v5720_v20  ;;  %v5789_v24 = vadd.f32 %v5788_v19, %v5758_v21  ;;  %v7182_v25 = vpop.f32.mrb[20].mxu0 }
 0x219   : > { %v7228_v26 = vadd.f32 %v7182_v25, %v6990_v5  ;;  %v5529_v28 = vpop.f32.mrb[21].mxu0 }
 0x21a   : > { %v5790_v32 = vadd.f32 %v5789_v24, %v5759_v22  ;;  %v7229_v34 = vadd.f32 %v5529_v28, %v3072_v7  ;;  %v5722_v35 = vadd.f32 %v7226_v14, %v5721_v23  ;;  %v7183_v39 = vpop.f32.mrb[22].mxu0  ;;  %v6994_v43 = vpop.f32.mrb[24].mxu1 }
 0x21b   : > { %v7230_v40 = vadd.f32 %v7183_v39, %v6991_v13  ;;  %v5532_v27 = vpop.f32.mrb[23].mxu0  ;;  %v3088_v58 = vpop.f32.mrb[25].mxu1  ;;  %v5763_v44 = vmul.f32 %v7228_v26, %v7228_v26 }
 0x21c   : > { %v5723_v37 = vadd.f32 %v7229_v34, %v5722_v35  ;;  %v5761_v46 = vmul.f32 %v7229_v34, %v7229_v34  ;;  %v5791_v52 = vadd.f32 %v5790_v32, %v5760_v31  ;;  %v7231_v42 = vadd.f32 %v5532_v27, %v3075_v51  ;;  %v6995_v53 = vpop.f32.mrb[26].mxu1 }
 0x21d   : > { %v3091_v54 = vpop.f32.mrb[27].mxu1  ;;  %v5764_v59 = vmul.f32 %v7230_v40, %v7230_v40 }
 0x21e   : > { %v5792_v18 = vadd.f32 %v5791_v52, %v5761_v46  ;;  %v5724_v12 = vadd.f32 %v7231_v42, %v5723_v37  ;;  %v5762_v41 = vmul.f32 %v7231_v42, %v7231_v42 }
 0x220   : > { %v5725_v60 = vadd.f32 %v7228_v26, %v5724_v12  ;;  %v5793_v55 = vadd.f32 %v5792_v18, %v5762_v41  ;;  %v7186_v45 = vpop.f32.mrb[24].mxu0 }
 0x221   : > { %v7232_v29 = vadd.f32 %v7186_v45, %v6994_v43  ;;  %v5545_v57 = vpop.f32.mrb[25].mxu0 }
 0x222   : > { %v5794_v4 = vadd.f32 %v5793_v55, %v5763_v44  ;;  %v7233_v61 = vadd.f32 %v5545_v57, %v3088_v58  ;;  %v5726_v56 = vadd.f32 %v7230_v40, %v5725_v60  ;;  %v7187_v62 = vpop.f32.mrb[26].mxu0 }
 0x223   : > { %v7234_v63 = vadd.f32 %v7187_v62, %v6995_v53  ;;  %v5548_v0 = vpop.f32.mrb[27].mxu0  ;;  %v5767_v5 = vmul.f32 %v7232_v29, %v7232_v29 }
 0x224   : > { %v5727_v16 = vadd.f32 %v7233_v61, %v5726_v56  ;;  %v5765_v30 = vmul.f32 %v7233_v61, %v7233_v61  ;;  %v5795_v36 = vadd.f32 %v5794_v4, %v5764_v59  ;;  %v7235_v48 = vadd.f32 %v5548_v0, %v3091_v54  ;;  %v6998_v7 = vpop.f32.mrb[28].mxu1 }
 0x225   : > { %v3104_v33 = vpop.f32.mrb[29].mxu1  ;;  %v5768_v11 = vmul.f32 %v7234_v63, %v7234_v63 }
 0x226   : > { %v5796_v1 = vadd.f32 %v5795_v36, %v5765_v30  ;;  %v5728_v2 = vadd.f32 %v7235_v48, %v5727_v16  ;;  %v5766_v3 = vmul.f32 %v7235_v48, %v7235_v48  ;;  %v6999_v51 = vpop.f32.mrb[30].mxu1 }
 0x227   : > { %v3107_v15 = vpop.f32.mrb[31].mxu1 }
 0x228   : > { %v5729_v6 = vadd.f32 %v7232_v29, %v5728_v2  ;;  %v5797_v50 = vadd.f32 %v5796_v1, %v5766_v3  ;;  %v7190_v8 = vpop.f32.mrb[28].mxu0 }
 0x229   : > { %v7236_v9 = vadd.f32 %v7190_v8, %v6998_v7  ;;  %v5561_v10 = vpop.f32.mrb[29].mxu0 }
 0x22a   : > { %v5798_v13 = vadd.f32 %v5797_v50, %v5767_v5  ;;  %v7237_v14 = vadd.f32 %v5561_v10, %v3104_v33  ;;  %v5730_v38 = vadd.f32 %v7234_v63, %v5729_v6  ;;  %v7191_v49 = vpop.f32.mrb[30].mxu0 }
 0x22b   : > { %v7238_v47 = vadd.f32 %v7191_v49, %v6999_v51  ;;  %v5564_v17 = vpop.f32.mrb[31].mxu0  ;;  %v5771_v26 = vmul.f32 %v7236_v9, %v7236_v9 }
 0x22c   : > { %v5731_v19 = vadd.f32 %v7237_v14, %v5730_v38  ;;  %v5769_v20 = vmul.f32 %v7237_v14, %v7237_v14  ;;  %v5799_v21 = vadd.f32 %v5798_v13, %v5768_v11  ;;  %v7239_v22 = vadd.f32 %v5564_v17, %v3107_v15 }
 0x22d   : > { %v5772_v32 = vmul.f32 %v7238_v47, %v7238_v47 }
 0x22e   : > { %v5800_v23 = vadd.f32 %v5799_v21, %v5769_v20  ;;  %v5732_v24 = vadd.f32 %v7239_v22, %v5731_v19  ;;  %v5770_v25 = vmul.f32 %v7239_v22, %v7239_v22 }
 0x230   : > { %v5733_v28 = vadd.f32 %v7236_v9, %v5732_v24  ;;  %v5801_v31 = vadd.f32 %v5800_v23, %v5770_v25 }
 0x232   : > { %v5734_v34 = vadd.f32 %v7238_v47, %v5733_v28  ;;  %v5802_v35 = vadd.f32 %v5801_v31, %v5771_v26 }
 0x234   : > { %v5735_v39 = vrot.slane %v5734_v34, 4  ;;  %v5803_v40 = vadd.f32 %v5802_v35, %v5772_v32 }
 0x236   : > { %v5736_v27 = vadd.f32 %v5735_v39, %v5734_v34  ;;  %v5804_v37 = vrot.slane %v5803_v40, 4 }
 0x238   : > { %v5737_v46 = vrot.slane %v5736_v27, 2  ;;  %v5805_v52 = vadd.f32 %v5804_v37, %v5803_v40 }
 0x23a   : > { %v5738_v42 = vadd.f32 %v5737_v46, %v5736_v27  ;;  %v5806_v43 = vrot.slane %v5805_v52, 2 }
 0x23c   : > { %v5739_v58 = vrot.slane %v5738_v42, 1  ;;  %v5807_v18 = vadd.f32 %v5806_v43, %v5805_v52 }
 0x23e   : > { %v5808_v12 = vrot.slane %v5807_v18, 1  ;;  %v5740_v41 = vadd.f32 %v5739_v58, %v5738_v42 }
 0x240   : > { %v5809_v53 = vadd.f32 %v5808_v12, %v5807_v18 }
 0x242   : > { %v5811_v54 = vsel %vm5810_vm6, %v5740_v41, %v5809_v53 }
 0x243   : > { %5812 = vst [vmem:[%s136_s24] sm:$0x3] %v5811_v54 }
 0x244   : > { %7645 = shalt.err (!%p7642_p3)
}
 0x245   : > { %s7646_s6 = scalar_lea.hbm %s8854_s29, 32  ;;  %s7650_s14 = scalar_lea.hbm %s8898_s2, 64 }
 0x246   : > { %p7647_p4 = scmp.ne.s32.totalorder %s8854_s29, %s7646_s6  ;;  %p7651_p9 = scmp.lt.u32.totalorder %s8854_s29, %s8898_s2 }
 0x247   : > { %p7652_p10 = scmp.lt.u32.totalorder %s7650_s14, %s7646_s6  ;;  %p7654_p12 = scmp.lt.u32.totalorder %s7646_s6, %s8854_s29 }
 0x248   : > { %p7648_p7 = pnand %p7647_p4, %p7750_p5 }
 0x249   : > { %p7653_p11 = por %p7652_p10, %p7651_p9 }
 0x24a   : > { %p7649_p8 = pneg %p7648_p7 }
 0x24b   : > { %p7655_p13 = por %p7654_p12, %p7653_p11 }
 0x24d   : > { %p7656_p0 = pnand %p7655_p13, %p7649_p8 }
 0x24f   : > { %7659 = shalt.err (!%p7656_p0)
}
 0x250   : > { %7465 = dma.vmem_to_hbm [thread:$0]  (%p7750_p5), %s8856_s25, 32, %s8854_s29, %s5814_s30  }
 0x251 PF: > { %p7471_p1 = scmp.ge.s32.totalorder %s7694_s12, 2  ;;  %s5839_s21 = sand.u32 1, %s7682_s9  }
 0x252   : > { %s5840_s28 = scalar_lea.sflag [#allocation4], %s5839_s21 }
 0x253   : > { %p7468_p2 = pnand %p7471_p1, %p7754_p6 }
 0x255   : > { %7677 = dma.done.wait (!%p7468_p2), %s5840_s28, 32  }
 0x256   : > { %7679 = vsyncadd (!%p7468_p2), %s5840_s28, 4294967264  ;;  %p12_p3 = scmp.ge.s32.totalorder %s7737_s15, 4   ;;  %s8905_s9 = smov %s7686_s10 }
 0x257   : > { %s8906_s10 = smov %s7690_s11  ;;  %s8907_s11 = smov %s7748_s18 }
 0x258   : > { %s8908_s12 = smov %s7737_s15  ;;  %14 = sbr.rel (!%p12_p3) target bundleno = 3 (0x3), region = 73 }
 0x25f   :  { %5845 = vsyncpa [#allocation4], 1 }
 0x260   :  { %5847 = vsyncpa [#allocation4 + $0x1], 1 }

</bundles_post_ra>
